<compile_context>
chip_gen: v5e
topology: v5e:2x2
jax: 0.10.0
libtpu: 0.0.40
codegen_flags: <defaults>
</compile_context>

<pallas_src>
import functools
import math

import jax
import jax.numpy as jnp
from jax.experimental import pallas as pl
from jax.experimental.pallas import tpu as pltpu

# ------------------------- config -------------------------
VOCAB = 16
D_MODEL = 32
N_HEADS = 4
D_FF = 64
N_LAYERS = 2
LN_EPS = 1e-6


# ------------------------- in-kernel helpers -------------------------

def _ln(x, g, b):
    # Annotated-transformer LayerNorm: a_2 * (x - mean) / (std + eps) + b_2
    # with the *unbiased* std (torch.Tensor.std default, ddof=1).
    d = x.shape[-1]
    mean = jnp.mean(x, axis=-1, keepdims=True)
    xc = x - mean
    var = jnp.sum(xc * xc, axis=-1, keepdims=True) * (1.0 / (d - 1))
    return g * xc / (jnp.sqrt(var) + LN_EPS) + b


def _mha(q, k, v, bias, batch, heads):
    """Multi-head attention core: concat_heads(softmax(q k^T + bias) v).

    q:   (B*Sq, D)  -- 1/sqrt(d_k) already folded into the Q projection
    k,v: (B*Sk, D)
    bias:(B, 1, Sk) or (B, Sq, Sk) additive mask bias (0 keep, -1e9 masked)
    Returns (B*Sq, D); the single output projection is done by the caller.
    """
    mq, d = q.shape
    mk = k.shape[0]
    dk = d // heads
    sq = mq // batch
    sk = mk // batch
    # Broadcast the mask bias ONCE, hoisted out of the head loop.
    bias_full = jnp.broadcast_to(bias, (batch, sq, sk))
    ctx = []
    for h in range(heads):
        sl = slice(h * dk, (h + 1) * dk)
        qh = q[:, sl].reshape(batch, sq, dk)
        kh = k[:, sl].reshape(batch, sk, dk)
        vh = v[:, sl].reshape(batch, sk, dk)
        s = jnp.einsum('bqd,bkd->bqk', qh, kh,
                       preferred_element_type=jnp.float32) + bias_full
        s = s - jnp.max(s, axis=-1, keepdims=True)
        p = jnp.exp(s)
        p = p * pl.reciprocal(jnp.sum(p, axis=-1, keepdims=True), approx=True)
        ctx.append(jnp.einsum('bqk,bkd->bqd', p, vh,
                              preferred_element_type=jnp.float32).reshape(mq, dk))
    return jnp.concatenate(ctx, axis=-1)


# ------------------------- fused stack kernels -------------------------

def _encoder_stack_kernel(x_ref, bias_ref,
                          wqkv_ref, bqkv_ref, wo_ref, bo_ref,
                          ln1g_ref, ln1b_ref,
                          w1_ref, b1_ref, w2_ref, b2_ref,
                          ln2g_ref, ln2b_ref,
                          fng_ref, fnb_ref,
                          o_ref, x_sc, *, batch, heads):
    # One grid step == one encoder layer; residual stream stays in x_sc (VMEM).
    l = pl.program_id(0)

    @pl.when(l == 0)
    def _():
        x_sc[...] = x_ref[...]

    x = x_sc[...]
    d = x.shape[-1]

    # SublayerConnection 1: x + W_o(self_attn(norm(x))) + b_o
    y = _ln(x, ln1g_ref[...], ln1b_ref[...])
    qkv = jnp.dot(y, wqkv_ref[...], preferred_element_type=jnp.float32) + bqkv_ref[...]
    ctx = _mha(qkv[:, :d], qkv[:, d:2 * d], qkv[:, 2 * d:], bias_ref[...], batch, heads)
    x = x + jnp.dot(ctx, wo_ref[...], preferred_element_type=jnp.float32) + bo_ref[...]

    # SublayerConnection 2: x + W2(relu(W1(norm(x))))
    y = _ln(x, ln2g_ref[...], ln2b_ref[...])
    h = jnp.maximum(jnp.dot(y, w1_ref[...], preferred_element_type=jnp.float32) + b1_ref[...], 0.0)
    x = x + jnp.dot(h, w2_ref[...], preferred_element_type=jnp.float32) + b2_ref[...]

    x_sc[...] = x

    @pl.when(l == pl.num_programs(0) - 1)
    def _():
        # Encoder final LayerNorm folded into the last grid step.
        o_ref[...] = _ln(x, fng_ref[...], fnb_ref[...])


def _decoder_stack_kernel(y_ref, mem_ref, tbias_ref, sbias_ref,
                          sa_wqkv_ref, sa_bqkv_ref, sa_wo_ref, sa_bo_ref,
                          ln1g_ref, ln1b_ref,
                          ca_wqkv_ref, ca_bqkv_ref, ca_wo_ref, ca_bo_ref,
                          ln2g_ref, ln2b_ref,
                          w1_ref, b1_ref, w2_ref, b2_ref,
                          ln3g_ref, ln3b_ref,
                          fng_ref, fnb_ref,
                          o_ref, x_sc, *, batch, heads):
    # One grid step == one decoder layer (self-attn, cross-attn, FFN).
    l = pl.program_id(0)

    @pl.when(l == 0)
    def _():
        x_sc[...] = y_ref[...]

    x = x_sc[...]
    d = x.shape[-1]
    mem = mem_ref[...]

    # SublayerConnection 1: masked self-attention.
    y = _ln(x, ln1g_ref[...], ln1b_ref[...])
    qkv = jnp.dot(y, sa_wqkv_ref[...], preferred_element_type=jnp.float32) + sa_bqkv_ref[...]
    ctx = _mha(qkv[:, :d], qkv[:, d:2 * d], qkv[:, 2 * d:], tbias_ref[...], batch, heads)
    x = x + jnp.dot(ctx, sa_wo_ref[...], preferred_element_type=jnp.float32) + sa_bo_ref[...]

    # SublayerConnection 2: cross-attention over encoder memory.
    y = _ln(x, ln2g_ref[...], ln2b_ref[...])
    wqkv = ca_wqkv_ref[...]
    bqkv = ca_bqkv_ref[...]
    q = jnp.dot(y, wqkv[:, :d], preferred_element_type=jnp.float32) + bqkv[:, :d]
    kv = jnp.dot(mem, wqkv[:, d:], preferred_element_type=jnp.float32) + bqkv[:, d:]
    ctx = _mha(q, kv[:, :d], kv[:, d:], sbias_ref[...], batch, heads)
    x = x + jnp.dot(ctx, ca_wo_ref[...], preferred_element_type=jnp.float32) + ca_bo_ref[...]

    # SublayerConnection 3: position-wise FFN.
    y = _ln(x, ln3g_ref[...], ln3b_ref[...])
    h = jnp.maximum(jnp.dot(y, w1_ref[...], preferred_element_type=jnp.float32) + b1_ref[...], 0.0)
    x = x + jnp.dot(h, w2_ref[...], preferred_element_type=jnp.float32) + b2_ref[...]

    x_sc[...] = x

    @pl.when(l == pl.num_programs(0) - 1)
    def _():
        # Decoder final LayerNorm folded into the last grid step.
        o_ref[...] = _ln(x, fng_ref[...], fnb_ref[...])


# ------------------------- kernel wrappers -------------------------

def _stacked(shape):
    # Per-layer weight (L, a, b): kernel sees the (a, b) slice of layer l.
    return pl.BlockSpec((None,) + tuple(shape), lambda l: (l, 0, 0))


def _whole2(shape):
    return pl.BlockSpec(tuple(shape), lambda l: (0, 0))


def _whole3(shape):
    return pl.BlockSpec(tuple(shape), lambda l: (0, 0, 0))


def encode_stack(x_emb, src_bias, enc, fin_g, fin_b, batch):
    m, d = x_emb.shape
    n_layers = enc['wqkv'].shape[0]
    f = enc['w1'].shape[-1]
    kern = functools.partial(_encoder_stack_kernel, batch=batch, heads=N_HEADS)
    return pl.pallas_call(
        kern,
        out_shape=jax.ShapeDtypeStruct((m, d), jnp.float32),
        grid=(n_layers,),
        in_specs=[
            _whole2((m, d)),
            _whole3(src_bias.shape),
            _stacked((d, 3 * d)), _stacked((1, 3 * d)),
            _stacked((d, d)), _stacked((1, d)),
            _stacked((1, d)), _stacked((1, d)),
            _stacked((d, f)), _stacked((1, f)),
            _stacked((f, d)), _stacked((1, d)),
            _stacked((1, d)), _stacked((1, d)),
            _whole2((1, d)), _whole2((1, d)),
        ],
        out_specs=_whole2((m, d)),
        scratch_shapes=[pltpu.VMEM((m, d), jnp.float32)],
        compiler_params=pltpu.CompilerParams(dimension_semantics=("arbitrary",)),
    )(x_emb, src_bias,
      enc['wqkv'], enc['bqkv'], enc['wo'], enc['bo'],
      enc['ln1_g'], enc['ln1_b'],
      enc['w1'], enc['b1'], enc['w2'], enc['b2'],
      enc['ln2_g'], enc['ln2_b'],
      fin_g, fin_b)


def decode_stack(y_emb, memory, tgt_bias, src_bias, dec, fin_g, fin_b, batch):
    m, d = y_emb.shape
    mk = memory.shape[0]
    n_layers = dec['sa_wqkv'].shape[0]
    f = dec['w1'].shape[-1]
    kern = functools.partial(_decoder_stack_kernel, batch=batch, heads=N_HEADS)
    return pl.pallas_call(
        kern,
        out_shape=jax.ShapeDtypeStruct((m, d), jnp.float32),
        grid=(n_layers,),
        in_specs=[
            _whole2((m, d)),
            _whole2((mk, d)),
            _whole3(tgt_bias.shape),
            _whole3(src_bias.shape),
            _stacked((d, 3 * d)), _stacked((1, 3 * d)),
            _stacked((d, d)), _stacked((1, d)),
            _stacked((1, d)), _stacked((1, d)),
            _stacked((d, 3 * d)), _stacked((1, 3 * d)),
            _stacked((d, d)), _stacked((1, d)),
            _stacked((1, d)), _stacked((1, d)),
            _stacked((d, f)), _stacked((1, f)),
            _stacked((f, d)), _stacked((1, d)),
            _stacked((1, d)), _stacked((1, d)),
            _whole2((1, d)), _whole2((1, d)),
        ],
        out_specs=_whole2((m, d)),
        scratch_shapes=[pltpu.VMEM((m, d), jnp.float32)],
        compiler_params=pltpu.CompilerParams(dimension_semantics=("arbitrary",)),
    )(y_emb, memory, tgt_bias, src_bias,
      dec['sa_wqkv'], dec['sa_bqkv'], dec['sa_wo'], dec['sa_bo'],
      dec['ln1_g'], dec['ln1_b'],
      dec['ca_wqkv'], dec['ca_bqkv'], dec['ca_wo'], dec['ca_bo'],
      dec['ln2_g'], dec['ln2_b'],
      dec['w1'], dec['b1'], dec['w2'], dec['b2'],
      dec['ln3_g'], dec['ln3_b'],
      fin_g, fin_b)


# ------------------------- transformer model (glue in JAX) -------------------------

def embed(lut, tokens, pe):
    # Embeddings: lut(x) * sqrt(d_model); PositionalEncoding: + pe[:, :len]
    e = jnp.take(lut, tokens, axis=0) * math.sqrt(D_MODEL)
    return e + pe[None, :tokens.shape[1], :]


def _mask_bias(mask):
    # {0,1} mask -> additive bias (0 keep, -1e9 masked); shape preserved
    # (un-broadcast); broadcasting happens once inside the kernel.
    return (mask.astype(jnp.float32) - 1.0) * 1e9


@jax.jit
def encoder_decoder_forward(params, src, tgt, src_mask, tgt_mask):
    batch, src_len = src.shape
    tgt_len = tgt.shape[1]
    src_bias = _mask_bias(src_mask)   # (B, 1, S)
    tgt_bias = _mask_bias(tgt_mask)   # (B, T, T)

    # encode(src, src_mask): fused encoder stack + final LayerNorm
    x = embed(params['src_lut'], src, params['pe']).reshape(batch * src_len, D_MODEL)
    memory = encode_stack(x, src_bias, params['enc'],
                          params['enc_norm_g'], params['enc_norm_b'], batch)

    # decode(memory, src_mask, tgt, tgt_mask): fused decoder stack + final LayerNorm
    y = embed(params['tgt_lut'], tgt, params['pe']).reshape(batch * tgt_len, D_MODEL)
    out = decode_stack(y, memory, tgt_bias, src_bias, params['dec'],
                       params['dec_norm_g'], params['dec_norm_b'], batch)
    return out.reshape(batch, tgt_len, D_MODEL)


# ------------------------- deterministic parameter init -------------------------

def positional_encoding(max_len, d_model):
    pos = jnp.arange(max_len, dtype=jnp.float32)[:, None]
    div = jnp.exp(jnp.arange(0, d_model, 2, dtype=jnp.float32)
                  * (-math.log(10000.0) / d_model))
    pe = jnp.zeros((max_len, d_model), jnp.float32)
    pe = pe.at[:, 0::2].set(jnp.sin(pos * div))
    pe = pe.at[:, 1::2].set(jnp.cos(pos * div))
    return pe


def _dense_init(key, out_f, in_f, scale=0.08):
    wk, bk = jax.random.split(key)
    w = scale * jax.random.normal(wk, (out_f, in_f), jnp.float32)
    b = scale * jax.random.normal(bk, (out_f,), jnp.float32)
    return w, b


def _init_mha(key):
    ks = jax.random.split(key, 4)
    w, b = {}, {}
    for name, k in zip(('q', 'k', 'v', 'o'), ks):
        w[name], b[name] = _dense_init(k, D_MODEL, D_MODEL)
    dk = D_MODEL // N_HEADS
    scale = 1.0 / math.sqrt(dk)
    # Packed, pre-transposed (in, out) QKV weight; 1/sqrt(d_k) folded into Q.
    wqkv = jnp.concatenate([w['q'].T * scale, w['k'].T, w['v'].T], axis=1)
    bqkv = jnp.concatenate([b['q'] * scale, b['k'], b['v']]).reshape(1, 3 * D_MODEL)
    return {'wqkv': wqkv, 'bqkv': bqkv,
            'wo': w['o'].T, 'bo': b['o'].reshape(1, D_MODEL)}


def _init_ffn(key):
    k1, k2 = jax.random.split(key)
    w1, b1 = _dense_init(k1, D_FF, D_MODEL)
    w2, b2 = _dense_init(k2, D_MODEL, D_FF)
    return {'w1': w1.T, 'b1': b1.reshape(1, D_FF),
            'w2': w2.T, 'b2': b2.reshape(1, D_MODEL)}


def _ln_params():
    return jnp.ones((1, D_MODEL), jnp.float32), jnp.zeros((1, D_MODEL), jnp.float32)


def _init_enc_layer(key):
    k1, k2 = jax.random.split(key)
    mha = _init_mha(k1)
    ffn = _init_ffn(k2)
    g1, b1 = _ln_params()
    g2, b2 = _ln_params()
    return {'wqkv': mha['wqkv'], 'bqkv': mha['bqkv'], 'wo': mha['wo'], 'bo': mha['bo'],
            'ln1_g': g1, 'ln1_b': b1,
            'w1': ffn['w1'], 'b1': ffn['b1'], 'w2': ffn['w2'], 'b2': ffn['b2'],
            'ln2_g': g2, 'ln2_b': b2}


def _init_dec_layer(key):
    k1, k2, k3 = jax.random.split(key, 3)
    sa = _init_mha(k1)
    ca = _init_mha(k2)
    ffn = _init_ffn(k3)
    g1, b1 = _ln_params()
    g2, b2 = _ln_params()
    g3, b3 = _ln_params()
    return {'sa_wqkv': sa['wqkv'], 'sa_bqkv': sa['bqkv'], 'sa_wo': sa['wo'], 'sa_bo': sa['bo'],
            'ln1_g': g1, 'ln1_b': b1,
            'ca_wqkv': ca['wqkv'], 'ca_bqkv': ca['bqkv'], 'ca_wo': ca['wo'], 'ca_bo': ca['bo'],
            'ln2_g': g2, 'ln2_b': b2,
            'w1': ffn['w1'], 'b1': ffn['b1'], 'w2': ffn['w2'], 'b2': ffn['b2'],
            'ln3_g': g3, 'ln3_b': b3}


def _stack_layers(layers):
    # Stack per-layer param dicts along a leading layer axis for the fused kernels.
    return jax.tree_util.tree_map(lambda *xs: jnp.stack(xs, axis=0), *layers)


def init_params(key):
    keys = jax.random.split(key, 4)
    enc_layers = [_init_enc_layer(k) for k in jax.random.split(keys[2], N_LAYERS)]
    dec_layers = [_init_dec_layer(k) for k in jax.random.split(keys[3], N_LAYERS)]
    params = {
        'src_lut': 0.1 * jax.random.normal(keys[0], (VOCAB, D_MODEL), jnp.float32),
        'tgt_lut': 0.1 * jax.random.normal(keys[1], (VOCAB, D_MODEL), jnp.float32),
        'pe': positional_encoding(64, D_MODEL),
        'enc': _stack_layers(enc_layers),
        'dec': _stack_layers(dec_layers),
    }
    params['enc_norm_g'], params['enc_norm_b'] = _ln_params()
    params['dec_norm_g'], params['dec_norm_b'] = _ln_params()
    return params


# ------------------------- main -------------------------

if __name__ == "__main__":
    B, SRC_LEN, TGT_LEN = 2, 8, 8
    root = jax.random.PRNGKey(0)
    kp, ks, kt = jax.random.split(root, 3)

    params = init_params(kp)
    src = jax.random.randint(ks, (B, SRC_LEN), 0, VOCAB, dtype=jnp.int32)
    tgt = jax.random.randint(kt, (B, TGT_LEN), 0, VOCAB, dtype=jnp.int32)
    src_mask = jnp.ones((B, 1, SRC_LEN), jnp.float32)                       # pad mask (all valid)
    tgt_mask = jnp.broadcast_to(
        jnp.tril(jnp.ones((TGT_LEN, TGT_LEN), jnp.float32))[None],
        (B, TGT_LEN, TGT_LEN))                                              # subsequent mask

    out = encoder_decoder_forward(params, src, tgt, src_mask, tgt_mask)
    out = jax.block_until_ready(out)
    assert out.shape == (B, TGT_LEN, D_MODEL) and out.dtype == jnp.float32
    assert bool(jnp.all(jnp.isfinite(out)))
    print("KERNEL_OK")
</pallas_src>

<mosaic_0001>
module attributes {stable_mosaic.version = 11 : i64} {
  func.func @_encoder_stack_kernel(%arg0: i32, %arg1: memref<16x32xf32, #tpu.memory_space<vmem>>, %arg2: memref<2x1x8xf32, #tpu.memory_space<vmem>>, %arg3: memref<1x32x96xf32, #tpu.memory_space<vmem>>, %arg4: memref<1x1x96xf32, #tpu.memory_space<vmem>>, %arg5: memref<1x32x32xf32, #tpu.memory_space<vmem>>, %arg6: memref<1x1x32xf32, #tpu.memory_space<vmem>>, %arg7: memref<1x1x32xf32, #tpu.memory_space<vmem>>, %arg8: memref<1x1x32xf32, #tpu.memory_space<vmem>>, %arg9: memref<1x32x64xf32, #tpu.memory_space<vmem>>, %arg10: memref<1x1x64xf32, #tpu.memory_space<vmem>>, %arg11: memref<1x64x32xf32, #tpu.memory_space<vmem>>, %arg12: memref<1x1x32xf32, #tpu.memory_space<vmem>>, %arg13: memref<1x1x32xf32, #tpu.memory_space<vmem>>, %arg14: memref<1x1x32xf32, #tpu.memory_space<vmem>>, %arg15: memref<1x32xf32, #tpu.memory_space<vmem>>, %arg16: memref<1x32xf32, #tpu.memory_space<vmem>>, %arg17: memref<16x32xf32, #tpu.memory_space<vmem>>, %arg18: memref<16x32xf32, #tpu.memory_space<vmem>>) attributes {dimension_semantics = [#tpu.dimension_semantics<arbitrary>], iteration_bounds = array<i64: 2>, scalar_prefetch = 0 : i64, scratch_operands = 1 : i64, tpu.core_type = #tpu.core_type<tc>, window_params = [{pipeline_mode = #tpu.pipeline_mode<synchronous>, transform_indices = @transform_0, window_bounds = array<i64: 16, 32>}, {pipeline_mode = #tpu.pipeline_mode<synchronous>, transform_indices = @transform_1, window_bounds = array<i64: 2, 1, 8>}, {transform_indices = @transform_2, window_bounds = array<i64: 1, 32, 96>}, {transform_indices = @transform_3, window_bounds = array<i64: 1, 1, 96>}, {transform_indices = @transform_4, window_bounds = array<i64: 1, 32, 32>}, {transform_indices = @transform_5, window_bounds = array<i64: 1, 1, 32>}, {transform_indices = @transform_6, window_bounds = array<i64: 1, 1, 32>}, {transform_indices = @transform_7, window_bounds = array<i64: 1, 1, 32>}, {transform_indices = @transform_8, window_bounds = array<i64: 1, 32, 64>}, {transform_indices = @transform_9, window_bounds = array<i64: 1, 1, 64>}, {transform_indices = @transform_10, window_bounds = array<i64: 1, 64, 32>}, {transform_indices = @transform_11, window_bounds = array<i64: 1, 1, 32>}, {transform_indices = @transform_12, window_bounds = array<i64: 1, 1, 32>}, {transform_indices = @transform_13, window_bounds = array<i64: 1, 1, 32>}, {pipeline_mode = #tpu.pipeline_mode<synchronous>, transform_indices = @transform_14, window_bounds = array<i64: 1, 32>}, {pipeline_mode = #tpu.pipeline_mode<synchronous>, transform_indices = @transform_15, window_bounds = array<i64: 1, 32>}, {pipeline_mode = #tpu.pipeline_mode<synchronous>, transform_indices = @transform_16, window_bounds = array<i64: 16, 32>}]} {
    %c0_i32 = arith.constant 0 : i32
    %0 = arith.cmpi eq, %arg0, %c0_i32 : i32
    %1 = arith.extui %0 : i1 to i32
    %c0_i32_0 = arith.constant 0 : i32
    %2 = arith.cmpi ne, %1, %c0_i32_0 : i32
    scf.if %2 {
      %c0_74 = arith.constant 0 : index
      %c0_75 = arith.constant 0 : index
      %175 = vector.load %arg1[%c0_74, %c0_75] : memref<16x32xf32, #tpu.memory_space<vmem>>, vector<16x32xf32>
      %c0_76 = arith.constant 0 : index
      %c0_77 = arith.constant 0 : index
      %176 = vector.load %arg18[%c0_76, %c0_77] : memref<16x32xf32, #tpu.memory_space<vmem>>, vector<16x32xf32>
      tpu.vector_store %arg18[%c0_76, %c0_77], %175 {strides = array<i32>} : memref<16x32xf32, #tpu.memory_space<vmem>>, vector<16x32xf32>,
    } else {
    }
    %c0 = arith.constant 0 : index
    %c0_1 = arith.constant 0 : index
    %3 = vector.load %arg18[%c0, %c0_1] : memref<16x32xf32, #tpu.memory_space<vmem>>, vector<16x32xf32>
    %c0_2 = arith.constant 0 : index
    %c0_3 = arith.constant 0 : index
    %c0_4 = arith.constant 0 : index
    %4 = vector.load %arg7[%c0_2, %c0_3, %c0_4] : memref<1x1x32xf32, #tpu.memory_space<vmem>>, vector<1x1x32xf32>
    %5 = vector.shape_cast %4 : vector<1x1x32xf32> to vector<1x32xf32>
    %c0_5 = arith.constant 0 : index
    %c0_6 = arith.constant 0 : index
    %c0_7 = arith.constant 0 : index
    %6 = vector.load %arg8[%c0_5, %c0_6, %c0_7] : memref<1x1x32xf32, #tpu.memory_space<vmem>>, vector<1x1x32xf32>
    %7 = vector.shape_cast %6 : vector<1x1x32xf32> to vector<1x32xf32>
    %cst = arith.constant dense<0.000000e+00> : vector<16xf32>
    %8 = vector.multi_reduction <add>, %3, %cst [1] : vector<16x32xf32> to vector<16xf32>
    %9 = vector.shape_cast %8 : vector<16xf32> to vector<16x1xf32>
    %cst_8 = arith.constant 3.200000e+01 : f32
    %10 = vector.broadcast %cst_8 : f32 to vector<16x1xf32>
    %11 = arith.divf %9, %10 : vector<16x1xf32>
    %12 = vector.broadcast %11 : vector<16x1xf32> to vector<16x32xf32>
    %13 = arith.subf %3, %12 : vector<16x32xf32>
    %14 = arith.mulf %13, %13 : vector<16x32xf32>
    %cst_9 = arith.constant dense<0.000000e+00> : vector<16xf32>
    %15 = vector.multi_reduction <add>, %14, %cst_9 [1] : vector<16x32xf32> to vector<16xf32>
    %16 = vector.shape_cast %15 : vector<16xf32> to vector<16x1xf32>
    %cst_10 = arith.constant 0.0322580636 : f32
    %17 = vector.broadcast %cst_10 : f32 to vector<16x1xf32>
    %18 = arith.mulf %16, %17 : vector<16x1xf32>
    %19 = vector.broadcast %5 : vector<1x32xf32> to vector<16x32xf32>
    %20 = arith.mulf %19, %13 : vector<16x32xf32>
    %21 = math.sqrt %18 : vector<16x1xf32>
    %cst_11 = arith.constant 9.99999997E-7 : f32
    %22 = vector.broadcast %cst_11 : f32 to vector<16x1xf32>
    %23 = arith.addf %21, %22 : vector<16x1xf32>
    %24 = vector.broadcast %23 : vector<16x1xf32> to vector<16x32xf32>
    %25 = arith.divf %20, %24 : vector<16x32xf32>
    %26 = vector.broadcast %7 : vector<1x32xf32> to vector<16x32xf32>
    %27 = arith.addf %25, %26 : vector<16x32xf32>
    %c0_12 = arith.constant 0 : index
    %c0_13 = arith.constant 0 : index
    %c0_14 = arith.constant 0 : index
    %28 = vector.load %arg3[%c0_12, %c0_13, %c0_14] : memref<1x32x96xf32, #tpu.memory_space<vmem>>, vector<1x32x96xf32>
    %29 = vector.shape_cast %28 : vector<1x32x96xf32> to vector<32x96xf32>
    %cst_15 = arith.constant dense<0.000000e+00> : vector<16x96xf32>
    %30 = tpu.matmul %27, %29, %cst_15 {dimension_numbers = #tpu.dot_dimension_numbers<[1], [0], [0], [1], [0, 0, 1, 1], [], []>} : vector<16x32xf32>, vector<32x96xf32>, vector<16x96xf32> -> vector<16x96xf32>
    %c0_16 = arith.constant 0 : index
    %c0_17 = arith.constant 0 : index
    %c0_18 = arith.constant 0 : index
    %31 = vector.load %arg4[%c0_16, %c0_17, %c0_18] : memref<1x1x96xf32, #tpu.memory_space<vmem>>, vector<1x1x96xf32>
    %32 = vector.shape_cast %31 : vector<1x1x96xf32> to vector<1x96xf32>
    %33 = vector.broadcast %32 : vector<1x96xf32> to vector<16x96xf32>
    %34 = arith.addf %30, %33 : vector<16x96xf32>
    %35 = vector.extract_strided_slice %34 {offsets = [0, 0], sizes = [16, 32], strides = [1, 1]} : vector<16x96xf32> to vector<16x32xf32>
    %36 = vector.extract_strided_slice %34 {offsets = [0, 32], sizes = [16, 32], strides = [1, 1]} : vector<16x96xf32> to vector<16x32xf32>
    %37 = vector.extract_strided_slice %34 {offsets = [0, 64], sizes = [16, 32], strides = [1, 1]} : vector<16x96xf32> to vector<16x32xf32>
    %c0_19 = arith.constant 0 : index
    %c0_20 = arith.constant 0 : index
    %c0_21 = arith.constant 0 : index
    %38 = vector.load %arg2[%c0_19, %c0_20, %c0_21] : memref<2x1x8xf32, #tpu.memory_space<vmem>>, vector<2x1x8xf32>
    %39 = vector.shape_cast %38 : vector<2x1x8xf32> to vector<2x1x8xf32>
    %40 = vector.broadcast %39 : vector<2x1x8xf32> to vector<2x8x8xf32>
    %41 = vector.extract_strided_slice %35 {offsets = [0, 0], sizes = [16, 8], strides = [1, 1]} : vector<16x32xf32> to vector<16x8xf32>
    %42 = vector.shape_cast %41 : vector<16x8xf32> to vector<2x8x8xf32>
    %43 = vector.extract_strided_slice %36 {offsets = [0, 0], sizes = [16, 8], strides = [1, 1]} : vector<16x32xf32> to vector<16x8xf32>
    %44 = vector.shape_cast %43 : vector<16x8xf32> to vector<2x8x8xf32>
    %45 = vector.extract_strided_slice %37 {offsets = [0, 0], sizes = [16, 8], strides = [1, 1]} : vector<16x32xf32> to vector<16x8xf32>
    %46 = vector.shape_cast %45 : vector<16x8xf32> to vector<2x8x8xf32>
    "tpu.trace_start"() <{level = 10 : i32, message = "bqd,bkd->bqk"}> : () -> ()
    %cst_22 = arith.constant dense<0.000000e+00> : vector<2x8x8xf32>
    %47 = tpu.matmul %42, %44, %cst_22 {dimension_numbers = #tpu.dot_dimension_numbers<[2], [2], [1], [1], [0, 0, 0, 1, 1, 1], [0], [0]>} : vector<2x8x8xf32>, vector<2x8x8xf32>, vector<2x8x8xf32> -> vector<2x8x8xf32>
    "tpu.trace_stop"() : () -> ()
    %48 = arith.addf %47, %40 : vector<2x8x8xf32>
    %cst_23 = arith.constant dense<0xFF800000> : vector<2x8xf32>
    %49 = vector.multi_reduction <maximumf>, %48, %cst_23 [2] : vector<2x8x8xf32> to vector<2x8xf32>
    %50 = vector.shape_cast %49 : vector<2x8xf32> to vector<2x8x1xf32>
    %51 = vector.broadcast %50 : vector<2x8x1xf32> to vector<2x8x8xf32>
    %52 = arith.subf %48, %51 : vector<2x8x8xf32>
    %53 = math.exp %52 : vector<2x8x8xf32>
    %cst_24 = arith.constant dense<0.000000e+00> : vector<2x8xf32>
    %54 = vector.multi_reduction <add>, %53, %cst_24 [2] : vector<2x8x8xf32> to vector<2x8xf32>
    %55 = vector.shape_cast %54 : vector<2x8xf32> to vector<2x8x1xf32>
    %56 = tpu.reciprocal %55 {approx = true} : vector<2x8x1xf32> -> vector<2x8x1xf32>
    %57 = vector.broadcast %56 : vector<2x8x1xf32> to vector<2x8x8xf32>
    %58 = arith.mulf %53, %57 : vector<2x8x8xf32>
    "tpu.trace_start"() <{level = 10 : i32, message = "bqk,bkd->bqd"}> : () -> ()
    %cst_25 = arith.constant dense<0.000000e+00> : vector<2x8x8xf32>
    %59 = tpu.matmul %58, %46, %cst_25 {dimension_numbers = #tpu.dot_dimension_numbers<[2], [1], [1], [2], [0, 0, 0, 1, 1, 2], [0], [0]>} : vector<2x8x8xf32>, vector<2x8x8xf32>, vector<2x8x8xf32> -> vector<2x8x8xf32>
    "tpu.trace_stop"() : () -> ()
    %60 = vector.shape_cast %59 : vector<2x8x8xf32> to vector<16x8xf32>
    %61 = vector.extract_strided_slice %35 {offsets = [0, 8], sizes = [16, 8], strides = [1, 1]} : vector<16x32xf32> to vector<16x8xf32>
    %62 = vector.shape_cast %61 : vector<16x8xf32> to vector<2x8x8xf32>
    %63 = vector.extract_strided_slice %36 {offsets = [0, 8], sizes = [16, 8], strides = [1, 1]} : vector<16x32xf32> to vector<16x8xf32>
    %64 = vector.shape_cast %63 : vector<16x8xf32> to vector<2x8x8xf32>
    %65 = vector.extract_strided_slice %37 {offsets = [0, 8], sizes = [16, 8], strides = [1, 1]} : vector<16x32xf32> to vector<16x8xf32>
    %66 = vector.shape_cast %65 : vector<16x8xf32> to vector<2x8x8xf32>
    "tpu.trace_start"() <{level = 10 : i32, message = "bqd,bkd->bqk"}> : () -> ()
    %cst_26 = arith.constant dense<0.000000e+00> : vector<2x8x8xf32>
    %67 = tpu.matmul %62, %64, %cst_26 {dimension_numbers = #tpu.dot_dimension_numbers<[2], [2], [1], [1], [0, 0, 0, 1, 1, 1], [0], [0]>} : vector<2x8x8xf32>, vector<2x8x8xf32>, vector<2x8x8xf32> -> vector<2x8x8xf32>
    "tpu.trace_stop"() : () -> ()
    %68 = arith.addf %67, %40 : vector<2x8x8xf32>
    %cst_27 = arith.constant dense<0xFF800000> : vector<2x8xf32>
    %69 = vector.multi_reduction <maximumf>, %68, %cst_27 [2] : vector<2x8x8xf32> to vector<2x8xf32>
    %70 = vector.shape_cast %69 : vector<2x8xf32> to vector<2x8x1xf32>
    %71 = vector.broadcast %70 : vector<2x8x1xf32> to vector<2x8x8xf32>
    %72 = arith.subf %68, %71 : vector<2x8x8xf32>
    %73 = math.exp %72 : vector<2x8x8xf32>
    %cst_28 = arith.constant dense<0.000000e+00> : vector<2x8xf32>
    %74 = vector.multi_reduction <add>, %73, %cst_28 [2] : vector<2x8x8xf32> to vector<2x8xf32>
    %75 = vector.shape_cast %74 : vector<2x8xf32> to vector<2x8x1xf32>
    %76 = tpu.reciprocal %75 {approx = true} : vector<2x8x1xf32> -> vector<2x8x1xf32>
    %77 = vector.broadcast %76 : vector<2x8x1xf32> to vector<2x8x8xf32>
    %78 = arith.mulf %73, %77 : vector<2x8x8xf32>
    "tpu.trace_start"() <{level = 10 : i32, message = "bqk,bkd->bqd"}> : () -> ()
    %cst_29 = arith.constant dense<0.000000e+00> : vector<2x8x8xf32>
    %79 = tpu.matmul %78, %66, %cst_29 {dimension_numbers = #tpu.dot_dimension_numbers<[2], [1], [1], [2], [0, 0, 0, 1, 1, 2], [0], [0]>} : vector<2x8x8xf32>, vector<2x8x8xf32>, vector<2x8x8xf32> -> vector<2x8x8xf32>
    "tpu.trace_stop"() : () -> ()
    %80 = vector.shape_cast %79 : vector<2x8x8xf32> to vector<16x8xf32>
    %81 = vector.extract_strided_slice %35 {offsets = [0, 16], sizes = [16, 8], strides = [1, 1]} : vector<16x32xf32> to vector<16x8xf32>
    %82 = vector.shape_cast %81 : vector<16x8xf32> to vector<2x8x8xf32>
    %83 = vector.extract_strided_slice %36 {offsets = [0, 16], sizes = [16, 8], strides = [1, 1]} : vector<16x32xf32> to vector<16x8xf32>
    %84 = vector.shape_cast %83 : vector<16x8xf32> to vector<2x8x8xf32>
    %85 = vector.extract_strided_slice %37 {offsets = [0, 16], sizes = [16, 8], strides = [1, 1]} : vector<16x32xf32> to vector<16x8xf32>
    %86 = vector.shape_cast %85 : vector<16x8xf32> to vector<2x8x8xf32>
    "tpu.trace_start"() <{level = 10 : i32, message = "bqd,bkd->bqk"}> : () -> ()
    %cst_30 = arith.constant dense<0.000000e+00> : vector<2x8x8xf32>
    %87 = tpu.matmul %82, %84, %cst_30 {dimension_numbers = #tpu.dot_dimension_numbers<[2], [2], [1], [1], [0, 0, 0, 1, 1, 1], [0], [0]>} : vector<2x8x8xf32>, vector<2x8x8xf32>, vector<2x8x8xf32> -> vector<2x8x8xf32>
    "tpu.trace_stop"() : () -> ()
    %88 = arith.addf %87, %40 : vector<2x8x8xf32>
    %cst_31 = arith.constant dense<0xFF800000> : vector<2x8xf32>
    %89 = vector.multi_reduction <maximumf>, %88, %cst_31 [2] : vector<2x8x8xf32> to vector<2x8xf32>
    %90 = vector.shape_cast %89 : vector<2x8xf32> to vector<2x8x1xf32>
    %91 = vector.broadcast %90 : vector<2x8x1xf32> to vector<2x8x8xf32>
    %92 = arith.subf %88, %91 : vector<2x8x8xf32>
    %93 = math.exp %92 : vector<2x8x8xf32>
    %cst_32 = arith.constant dense<0.000000e+00> : vector<2x8xf32>
    %94 = vector.multi_reduction <add>, %93, %cst_32 [2] : vector<2x8x8xf32> to vector<2x8xf32>
    %95 = vector.shape_cast %94 : vector<2x8xf32> to vector<2x8x1xf32>
    %96 = tpu.reciprocal %95 {approx = true} : vector<2x8x1xf32> -> vector<2x8x1xf32>
    %97 = vector.broadcast %96 : vector<2x8x1xf32> to vector<2x8x8xf32>
    %98 = arith.mulf %93, %97 : vector<2x8x8xf32>
    "tpu.trace_start"() <{level = 10 : i32, message = "bqk,bkd->bqd"}> : () -> ()
    %cst_33 = arith.constant dense<0.000000e+00> : vector<2x8x8xf32>
    %99 = tpu.matmul %98, %86, %cst_33 {dimension_numbers = #tpu.dot_dimension_numbers<[2], [1], [1], [2], [0, 0, 0, 1, 1, 2], [0], [0]>} : vector<2x8x8xf32>, vector<2x8x8xf32>, vector<2x8x8xf32> -> vector<2x8x8xf32>
    "tpu.trace_stop"() : () -> ()
    %100 = vector.shape_cast %99 : vector<2x8x8xf32> to vector<16x8xf32>
    %101 = vector.extract_strided_slice %35 {offsets = [0, 24], sizes = [16, 8], strides = [1, 1]} : vector<16x32xf32> to vector<16x8xf32>
    %102 = vector.shape_cast %101 : vector<16x8xf32> to vector<2x8x8xf32>
    %103 = vector.extract_strided_slice %36 {offsets = [0, 24], sizes = [16, 8], strides = [1, 1]} : vector<16x32xf32> to vector<16x8xf32>
    %104 = vector.shape_cast %103 : vector<16x8xf32> to vector<2x8x8xf32>
    %105 = vector.extract_strided_slice %37 {offsets = [0, 24], sizes = [16, 8], strides = [1, 1]} : vector<16x32xf32> to vector<16x8xf32>
    %106 = vector.shape_cast %105 : vector<16x8xf32> to vector<2x8x8xf32>
    "tpu.trace_start"() <{level = 10 : i32, message = "bqd,bkd->bqk"}> : () -> ()
    %cst_34 = arith.constant dense<0.000000e+00> : vector<2x8x8xf32>
    %107 = tpu.matmul %102, %104, %cst_34 {dimension_numbers = #tpu.dot_dimension_numbers<[2], [2], [1], [1], [0, 0, 0, 1, 1, 1], [0], [0]>} : vector<2x8x8xf32>, vector<2x8x8xf32>, vector<2x8x8xf32> -> vector<2x8x8xf32>
    "tpu.trace_stop"() : () -> ()
    %108 = arith.addf %107, %40 : vector<2x8x8xf32>
    %cst_35 = arith.constant dense<0xFF800000> : vector<2x8xf32>
    %109 = vector.multi_reduction <maximumf>, %108, %cst_35 [2] : vector<2x8x8xf32> to vector<2x8xf32>
    %110 = vector.shape_cast %109 : vector<2x8xf32> to vector<2x8x1xf32>
    %111 = vector.broadcast %110 : vector<2x8x1xf32> to vector<2x8x8xf32>
    %112 = arith.subf %108, %111 : vector<2x8x8xf32>
    %113 = math.exp %112 : vector<2x8x8xf32>
    %cst_36 = arith.constant dense<0.000000e+00> : vector<2x8xf32>
    %114 = vector.multi_reduction <add>, %113, %cst_36 [2] : vector<2x8x8xf32> to vector<2x8xf32>
    %115 = vector.shape_cast %114 : vector<2x8xf32> to vector<2x8x1xf32>
    %116 = tpu.reciprocal %115 {approx = true} : vector<2x8x1xf32> -> vector<2x8x1xf32>
    %117 = vector.broadcast %116 : vector<2x8x1xf32> to vector<2x8x8xf32>
    %118 = arith.mulf %113, %117 : vector<2x8x8xf32>
    "tpu.trace_start"() <{level = 10 : i32, message = "bqk,bkd->bqd"}> : () -> ()
    %cst_37 = arith.constant dense<0.000000e+00> : vector<2x8x8xf32>
    %119 = tpu.matmul %118, %106, %cst_37 {dimension_numbers = #tpu.dot_dimension_numbers<[2], [1], [1], [2], [0, 0, 0, 1, 1, 2], [0], [0]>} : vector<2x8x8xf32>, vector<2x8x8xf32>, vector<2x8x8xf32> -> vector<2x8x8xf32>
    "tpu.trace_stop"() : () -> ()
    %120 = vector.shape_cast %119 : vector<2x8x8xf32> to vector<16x8xf32>
    %121 = tpu.concatenate %60, %80, %100, %120 in 1 : vector<16x8xf32>, vector<16x8xf32>, vector<16x8xf32>, vector<16x8xf32> -> vector<16x32xf32>
    %c0_38 = arith.constant 0 : index
    %c0_39 = arith.constant 0 : index
    %c0_40 = arith.constant 0 : index
    %122 = vector.load %arg5[%c0_38, %c0_39, %c0_40] : memref<1x32x32xf32, #tpu.memory_space<vmem>>, vector<1x32x32xf32>
    %123 = vector.shape_cast %122 : vector<1x32x32xf32> to vector<32x32xf32>
    %cst_41 = arith.constant dense<0.000000e+00> : vector<16x32xf32>
    %124 = tpu.matmul %121, %123, %cst_41 {dimension_numbers = #tpu.dot_dimension_numbers<[1], [0], [0], [1], [0, 0, 1, 1], [], []>} : vector<16x32xf32>, vector<32x32xf32>, vector<16x32xf32> -> vector<16x32xf32>
    %125 = arith.addf %3, %124 : vector<16x32xf32>
    %c0_42 = arith.constant 0 : index
    %c0_43 = arith.constant 0 : index
    %c0_44 = arith.constant 0 : index
    %126 = vector.load %arg6[%c0_42, %c0_43, %c0_44] : memref<1x1x32xf32, #tpu.memory_space<vmem>>, vector<1x1x32xf32>
    %127 = vector.shape_cast %126 : vector<1x1x32xf32> to vector<1x32xf32>
    %128 = vector.broadcast %127 : vector<1x32xf32> to vector<16x32xf32>
    %129 = arith.addf %125, %128 : vector<16x32xf32>
    %c0_45 = arith.constant 0 : index
    %c0_46 = arith.constant 0 : index
    %c0_47 = arith.constant 0 : index
    %130 = vector.load %arg13[%c0_45, %c0_46, %c0_47] : memref<1x1x32xf32, #tpu.memory_space<vmem>>, vector<1x1x32xf32>
    %131 = vector.shape_cast %130 : vector<1x1x32xf32> to vector<1x32xf32>
    %c0_48 = arith.constant 0 : index
    %c0_49 = arith.constant 0 : index
    %c0_50 = arith.constant 0 : index
    %132 = vector.load %arg14[%c0_48, %c0_49, %c0_50] : memref<1x1x32xf32, #tpu.memory_space<vmem>>, vector<1x1x32xf32>
    %133 = vector.shape_cast %132 : vector<1x1x32xf32> to vector<1x32xf32>
    %cst_51 = arith.constant dense<0.000000e+00> : vector<16xf32>
    %134 = vector.multi_reduction <add>, %129, %cst_51 [1] : vector<16x32xf32> to vector<16xf32>
    %135 = vector.shape_cast %134 : vector<16xf32> to vector<16x1xf32>
    %cst_52 = arith.constant 3.200000e+01 : f32
    %136 = vector.broadcast %cst_52 : f32 to vector<16x1xf32>
    %137 = arith.divf %135, %136 : vector<16x1xf32>
    %138 = vector.broadcast %137 : vector<16x1xf32> to vector<16x32xf32>
    %139 = arith.subf %129, %138 : vector<16x32xf32>
    %140 = arith.mulf %139, %139 : vector<16x32xf32>
    %cst_53 = arith.constant dense<0.000000e+00> : vector<16xf32>
    %141 = vector.multi_reduction <add>, %140, %cst_53 [1] : vector<16x32xf32> to vector<16xf32>
    %142 = vector.shape_cast %141 : vector<16xf32> to vector<16x1xf32>
    %cst_54 = arith.constant 0.0322580636 : f32
    %143 = vector.broadcast %cst_54 : f32 to vector<16x1xf32>
    %144 = arith.mulf %142, %143 : vector<16x1xf32>
    %145 = vector.broadcast %131 : vector<1x32xf32> to vector<16x32xf32>
    %146 = arith.mulf %145, %139 : vector<16x32xf32>
    %147 = math.sqrt %144 : vector<16x1xf32>
    %cst_55 = arith.constant 9.99999997E-7 : f32
    %148 = vector.broadcast %cst_55 : f32 to vector<16x1xf32>
    %149 = arith.addf %147, %148 : vector<16x1xf32>
    %150 = vector.broadcast %149 : vector<16x1xf32> to vector<16x32xf32>
    %151 = arith.divf %146, %150 : vector<16x32xf32>
    %152 = vector.broadcast %133 : vector<1x32xf32> to vector<16x32xf32>
    %153 = arith.addf %151, %152 : vector<16x32xf32>
    %c0_56 = arith.constant 0 : index
    %c0_57 = arith.constant 0 : index
    %c0_58 = arith.constant 0 : index
    %154 = vector.load %arg9[%c0_56, %c0_57, %c0_58] : memref<1x32x64xf32, #tpu.memory_space<vmem>>, vector<1x32x64xf32>
    %155 = vector.shape_cast %154 : vector<1x32x64xf32> to vector<32x64xf32>
    %cst_59 = arith.constant dense<0.000000e+00> : vector<16x64xf32>
    %156 = tpu.matmul %153, %155, %cst_59 {dimension_numbers = #tpu.dot_dimension_numbers<[1], [0], [0], [1], [0, 0, 1, 1], [], []>} : vector<16x32xf32>, vector<32x64xf32>, vector<16x64xf32> -> vector<16x64xf32>
    %c0_60 = arith.constant 0 : index
    %c0_61 = arith.constant 0 : index
    %c0_62 = arith.constant 0 : index
    %157 = vector.load %arg10[%c0_60, %c0_61, %c0_62] : memref<1x1x64xf32, #tpu.memory_space<vmem>>, vector<1x1x64xf32>
    %158 = vector.shape_cast %157 : vector<1x1x64xf32> to vector<1x64xf32>
    %159 = vector.broadcast %158 : vector<1x64xf32> to vector<16x64xf32>
    %160 = arith.addf %156, %159 : vector<16x64xf32>
    %cst_63 = arith.constant 0.000000e+00 : f32
    %161 = vector.broadcast %cst_63 : f32 to vector<16x64xf32>
    %162 = arith.maximumf %160, %161 : vector<16x64xf32>
    %c0_64 = arith.constant 0 : index
    %c0_65 = arith.constant 0 : index
    %c0_66 = arith.constant 0 : index
    %163 = vector.load %arg11[%c0_64, %c0_65, %c0_66] : memref<1x64x32xf32, #tpu.memory_space<vmem>>, vector<1x64x32xf32>
    %164 = vector.shape_cast %163 : vector<1x64x32xf32> to vector<64x32xf32>
    %cst_67 = arith.constant dense<0.000000e+00> : vector<16x32xf32>
    %165 = tpu.matmul %162, %164, %cst_67 {dimension_numbers = #tpu.dot_dimension_numbers<[1], [0], [0], [1], [0, 0, 1, 1], [], []>} : vector<16x64xf32>, vector<64x32xf32>, vector<16x32xf32> -> vector<16x32xf32>
    %166 = arith.addf %129, %165 : vector<16x32xf32>
    %c0_68 = arith.constant 0 : index
    %c0_69 = arith.constant 0 : index
    %c0_70 = arith.constant 0 : index
    %167 = vector.load %arg12[%c0_68, %c0_69, %c0_70] : memref<1x1x32xf32, #tpu.memory_space<vmem>>, vector<1x1x32xf32>
    %168 = vector.shape_cast %167 : vector<1x1x32xf32> to vector<1x32xf32>
    %169 = vector.broadcast %168 : vector<1x32xf32> to vector<16x32xf32>
    %170 = arith.addf %166, %169 : vector<16x32xf32>
    %c0_71 = arith.constant 0 : index
    %c0_72 = arith.constant 0 : index
    %171 = vector.load %arg18[%c0_71, %c0_72] : memref<16x32xf32, #tpu.memory_space<vmem>>, vector<16x32xf32>
    tpu.vector_store %arg18[%c0_71, %c0_72], %170 {strides = array<i32>} : memref<16x32xf32, #tpu.memory_space<vmem>>, vector<16x32xf32>,
    %c1_i32 = arith.constant 1 : i32
    %172 = arith.cmpi eq, %arg0, %c1_i32 : i32
    %173 = arith.extui %172 : i1 to i32
    %c0_i32_73 = arith.constant 0 : i32
    %174 = arith.cmpi ne, %173, %c0_i32_73 : i32
    scf.if %174 {
      %c0_74 = arith.constant 0 : index
      %c0_75 = arith.constant 0 : index
      %175 = vector.load %arg15[%c0_74, %c0_75] : memref<1x32xf32, #tpu.memory_space<vmem>>, vector<1x32xf32>
      %c0_76 = arith.constant 0 : index
      %c0_77 = arith.constant 0 : index
      %176 = vector.load %arg16[%c0_76, %c0_77] : memref<1x32xf32, #tpu.memory_space<vmem>>, vector<1x32xf32>
      %cst_78 = arith.constant dense<0.000000e+00> : vector<16xf32>
      %177 = vector.multi_reduction <add>, %170, %cst_78 [1] : vector<16x32xf32> to vector<16xf32>
      %178 = vector.shape_cast %177 : vector<16xf32> to vector<16x1xf32>
      %cst_79 = arith.constant 3.200000e+01 : f32
      %179 = vector.broadcast %cst_79 : f32 to vector<16x1xf32>
      %180 = arith.divf %178, %179 : vector<16x1xf32>
      %181 = vector.broadcast %180 : vector<16x1xf32> to vector<16x32xf32>
      %182 = arith.subf %170, %181 : vector<16x32xf32>
      %183 = arith.mulf %182, %182 : vector<16x32xf32>
      %cst_80 = arith.constant dense<0.000000e+00> : vector<16xf32>
      %184 = vector.multi_reduction <add>, %183, %cst_80 [1] : vector<16x32xf32> to vector<16xf32>
      %185 = vector.shape_cast %184 : vector<16xf32> to vector<16x1xf32>
      %cst_81 = arith.constant 0.0322580636 : f32
      %186 = vector.broadcast %cst_81 : f32 to vector<16x1xf32>
      %187 = arith.mulf %185, %186 : vector<16x1xf32>
      %188 = vector.broadcast %175 : vector<1x32xf32> to vector<16x32xf32>
      %189 = arith.mulf %188, %182 : vector<16x32xf32>
      %190 = math.sqrt %187 : vector<16x1xf32>
      %cst_82 = arith.constant 9.99999997E-7 : f32
      %191 = vector.broadcast %cst_82 : f32 to vector<16x1xf32>
      %192 = arith.addf %190, %191 : vector<16x1xf32>
      %193 = vector.broadcast %192 : vector<16x1xf32> to vector<16x32xf32>
      %194 = arith.divf %189, %193 : vector<16x32xf32>
      %195 = vector.broadcast %176 : vector<1x32xf32> to vector<16x32xf32>
      %196 = arith.addf %194, %195 : vector<16x32xf32>
      %c0_83 = arith.constant 0 : index
      %c0_84 = arith.constant 0 : index
      %197 = vector.load %arg17[%c0_83, %c0_84] : memref<16x32xf32, #tpu.memory_space<vmem>>, vector<16x32xf32>
      tpu.vector_store %arg17[%c0_83, %c0_84], %196 {strides = array<i32>} : memref<16x32xf32, #tpu.memory_space<vmem>>, vector<16x32xf32>,
    } else {
    }
    return
  }
  func.func @transform_0(%arg0: i32) -> (i32, i32) {
    %c0_i32 = arith.constant 0 : i32
    %c0_i32_0 = arith.constant 0 : i32
    %c0_i32_1 = arith.constant 0 : i32
    return %c0_i32, %c0_i32_0 : i32, i32
  }
  func.func @transform_1(%arg0: i32) -> (i32, i32, i32) {
    %c0_i32 = arith.constant 0 : i32
    %c0_i32_0 = arith.constant 0 : i32
    %c0_i32_1 = arith.constant 0 : i32
    %c0_i32_2 = arith.constant 0 : i32
    return %c0_i32, %c0_i32_0, %c0_i32_1 : i32, i32, i32
  }
  func.func @transform_2(%arg0: i32) -> (i32, i32, i32) {
    %c0_i32 = arith.constant 0 : i32
    %c0_i32_0 = arith.constant 0 : i32
    %c0_i32_1 = arith.constant 0 : i32
    return %arg0, %c0_i32, %c0_i32_0 : i32, i32, i32
  }
  func.func @transform_3(%arg0: i32) -> (i32, i32, i32) {
    %c0_i32 = arith.constant 0 : i32
    %c0_i32_0 = arith.constant 0 : i32
    %c0_i32_1 = arith.constant 0 : i32
    return %arg0, %c0_i32, %c0_i32_0 : i32, i32, i32
  }
  func.func @transform_4(%arg0: i32) -> (i32, i32, i32) {
    %c0_i32 = arith.constant 0 : i32
    %c0_i32_0 = arith.constant 0 : i32
    %c0_i32_1 = arith.constant 0 : i32
    return %arg0, %c0_i32, %c0_i32_0 : i32, i32, i32
  }
  func.func @transform_5(%arg0: i32) -> (i32, i32, i32) {
    %c0_i32 = arith.constant 0 : i32
    %c0_i32_0 = arith.constant 0 : i32
    %c0_i32_1 = arith.constant 0 : i32
    return %arg0, %c0_i32, %c0_i32_0 : i32, i32, i32
  }
  func.func @transform_6(%arg0: i32) -> (i32, i32, i32) {
    %c0_i32 = arith.constant 0 : i32
    %c0_i32_0 = arith.constant 0 : i32
    %c0_i32_1 = arith.constant 0 : i32
    return %arg0, %c0_i32, %c0_i32_0 : i32, i32, i32
  }
  func.func @transform_7(%arg0: i32) -> (i32, i32, i32) {
    %c0_i32 = arith.constant 0 : i32
    %c0_i32_0 = arith.constant 0 : i32
    %c0_i32_1 = arith.constant 0 : i32
    return %arg0, %c0_i32, %c0_i32_0 : i32, i32, i32
  }
  func.func @transform_8(%arg0: i32) -> (i32, i32, i32) {
    %c0_i32 = arith.constant 0 : i32
    %c0_i32_0 = arith.constant 0 : i32
    %c0_i32_1 = arith.constant 0 : i32
    return %arg0, %c0_i32, %c0_i32_0 : i32, i32, i32
  }
  func.func @transform_9(%arg0: i32) -> (i32, i32, i32) {
    %c0_i32 = arith.constant 0 : i32
    %c0_i32_0 = arith.constant 0 : i32
    %c0_i32_1 = arith.constant 0 : i32
    return %arg0, %c0_i32, %c0_i32_0 : i32, i32, i32
  }
  func.func @transform_10(%arg0: i32) -> (i32, i32, i32) {
    %c0_i32 = arith.constant 0 : i32
    %c0_i32_0 = arith.constant 0 : i32
    %c0_i32_1 = arith.constant 0 : i32
    return %arg0, %c0_i32, %c0_i32_0 : i32, i32, i32
  }
  func.func @transform_11(%arg0: i32) -> (i32, i32, i32) {
    %c0_i32 = arith.constant 0 : i32
    %c0_i32_0 = arith.constant 0 : i32
    %c0_i32_1 = arith.constant 0 : i32
    return %arg0, %c0_i32, %c0_i32_0 : i32, i32, i32
  }
  func.func @transform_12(%arg0: i32) -> (i32, i32, i32) {
    %c0_i32 = arith.constant 0 : i32
    %c0_i32_0 = arith.constant 0 : i32
    %c0_i32_1 = arith.constant 0 : i32
    return %arg0, %c0_i32, %c0_i32_0 : i32, i32, i32
  }
  func.func @transform_13(%arg0: i32) -> (i32, i32, i32) {
    %c0_i32 = arith.constant 0 : i32
    %c0_i32_0 = arith.constant 0 : i32
    %c0_i32_1 = arith.constant 0 : i32
    return %arg0, %c0_i32, %c0_i32_0 : i32, i32, i32
  }
  func.func @transform_14(%arg0: i32) -> (i32, i32) {
    %c0_i32 = arith.constant 0 : i32
    %c0_i32_0 = arith.constant 0 : i32
    %c0_i32_1 = arith.constant 0 : i32
    return %c0_i32, %c0_i32_0 : i32, i32
  }
  func.func @transform_15(%arg0: i32) -> (i32, i32) {
    %c0_i32 = arith.constant 0 : i32
    %c0_i32_0 = arith.constant 0 : i32
    %c0_i32_1 = arith.constant 0 : i32
    return %c0_i32, %c0_i32_0 : i32, i32
  }
  func.func @transform_16(%arg0: i32) -> (i32, i32) {
    %c0_i32 = arith.constant 0 : i32
    %c0_i32_0 = arith.constant 0 : i32
    %c0_i32_1 = arith.constant 0 : i32
    return %c0_i32, %c0_i32_0 : i32, i32
  }
}

module attributes {stable_mosaic.version = 11 : i64} {
  func.func @_decoder_stack_kernel(%arg0: i32, %arg1: memref<16x32xf32, #tpu.memory_space<vmem>>, %arg2: memref<16x32xf32, #tpu.memory_space<vmem>>, %arg3: memref<2x8x8xf32, #tpu.memory_space<vmem>>, %arg4: memref<2x1x8xf32, #tpu.memory_space<vmem>>, %arg5: memref<1x32x96xf32, #tpu.memory_space<vmem>>, %arg6: memref<1x1x96xf32, #tpu.memory_space<vmem>>, %arg7: memref<1x32x32xf32, #tpu.memory_space<vmem>>, %arg8: memref<1x1x32xf32, #tpu.memory_space<vmem>>, %arg9: memref<1x1x32xf32, #tpu.memory_space<vmem>>, %arg10: memref<1x1x32xf32, #tpu.memory_space<vmem>>, %arg11: memref<1x32x96xf32, #tpu.memory_space<vmem>>, %arg12: memref<1x1x96xf32, #tpu.memory_space<vmem>>, %arg13: memref<1x32x32xf32, #tpu.memory_space<vmem>>, %arg14: memref<1x1x32xf32, #tpu.memory_space<vmem>>, %arg15: memref<1x1x32xf32, #tpu.memory_space<vmem>>, %arg16: memref<1x1x32xf32, #tpu.memory_space<vmem>>, %arg17: memref<1x32x64xf32, #tpu.memory_space<vmem>>, %arg18: memref<1x1x64xf32, #tpu.memory_space<vmem>>, %arg19: memref<1x64x32xf32, #tpu.memory_space<vmem>>, %arg20: memref<1x1x32xf32, #tpu.memory_space<vmem>>, %arg21: memref<1x1x32xf32, #tpu.memory_space<vmem>>, %arg22: memref<1x1x32xf32, #tpu.memory_space<vmem>>, %arg23: memref<1x32xf32, #tpu.memory_space<vmem>>, %arg24: memref<1x32xf32, #tpu.memory_space<vmem>>, %arg25: memref<16x32xf32, #tpu.memory_space<vmem>>, %arg26: memref<16x32xf32, #tpu.memory_space<vmem>>) attributes {dimension_semantics = [#tpu.dimension_semantics<arbitrary>], iteration_bounds = array<i64: 2>, scalar_prefetch = 0 : i64, scratch_operands = 1 : i64, tpu.core_type = #tpu.core_type<tc>, window_params = [{pipeline_mode = #tpu.pipeline_mode<synchronous>, transform_indices = @transform_0, window_bounds = array<i64: 16, 32>}, {pipeline_mode = #tpu.pipeline_mode<synchronous>, transform_indices = @transform_1, window_bounds = array<i64: 16, 32>}, {pipeline_mode = #tpu.pipeline_mode<synchronous>, transform_indices = @transform_2, window_bounds = array<i64: 2, 8, 8>}, {pipeline_mode = #tpu.pipeline_mode<synchronous>, transform_indices = @transform_3, window_bounds = array<i64: 2, 1, 8>}, {transform_indices = @transform_4, window_bounds = array<i64: 1, 32, 96>}, {transform_indices = @transform_5, window_bounds = array<i64: 1, 1, 96>}, {transform_indices = @transform_6, window_bounds = array<i64: 1, 32, 32>}, {transform_indices = @transform_7, window_bounds = array<i64: 1, 1, 32>}, {transform_indices = @transform_8, window_bounds = array<i64: 1, 1, 32>}, {transform_indices = @transform_9, window_bounds = array<i64: 1, 1, 32>}, {transform_indices = @transform_10, window_bounds = array<i64: 1, 32, 96>}, {transform_indices = @transform_11, window_bounds = array<i64: 1, 1, 96>}, {transform_indices = @transform_12, window_bounds = array<i64: 1, 32, 32>}, {transform_indices = @transform_13, window_bounds = array<i64: 1, 1, 32>}, {transform_indices = @transform_14, window_bounds = array<i64: 1, 1, 32>}, {transform_indices = @transform_15, window_bounds = array<i64: 1, 1, 32>}, {transform_indices = @transform_16, window_bounds = array<i64: 1, 32, 64>}, {transform_indices = @transform_17, window_bounds = array<i64: 1, 1, 64>}, {transform_indices = @transform_18, window_bounds = array<i64: 1, 64, 32>}, {transform_indices = @transform_19, window_bounds = array<i64: 1, 1, 32>}, {transform_indices = @transform_20, window_bounds = array<i64: 1, 1, 32>}, {transform_indices = @transform_21, window_bounds = array<i64: 1, 1, 32>}, {pipeline_mode = #tpu.pipeline_mode<synchronous>, transform_indices = @transform_22, window_bounds = array<i64: 1, 32>}, {pipeline_mode = #tpu.pipeline_mode<synchronous>, transform_indices = @transform_23, window_bounds = array<i64: 1, 32>}, {pipeline_mode = #tpu.pipeline_mode<synchronous>, transform_indices = @transform_24, window_bounds = array<i64: 16, 32>}]} {
    %c0_i32 = arith.constant 0 : i32
    %0 = arith.cmpi eq, %arg0, %c0_i32 : i32
    %1 = arith.extui %0 : i1 to i32
    %c0_i32_0 = arith.constant 0 : i32
    %2 = arith.cmpi ne, %1, %c0_i32_0 : i32
    scf.if %2 {
      %c0_121 = arith.constant 0 : index
      %c0_122 = arith.constant 0 : index
      %306 = vector.load %arg1[%c0_121, %c0_122] : memref<16x32xf32, #tpu.memory_space<vmem>>, vector<16x32xf32>
      %c0_123 = arith.constant 0 : index
      %c0_124 = arith.constant 0 : index
      %307 = vector.load %arg26[%c0_123, %c0_124] : memref<16x32xf32, #tpu.memory_space<vmem>>, vector<16x32xf32>
      tpu.vector_store %arg26[%c0_123, %c0_124], %306 {strides = array<i32>} : memref<16x32xf32, #tpu.memory_space<vmem>>, vector<16x32xf32>,
    } else {
    }
    %c0 = arith.constant 0 : index
    %c0_1 = arith.constant 0 : index
    %3 = vector.load %arg26[%c0, %c0_1] : memref<16x32xf32, #tpu.memory_space<vmem>>, vector<16x32xf32>
    %c0_2 = arith.constant 0 : index
    %c0_3 = arith.constant 0 : index
    %4 = vector.load %arg2[%c0_2, %c0_3] : memref<16x32xf32, #tpu.memory_space<vmem>>, vector<16x32xf32>
    %c0_4 = arith.constant 0 : index
    %c0_5 = arith.constant 0 : index
    %c0_6 = arith.constant 0 : index
    %5 = vector.load %arg9[%c0_4, %c0_5, %c0_6] : memref<1x1x32xf32, #tpu.memory_space<vmem>>, vector<1x1x32xf32>
    %6 = vector.shape_cast %5 : vector<1x1x32xf32> to vector<1x32xf32>
    %c0_7 = arith.constant 0 : index
    %c0_8 = arith.constant 0 : index
    %c0_9 = arith.constant 0 : index
    %7 = vector.load %arg10[%c0_7, %c0_8, %c0_9] : memref<1x1x32xf32, #tpu.memory_space<vmem>>, vector<1x1x32xf32>
    %8 = vector.shape_cast %7 : vector<1x1x32xf32> to vector<1x32xf32>
    %cst = arith.constant dense<0.000000e+00> : vector<16xf32>
    %9 = vector.multi_reduction <add>, %3, %cst [1] : vector<16x32xf32> to vector<16xf32>
    %10 = vector.shape_cast %9 : vector<16xf32> to vector<16x1xf32>
    %cst_10 = arith.constant 3.200000e+01 : f32
    %11 = vector.broadcast %cst_10 : f32 to vector<16x1xf32>
    %12 = arith.divf %10, %11 : vector<16x1xf32>
    %13 = vector.broadcast %12 : vector<16x1xf32> to vector<16x32xf32>
    %14 = arith.subf %3, %13 : vector<16x32xf32>
    %15 = arith.mulf %14, %14 : vector<16x32xf32>
    %cst_11 = arith.constant dense<0.000000e+00> : vector<16xf32>
    %16 = vector.multi_reduction <add>, %15, %cst_11 [1] : vector<16x32xf32> to vector<16xf32>
    %17 = vector.shape_cast %16 : vector<16xf32> to vector<16x1xf32>
    %cst_12 = arith.constant 0.0322580636 : f32
    %18 = vector.broadcast %cst_12 : f32 to vector<16x1xf32>
    %19 = arith.mulf %17, %18 : vector<16x1xf32>
    %20 = vector.broadcast %6 : vector<1x32xf32> to vector<16x32xf32>
    %21 = arith.mulf %20, %14 : vector<16x32xf32>
    %22 = math.sqrt %19 : vector<16x1xf32>
    %cst_13 = arith.constant 9.99999997E-7 : f32
    %23 = vector.broadcast %cst_13 : f32 to vector<16x1xf32>
    %24 = arith.addf %22, %23 : vector<16x1xf32>
    %25 = vector.broadcast %24 : vector<16x1xf32> to vector<16x32xf32>
    %26 = arith.divf %21, %25 : vector<16x32xf32>
    %27 = vector.broadcast %8 : vector<1x32xf32> to vector<16x32xf32>
    %28 = arith.addf %26, %27 : vector<16x32xf32>
    %c0_14 = arith.constant 0 : index
    %c0_15 = arith.constant 0 : index
    %c0_16 = arith.constant 0 : index
    %29 = vector.load %arg5[%c0_14, %c0_15, %c0_16] : memref<1x32x96xf32, #tpu.memory_space<vmem>>, vector<1x32x96xf32>
    %30 = vector.shape_cast %29 : vector<1x32x96xf32> to vector<32x96xf32>
    %cst_17 = arith.constant dense<0.000000e+00> : vector<16x96xf32>
    %31 = tpu.matmul %28, %30, %cst_17 {dimension_numbers = #tpu.dot_dimension_numbers<[1], [0], [0], [1], [0, 0, 1, 1], [], []>} : vector<16x32xf32>, vector<32x96xf32>, vector<16x96xf32> -> vector<16x96xf32>
    %c0_18 = arith.constant 0 : index
    %c0_19 = arith.constant 0 : index
    %c0_20 = arith.constant 0 : index
    %32 = vector.load %arg6[%c0_18, %c0_19, %c0_20] : memref<1x1x96xf32, #tpu.memory_space<vmem>>, vector<1x1x96xf32>
    %33 = vector.shape_cast %32 : vector<1x1x96xf32> to vector<1x96xf32>
    %34 = vector.broadcast %33 : vector<1x96xf32> to vector<16x96xf32>
    %35 = arith.addf %31, %34 : vector<16x96xf32>
    %36 = vector.extract_strided_slice %35 {offsets = [0, 0], sizes = [16, 32], strides = [1, 1]} : vector<16x96xf32> to vector<16x32xf32>
    %37 = vector.extract_strided_slice %35 {offsets = [0, 32], sizes = [16, 32], strides = [1, 1]} : vector<16x96xf32> to vector<16x32xf32>
    %38 = vector.extract_strided_slice %35 {offsets = [0, 64], sizes = [16, 32], strides = [1, 1]} : vector<16x96xf32> to vector<16x32xf32>
    %c0_21 = arith.constant 0 : index
    %c0_22 = arith.constant 0 : index
    %c0_23 = arith.constant 0 : index
    %39 = vector.load %arg3[%c0_21, %c0_22, %c0_23] : memref<2x8x8xf32, #tpu.memory_space<vmem>>, vector<2x8x8xf32>
    %40 = vector.extract_strided_slice %36 {offsets = [0, 0], sizes = [16, 8], strides = [1, 1]} : vector<16x32xf32> to vector<16x8xf32>
    %41 = vector.shape_cast %40 : vector<16x8xf32> to vector<2x8x8xf32>
    %42 = vector.extract_strided_slice %37 {offsets = [0, 0], sizes = [16, 8], strides = [1, 1]} : vector<16x32xf32> to vector<16x8xf32>
    %43 = vector.shape_cast %42 : vector<16x8xf32> to vector<2x8x8xf32>
    %44 = vector.extract_strided_slice %38 {offsets = [0, 0], sizes = [16, 8], strides = [1, 1]} : vector<16x32xf32> to vector<16x8xf32>
    %45 = vector.shape_cast %44 : vector<16x8xf32> to vector<2x8x8xf32>
    "tpu.trace_start"() <{level = 10 : i32, message = "bqd,bkd->bqk"}> : () -> ()
    %cst_24 = arith.constant dense<0.000000e+00> : vector<2x8x8xf32>
    %46 = tpu.matmul %41, %43, %cst_24 {dimension_numbers = #tpu.dot_dimension_numbers<[2], [2], [1], [1], [0, 0, 0, 1, 1, 1], [0], [0]>} : vector<2x8x8xf32>, vector<2x8x8xf32>, vector<2x8x8xf32> -> vector<2x8x8xf32>
    "tpu.trace_stop"() : () -> ()
    %47 = arith.addf %46, %39 : vector<2x8x8xf32>
    %cst_25 = arith.constant dense<0xFF800000> : vector<2x8xf32>
    %48 = vector.multi_reduction <maximumf>, %47, %cst_25 [2] : vector<2x8x8xf32> to vector<2x8xf32>
    %49 = vector.shape_cast %48 : vector<2x8xf32> to vector<2x8x1xf32>
    %50 = vector.broadcast %49 : vector<2x8x1xf32> to vector<2x8x8xf32>
    %51 = arith.subf %47, %50 : vector<2x8x8xf32>
    %52 = math.exp %51 : vector<2x8x8xf32>
    %cst_26 = arith.constant dense<0.000000e+00> : vector<2x8xf32>
    %53 = vector.multi_reduction <add>, %52, %cst_26 [2] : vector<2x8x8xf32> to vector<2x8xf32>
    %54 = vector.shape_cast %53 : vector<2x8xf32> to vector<2x8x1xf32>
    %55 = tpu.reciprocal %54 {approx = true} : vector<2x8x1xf32> -> vector<2x8x1xf32>
    %56 = vector.broadcast %55 : vector<2x8x1xf32> to vector<2x8x8xf32>
    %57 = arith.mulf %52, %56 : vector<2x8x8xf32>
    "tpu.trace_start"() <{level = 10 : i32, message = "bqk,bkd->bqd"}> : () -> ()
    %cst_27 = arith.constant dense<0.000000e+00> : vector<2x8x8xf32>
    %58 = tpu.matmul %57, %45, %cst_27 {dimension_numbers = #tpu.dot_dimension_numbers<[2], [1], [1], [2], [0, 0, 0, 1, 1, 2], [0], [0]>} : vector<2x8x8xf32>, vector<2x8x8xf32>, vector<2x8x8xf32> -> vector<2x8x8xf32>
    "tpu.trace_stop"() : () -> ()
    %59 = vector.shape_cast %58 : vector<2x8x8xf32> to vector<16x8xf32>
    %60 = vector.extract_strided_slice %36 {offsets = [0, 8], sizes = [16, 8], strides = [1, 1]} : vector<16x32xf32> to vector<16x8xf32>
    %61 = vector.shape_cast %60 : vector<16x8xf32> to vector<2x8x8xf32>
    %62 = vector.extract_strided_slice %37 {offsets = [0, 8], sizes = [16, 8], strides = [1, 1]} : vector<16x32xf32> to vector<16x8xf32>
    %63 = vector.shape_cast %62 : vector<16x8xf32> to vector<2x8x8xf32>
    %64 = vector.extract_strided_slice %38 {offsets = [0, 8], sizes = [16, 8], strides = [1, 1]} : vector<16x32xf32> to vector<16x8xf32>
    %65 = vector.shape_cast %64 : vector<16x8xf32> to vector<2x8x8xf32>
    "tpu.trace_start"() <{level = 10 : i32, message = "bqd,bkd->bqk"}> : () -> ()
    %cst_28 = arith.constant dense<0.000000e+00> : vector<2x8x8xf32>
    %66 = tpu.matmul %61, %63, %cst_28 {dimension_numbers = #tpu.dot_dimension_numbers<[2], [2], [1], [1], [0, 0, 0, 1, 1, 1], [0], [0]>} : vector<2x8x8xf32>, vector<2x8x8xf32>, vector<2x8x8xf32> -> vector<2x8x8xf32>
    "tpu.trace_stop"() : () -> ()
    %67 = arith.addf %66, %39 : vector<2x8x8xf32>
    %cst_29 = arith.constant dense<0xFF800000> : vector<2x8xf32>
    %68 = vector.multi_reduction <maximumf>, %67, %cst_29 [2] : vector<2x8x8xf32> to vector<2x8xf32>
    %69 = vector.shape_cast %68 : vector<2x8xf32> to vector<2x8x1xf32>
    %70 = vector.broadcast %69 : vector<2x8x1xf32> to vector<2x8x8xf32>
    %71 = arith.subf %67, %70 : vector<2x8x8xf32>
    %72 = math.exp %71 : vector<2x8x8xf32>
    %cst_30 = arith.constant dense<0.000000e+00> : vector<2x8xf32>
    %73 = vector.multi_reduction <add>, %72, %cst_30 [2] : vector<2x8x8xf32> to vector<2x8xf32>
    %74 = vector.shape_cast %73 : vector<2x8xf32> to vector<2x8x1xf32>
    %75 = tpu.reciprocal %74 {approx = true} : vector<2x8x1xf32> -> vector<2x8x1xf32>
    %76 = vector.broadcast %75 : vector<2x8x1xf32> to vector<2x8x8xf32>
    %77 = arith.mulf %72, %76 : vector<2x8x8xf32>
    "tpu.trace_start"() <{level = 10 : i32, message = "bqk,bkd->bqd"}> : () -> ()
    %cst_31 = arith.constant dense<0.000000e+00> : vector<2x8x8xf32>
    %78 = tpu.matmul %77, %65, %cst_31 {dimension_numbers = #tpu.dot_dimension_numbers<[2], [1], [1], [2], [0, 0, 0, 1, 1, 2], [0], [0]>} : vector<2x8x8xf32>, vector<2x8x8xf32>, vector<2x8x8xf32> -> vector<2x8x8xf32>
    "tpu.trace_stop"() : () -> ()
    %79 = vector.shape_cast %78 : vector<2x8x8xf32> to vector<16x8xf32>
    %80 = vector.extract_strided_slice %36 {offsets = [0, 16], sizes = [16, 8], strides = [1, 1]} : vector<16x32xf32> to vector<16x8xf32>
    %81 = vector.shape_cast %80 : vector<16x8xf32> to vector<2x8x8xf32>
    %82 = vector.extract_strided_slice %37 {offsets = [0, 16], sizes = [16, 8], strides = [1, 1]} : vector<16x32xf32> to vector<16x8xf32>
    %83 = vector.shape_cast %82 : vector<16x8xf32> to vector<2x8x8xf32>
    %84 = vector.extract_strided_slice %38 {offsets = [0, 16], sizes = [16, 8], strides = [1, 1]} : vector<16x32xf32> to vector<16x8xf32>
    %85 = vector.shape_cast %84 : vector<16x8xf32> to vector<2x8x8xf32>
    "tpu.trace_start"() <{level = 10 : i32, message = "bqd,bkd->bqk"}> : () -> ()
    %cst_32 = arith.constant dense<0.000000e+00> : vector<2x8x8xf32>
    %86 = tpu.matmul %81, %83, %cst_32 {dimension_numbers = #tpu.dot_dimension_numbers<[2], [2], [1], [1], [0, 0, 0, 1, 1, 1], [0], [0]>} : vector<2x8x8xf32>, vector<2x8x8xf32>, vector<2x8x8xf32> -> vector<2x8x8xf32>
    "tpu.trace_stop"() : () -> ()
    %87 = arith.addf %86, %39 : vector<2x8x8xf32>
    %cst_33 = arith.constant dense<0xFF800000> : vector<2x8xf32>
    %88 = vector.multi_reduction <maximumf>, %87, %cst_33 [2] : vector<2x8x8xf32> to vector<2x8xf32>
    %89 = vector.shape_cast %88 : vector<2x8xf32> to vector<2x8x1xf32>
    %90 = vector.broadcast %89 : vector<2x8x1xf32> to vector<2x8x8xf32>
    %91 = arith.subf %87, %90 : vector<2x8x8xf32>
    %92 = math.exp %91 : vector<2x8x8xf32>
    %cst_34 = arith.constant dense<0.000000e+00> : vector<2x8xf32>
    %93 = vector.multi_reduction <add>, %92, %cst_34 [2] : vector<2x8x8xf32> to vector<2x8xf32>
    %94 = vector.shape_cast %93 : vector<2x8xf32> to vector<2x8x1xf32>
    %95 = tpu.reciprocal %94 {approx = true} : vector<2x8x1xf32> -> vector<2x8x1xf32>
    %96 = vector.broadcast %95 : vector<2x8x1xf32> to vector<2x8x8xf32>
    %97 = arith.mulf %92, %96 : vector<2x8x8xf32>
    "tpu.trace_start"() <{level = 10 : i32, message = "bqk,bkd->bqd"}> : () -> ()
    %cst_35 = arith.constant dense<0.000000e+00> : vector<2x8x8xf32>
    %98 = tpu.matmul %97, %85, %cst_35 {dimension_numbers = #tpu.dot_dimension_numbers<[2], [1], [1], [2], [0, 0, 0, 1, 1, 2], [0], [0]>} : vector<2x8x8xf32>, vector<2x8x8xf32>, vector<2x8x8xf32> -> vector<2x8x8xf32>
    "tpu.trace_stop"() : () -> ()
    %99 = vector.shape_cast %98 : vector<2x8x8xf32> to vector<16x8xf32>
    %100 = vector.extract_strided_slice %36 {offsets = [0, 24], sizes = [16, 8], strides = [1, 1]} : vector<16x32xf32> to vector<16x8xf32>
    %101 = vector.shape_cast %100 : vector<16x8xf32> to vector<2x8x8xf32>
    %102 = vector.extract_strided_slice %37 {offsets = [0, 24], sizes = [16, 8], strides = [1, 1]} : vector<16x32xf32> to vector<16x8xf32>
    %103 = vector.shape_cast %102 : vector<16x8xf32> to vector<2x8x8xf32>
    %104 = vector.extract_strided_slice %38 {offsets = [0, 24], sizes = [16, 8], strides = [1, 1]} : vector<16x32xf32> to vector<16x8xf32>
    %105 = vector.shape_cast %104 : vector<16x8xf32> to vector<2x8x8xf32>
    "tpu.trace_start"() <{level = 10 : i32, message = "bqd,bkd->bqk"}> : () -> ()
    %cst_36 = arith.constant dense<0.000000e+00> : vector<2x8x8xf32>
    %106 = tpu.matmul %101, %103, %cst_36 {dimension_numbers = #tpu.dot_dimension_numbers<[2], [2], [1], [1], [0, 0, 0, 1, 1, 1], [0], [0]>} : vector<2x8x8xf32>, vector<2x8x8xf32>, vector<2x8x8xf32> -> vector<2x8x8xf32>
    "tpu.trace_stop"() : () -> ()
    %107 = arith.addf %106, %39 : vector<2x8x8xf32>
    %cst_37 = arith.constant dense<0xFF800000> : vector<2x8xf32>
    %108 = vector.multi_reduction <maximumf>, %107, %cst_37 [2] : vector<2x8x8xf32> to vector<2x8xf32>
    %109 = vector.shape_cast %108 : vector<2x8xf32> to vector<2x8x1xf32>
    %110 = vector.broadcast %109 : vector<2x8x1xf32> to vector<2x8x8xf32>
    %111 = arith.subf %107, %110 : vector<2x8x8xf32>
    %112 = math.exp %111 : vector<2x8x8xf32>
    %cst_38 = arith.constant dense<0.000000e+00> : vector<2x8xf32>
    %113 = vector.multi_reduction <add>, %112, %cst_38 [2] : vector<2x8x8xf32> to vector<2x8xf32>
    %114 = vector.shape_cast %113 : vector<2x8xf32> to vector<2x8x1xf32>
    %115 = tpu.reciprocal %114 {approx = true} : vector<2x8x1xf32> -> vector<2x8x1xf32>
    %116 = vector.broadcast %115 : vector<2x8x1xf32> to vector<2x8x8xf32>
    %117 = arith.mulf %112, %116 : vector<2x8x8xf32>
    "tpu.trace_start"() <{level = 10 : i32, message = "bqk,bkd->bqd"}> : () -> ()
    %cst_39 = arith.constant dense<0.000000e+00> : vector<2x8x8xf32>
    %118 = tpu.matmul %117, %105, %cst_39 {dimension_numbers = #tpu.dot_dimension_numbers<[2], [1], [1], [2], [0, 0, 0, 1, 1, 2], [0], [0]>} : vector<2x8x8xf32>, vector<2x8x8xf32>, vector<2x8x8xf32> -> vector<2x8x8xf32>
    "tpu.trace_stop"() : () -> ()
    %119 = vector.shape_cast %118 : vector<2x8x8xf32> to vector<16x8xf32>
    %120 = tpu.concatenate %59, %79, %99, %119 in 1 : vector<16x8xf32>, vector<16x8xf32>, vector<16x8xf32>, vector<16x8xf32> -> vector<16x32xf32>
    %c0_40 = arith.constant 0 : index
    %c0_41 = arith.constant 0 : index
    %c0_42 = arith.constant 0 : index
    %121 = vector.load %arg7[%c0_40, %c0_41, %c0_42] : memref<1x32x32xf32, #tpu.memory_space<vmem>>, vector<1x32x32xf32>
    %122 = vector.shape_cast %121 : vector<1x32x32xf32> to vector<32x32xf32>
    %cst_43 = arith.constant dense<0.000000e+00> : vector<16x32xf32>
    %123 = tpu.matmul %120, %122, %cst_43 {dimension_numbers = #tpu.dot_dimension_numbers<[1], [0], [0], [1], [0, 0, 1, 1], [], []>} : vector<16x32xf32>, vector<32x32xf32>, vector<16x32xf32> -> vector<16x32xf32>
    %124 = arith.addf %3, %123 : vector<16x32xf32>
    %c0_44 = arith.constant 0 : index
    %c0_45 = arith.constant 0 : index
    %c0_46 = arith.constant 0 : index
    %125 = vector.load %arg8[%c0_44, %c0_45, %c0_46] : memref<1x1x32xf32, #tpu.memory_space<vmem>>, vector<1x1x32xf32>
    %126 = vector.shape_cast %125 : vector<1x1x32xf32> to vector<1x32xf32>
    %127 = vector.broadcast %126 : vector<1x32xf32> to vector<16x32xf32>
    %128 = arith.addf %124, %127 : vector<16x32xf32>
    %c0_47 = arith.constant 0 : index
    %c0_48 = arith.constant 0 : index
    %c0_49 = arith.constant 0 : index
    %129 = vector.load %arg15[%c0_47, %c0_48, %c0_49] : memref<1x1x32xf32, #tpu.memory_space<vmem>>, vector<1x1x32xf32>
    %130 = vector.shape_cast %129 : vector<1x1x32xf32> to vector<1x32xf32>
    %c0_50 = arith.constant 0 : index
    %c0_51 = arith.constant 0 : index
    %c0_52 = arith.constant 0 : index
    %131 = vector.load %arg16[%c0_50, %c0_51, %c0_52] : memref<1x1x32xf32, #tpu.memory_space<vmem>>, vector<1x1x32xf32>
    %132 = vector.shape_cast %131 : vector<1x1x32xf32> to vector<1x32xf32>
    %cst_53 = arith.constant dense<0.000000e+00> : vector<16xf32>
    %133 = vector.multi_reduction <add>, %128, %cst_53 [1] : vector<16x32xf32> to vector<16xf32>
    %134 = vector.shape_cast %133 : vector<16xf32> to vector<16x1xf32>
    %cst_54 = arith.constant 3.200000e+01 : f32
    %135 = vector.broadcast %cst_54 : f32 to vector<16x1xf32>
    %136 = arith.divf %134, %135 : vector<16x1xf32>
    %137 = vector.broadcast %136 : vector<16x1xf32> to vector<16x32xf32>
    %138 = arith.subf %128, %137 : vector<16x32xf32>
    %139 = arith.mulf %138, %138 : vector<16x32xf32>
    %cst_55 = arith.constant dense<0.000000e+00> : vector<16xf32>
    %140 = vector.multi_reduction <add>, %139, %cst_55 [1] : vector<16x32xf32> to vector<16xf32>
    %141 = vector.shape_cast %140 : vector<16xf32> to vector<16x1xf32>
    %cst_56 = arith.constant 0.0322580636 : f32
    %142 = vector.broadcast %cst_56 : f32 to vector<16x1xf32>
    %143 = arith.mulf %141, %142 : vector<16x1xf32>
    %144 = vector.broadcast %130 : vector<1x32xf32> to vector<16x32xf32>
    %145 = arith.mulf %144, %138 : vector<16x32xf32>
    %146 = math.sqrt %143 : vector<16x1xf32>
    %cst_57 = arith.constant 9.99999997E-7 : f32
    %147 = vector.broadcast %cst_57 : f32 to vector<16x1xf32>
    %148 = arith.addf %146, %147 : vector<16x1xf32>
    %149 = vector.broadcast %148 : vector<16x1xf32> to vector<16x32xf32>
    %150 = arith.divf %145, %149 : vector<16x32xf32>
    %151 = vector.broadcast %132 : vector<1x32xf32> to vector<16x32xf32>
    %152 = arith.addf %150, %151 : vector<16x32xf32>
    %c0_58 = arith.constant 0 : index
    %c0_59 = arith.constant 0 : index
    %c0_60 = arith.constant 0 : index
    %153 = vector.load %arg11[%c0_58, %c0_59, %c0_60] : memref<1x32x96xf32, #tpu.memory_space<vmem>>, vector<1x32x96xf32>
    %154 = vector.shape_cast %153 : vector<1x32x96xf32> to vector<32x96xf32>
    %c0_61 = arith.constant 0 : index
    %c0_62 = arith.constant 0 : index
    %c0_63 = arith.constant 0 : index
    %155 = vector.load %arg12[%c0_61, %c0_62, %c0_63] : memref<1x1x96xf32, #tpu.memory_space<vmem>>, vector<1x1x96xf32>
    %156 = vector.shape_cast %155 : vector<1x1x96xf32> to vector<1x96xf32>
    %157 = vector.extract_strided_slice %154 {offsets = [0, 0], sizes = [32, 32], strides = [1, 1]} : vector<32x96xf32> to vector<32x32xf32>
    %cst_64 = arith.constant dense<0.000000e+00> : vector<16x32xf32>
    %158 = tpu.matmul %152, %157, %cst_64 {dimension_numbers = #tpu.dot_dimension_numbers<[1], [0], [0], [1], [0, 0, 1, 1], [], []>} : vector<16x32xf32>, vector<32x32xf32>, vector<16x32xf32> -> vector<16x32xf32>
    %159 = vector.extract_strided_slice %156 {offsets = [0, 0], sizes = [1, 32], strides = [1, 1]} : vector<1x96xf32> to vector<1x32xf32>
    %160 = vector.broadcast %159 : vector<1x32xf32> to vector<16x32xf32>
    %161 = arith.addf %158, %160 : vector<16x32xf32>
    %162 = vector.extract_strided_slice %154 {offsets = [0, 32], sizes = [32, 64], strides = [1, 1]} : vector<32x96xf32> to vector<32x64xf32>
    %cst_65 = arith.constant dense<0.000000e+00> : vector<16x64xf32>
    %163 = tpu.matmul %4, %162, %cst_65 {dimension_numbers = #tpu.dot_dimension_numbers<[1], [0], [0], [1], [0, 0, 1, 1], [], []>} : vector<16x32xf32>, vector<32x64xf32>, vector<16x64xf32> -> vector<16x64xf32>
    %164 = vector.extract_strided_slice %156 {offsets = [0, 32], sizes = [1, 64], strides = [1, 1]} : vector<1x96xf32> to vector<1x64xf32>
    %165 = vector.broadcast %164 : vector<1x64xf32> to vector<16x64xf32>
    %166 = arith.addf %163, %165 : vector<16x64xf32>
    %167 = vector.extract_strided_slice %166 {offsets = [0, 0], sizes = [16, 32], strides = [1, 1]} : vector<16x64xf32> to vector<16x32xf32>
    %168 = vector.extract_strided_slice %166 {offsets = [0, 32], sizes = [16, 32], strides = [1, 1]} : vector<16x64xf32> to vector<16x32xf32>
    %c0_66 = arith.constant 0 : index
    %c0_67 = arith.constant 0 : index
    %c0_68 = arith.constant 0 : index
    %169 = vector.load %arg4[%c0_66, %c0_67, %c0_68] : memref<2x1x8xf32, #tpu.memory_space<vmem>>, vector<2x1x8xf32>
    %170 = vector.shape_cast %169 : vector<2x1x8xf32> to vector<2x1x8xf32>
    %171 = vector.broadcast %170 : vector<2x1x8xf32> to vector<2x8x8xf32>
    %172 = vector.extract_strided_slice %161 {offsets = [0, 0], sizes = [16, 8], strides = [1, 1]} : vector<16x32xf32> to vector<16x8xf32>
    %173 = vector.shape_cast %172 : vector<16x8xf32> to vector<2x8x8xf32>
    %174 = vector.extract_strided_slice %167 {offsets = [0, 0], sizes = [16, 8], strides = [1, 1]} : vector<16x32xf32> to vector<16x8xf32>
    %175 = vector.shape_cast %174 : vector<16x8xf32> to vector<2x8x8xf32>
    %176 = vector.extract_strided_slice %168 {offsets = [0, 0], sizes = [16, 8], strides = [1, 1]} : vector<16x32xf32> to vector<16x8xf32>
    %177 = vector.shape_cast %176 : vector<16x8xf32> to vector<2x8x8xf32>
    "tpu.trace_start"() <{level = 10 : i32, message = "bqd,bkd->bqk"}> : () -> ()
    %cst_69 = arith.constant dense<0.000000e+00> : vector<2x8x8xf32>
    %178 = tpu.matmul %173, %175, %cst_69 {dimension_numbers = #tpu.dot_dimension_numbers<[2], [2], [1], [1], [0, 0, 0, 1, 1, 1], [0], [0]>} : vector<2x8x8xf32>, vector<2x8x8xf32>, vector<2x8x8xf32> -> vector<2x8x8xf32>
    "tpu.trace_stop"() : () -> ()
    %179 = arith.addf %178, %171 : vector<2x8x8xf32>
    %cst_70 = arith.constant dense<0xFF800000> : vector<2x8xf32>
    %180 = vector.multi_reduction <maximumf>, %179, %cst_70 [2] : vector<2x8x8xf32> to vector<2x8xf32>
    %181 = vector.shape_cast %180 : vector<2x8xf32> to vector<2x8x1xf32>
    %182 = vector.broadcast %181 : vector<2x8x1xf32> to vector<2x8x8xf32>
    %183 = arith.subf %179, %182 : vector<2x8x8xf32>
    %184 = math.exp %183 : vector<2x8x8xf32>
    %cst_71 = arith.constant dense<0.000000e+00> : vector<2x8xf32>
    %185 = vector.multi_reduction <add>, %184, %cst_71 [2] : vector<2x8x8xf32> to vector<2x8xf32>
    %186 = vector.shape_cast %185 : vector<2x8xf32> to vector<2x8x1xf32>
    %187 = tpu.reciprocal %186 {approx = true} : vector<2x8x1xf32> -> vector<2x8x1xf32>
    %188 = vector.broadcast %187 : vector<2x8x1xf32> to vector<2x8x8xf32>
    %189 = arith.mulf %184, %188 : vector<2x8x8xf32>
    "tpu.trace_start"() <{level = 10 : i32, message = "bqk,bkd->bqd"}> : () -> ()
    %cst_72 = arith.constant dense<0.000000e+00> : vector<2x8x8xf32>
    %190 = tpu.matmul %189, %177, %cst_72 {dimension_numbers = #tpu.dot_dimension_numbers<[2], [1], [1], [2], [0, 0, 0, 1, 1, 2], [0], [0]>} : vector<2x8x8xf32>, vector<2x8x8xf32>, vector<2x8x8xf32> -> vector<2x8x8xf32>
    "tpu.trace_stop"() : () -> ()
    %191 = vector.shape_cast %190 : vector<2x8x8xf32> to vector<16x8xf32>
    %192 = vector.extract_strided_slice %161 {offsets = [0, 8], sizes = [16, 8], strides = [1, 1]} : vector<16x32xf32> to vector<16x8xf32>
    %193 = vector.shape_cast %192 : vector<16x8xf32> to vector<2x8x8xf32>
    %194 = vector.extract_strided_slice %167 {offsets = [0, 8], sizes = [16, 8], strides = [1, 1]} : vector<16x32xf32> to vector<16x8xf32>
    %195 = vector.shape_cast %194 : vector<16x8xf32> to vector<2x8x8xf32>
    %196 = vector.extract_strided_slice %168 {offsets = [0, 8], sizes = [16, 8], strides = [1, 1]} : vector<16x32xf32> to vector<16x8xf32>
    %197 = vector.shape_cast %196 : vector<16x8xf32> to vector<2x8x8xf32>
    "tpu.trace_start"() <{level = 10 : i32, message = "bqd,bkd->bqk"}> : () -> ()
    %cst_73 = arith.constant dense<0.000000e+00> : vector<2x8x8xf32>
    %198 = tpu.matmul %193, %195, %cst_73 {dimension_numbers = #tpu.dot_dimension_numbers<[2], [2], [1], [1], [0, 0, 0, 1, 1, 1], [0], [0]>} : vector<2x8x8xf32>, vector<2x8x8xf32>, vector<2x8x8xf32> -> vector<2x8x8xf32>
    "tpu.trace_stop"() : () -> ()
    %199 = arith.addf %198, %171 : vector<2x8x8xf32>
    %cst_74 = arith.constant dense<0xFF800000> : vector<2x8xf32>
    %200 = vector.multi_reduction <maximumf>, %199, %cst_74 [2] : vector<2x8x8xf32> to vector<2x8xf32>
    %201 = vector.shape_cast %200 : vector<2x8xf32> to vector<2x8x1xf32>
    %202 = vector.broadcast %201 : vector<2x8x1xf32> to vector<2x8x8xf32>
    %203 = arith.subf %199, %202 : vector<2x8x8xf32>
    %204 = math.exp %203 : vector<2x8x8xf32>
    %cst_75 = arith.constant dense<0.000000e+00> : vector<2x8xf32>
    %205 = vector.multi_reduction <add>, %204, %cst_75 [2] : vector<2x8x8xf32> to vector<2x8xf32>
    %206 = vector.shape_cast %205 : vector<2x8xf32> to vector<2x8x1xf32>
    %207 = tpu.reciprocal %206 {approx = true} : vector<2x8x1xf32> -> vector<2x8x1xf32>
    %208 = vector.broadcast %207 : vector<2x8x1xf32> to vector<2x8x8xf32>
    %209 = arith.mulf %204, %208 : vector<2x8x8xf32>
    "tpu.trace_start"() <{level = 10 : i32, message = "bqk,bkd->bqd"}> : () -> ()
    %cst_76 = arith.constant dense<0.000000e+00> : vector<2x8x8xf32>
    %210 = tpu.matmul %209, %197, %cst_76 {dimension_numbers = #tpu.dot_dimension_numbers<[2], [1], [1], [2], [0, 0, 0, 1, 1, 2], [0], [0]>} : vector<2x8x8xf32>, vector<2x8x8xf32>, vector<2x8x8xf32> -> vector<2x8x8xf32>
    "tpu.trace_stop"() : () -> ()
    %211 = vector.shape_cast %210 : vector<2x8x8xf32> to vector<16x8xf32>
    %212 = vector.extract_strided_slice %161 {offsets = [0, 16], sizes = [16, 8], strides = [1, 1]} : vector<16x32xf32> to vector<16x8xf32>
    %213 = vector.shape_cast %212 : vector<16x8xf32> to vector<2x8x8xf32>
    %214 = vector.extract_strided_slice %167 {offsets = [0, 16], sizes = [16, 8], strides = [1, 1]} : vector<16x32xf32> to vector<16x8xf32>
    %215 = vector.shape_cast %214 : vector<16x8xf32> to vector<2x8x8xf32>
    %216 = vector.extract_strided_slice %168 {offsets = [0, 16], sizes = [16, 8], strides = [1, 1]} : vector<16x32xf32> to vector<16x8xf32>
    %217 = vector.shape_cast %216 : vector<16x8xf32> to vector<2x8x8xf32>
    "tpu.trace_start"() <{level = 10 : i32, message = "bqd,bkd->bqk"}> : () -> ()
    %cst_77 = arith.constant dense<0.000000e+00> : vector<2x8x8xf32>
    %218 = tpu.matmul %213, %215, %cst_77 {dimension_numbers = #tpu.dot_dimension_numbers<[2], [2], [1], [1], [0, 0, 0, 1, 1, 1], [0], [0]>} : vector<2x8x8xf32>, vector<2x8x8xf32>, vector<2x8x8xf32> -> vector<2x8x8xf32>
    "tpu.trace_stop"() : () -> ()
    %219 = arith.addf %218, %171 : vector<2x8x8xf32>
    %cst_78 = arith.constant dense<0xFF800000> : vector<2x8xf32>
    %220 = vector.multi_reduction <maximumf>, %219, %cst_78 [2] : vector<2x8x8xf32> to vector<2x8xf32>
    %221 = vector.shape_cast %220 : vector<2x8xf32> to vector<2x8x1xf32>
    %222 = vector.broadcast %221 : vector<2x8x1xf32> to vector<2x8x8xf32>
    %223 = arith.subf %219, %222 : vector<2x8x8xf32>
    %224 = math.exp %223 : vector<2x8x8xf32>
    %cst_79 = arith.constant dense<0.000000e+00> : vector<2x8xf32>
    %225 = vector.multi_reduction <add>, %224, %cst_79 [2] : vector<2x8x8xf32> to vector<2x8xf32>
    %226 = vector.shape_cast %225 : vector<2x8xf32> to vector<2x8x1xf32>
    %227 = tpu.reciprocal %226 {approx = true} : vector<2x8x1xf32> -> vector<2x8x1xf32>
    %228 = vector.broadcast %227 : vector<2x8x1xf32> to vector<2x8x8xf32>
    %229 = arith.mulf %224, %228 : vector<2x8x8xf32>
    "tpu.trace_start"() <{level = 10 : i32, message = "bqk,bkd->bqd"}> : () -> ()
    %cst_80 = arith.constant dense<0.000000e+00> : vector<2x8x8xf32>
    %230 = tpu.matmul %229, %217, %cst_80 {dimension_numbers = #tpu.dot_dimension_numbers<[2], [1], [1], [2], [0, 0, 0, 1, 1, 2], [0], [0]>} : vector<2x8x8xf32>, vector<2x8x8xf32>, vector<2x8x8xf32> -> vector<2x8x8xf32>
    "tpu.trace_stop"() : () -> ()
    %231 = vector.shape_cast %230 : vector<2x8x8xf32> to vector<16x8xf32>
    %232 = vector.extract_strided_slice %161 {offsets = [0, 24], sizes = [16, 8], strides = [1, 1]} : vector<16x32xf32> to vector<16x8xf32>
    %233 = vector.shape_cast %232 : vector<16x8xf32> to vector<2x8x8xf32>
    %234 = vector.extract_strided_slice %167 {offsets = [0, 24], sizes = [16, 8], strides = [1, 1]} : vector<16x32xf32> to vector<16x8xf32>
    %235 = vector.shape_cast %234 : vector<16x8xf32> to vector<2x8x8xf32>
    %236 = vector.extract_strided_slice %168 {offsets = [0, 24], sizes = [16, 8], strides = [1, 1]} : vector<16x32xf32> to vector<16x8xf32>
    %237 = vector.shape_cast %236 : vector<16x8xf32> to vector<2x8x8xf32>
    "tpu.trace_start"() <{level = 10 : i32, message = "bqd,bkd->bqk"}> : () -> ()
    %cst_81 = arith.constant dense<0.000000e+00> : vector<2x8x8xf32>
    %238 = tpu.matmul %233, %235, %cst_81 {dimension_numbers = #tpu.dot_dimension_numbers<[2], [2], [1], [1], [0, 0, 0, 1, 1, 1], [0], [0]>} : vector<2x8x8xf32>, vector<2x8x8xf32>, vector<2x8x8xf32> -> vector<2x8x8xf32>
    "tpu.trace_stop"() : () -> ()
    %239 = arith.addf %238, %171 : vector<2x8x8xf32>
    %cst_82 = arith.constant dense<0xFF800000> : vector<2x8xf32>
    %240 = vector.multi_reduction <maximumf>, %239, %cst_82 [2] : vector<2x8x8xf32> to vector<2x8xf32>
    %241 = vector.shape_cast %240 : vector<2x8xf32> to vector<2x8x1xf32>
    %242 = vector.broadcast %241 : vector<2x8x1xf32> to vector<2x8x8xf32>
    %243 = arith.subf %239, %242 : vector<2x8x8xf32>
    %244 = math.exp %243 : vector<2x8x8xf32>
    %cst_83 = arith.constant dense<0.000000e+00> : vector<2x8xf32>
    %245 = vector.multi_reduction <add>, %244, %cst_83 [2] : vector<2x8x8xf32> to vector<2x8xf32>
    %246 = vector.shape_cast %245 : vector<2x8xf32> to vector<2x8x1xf32>
    %247 = tpu.reciprocal %246 {approx = true} : vector<2x8x1xf32> -> vector<2x8x1xf32>
    %248 = vector.broadcast %247 : vector<2x8x1xf32> to vector<2x8x8xf32>
    %249 = arith.mulf %244, %248 : vector<2x8x8xf32>
    "tpu.trace_start"() <{level = 10 : i32, message = "bqk,bkd->bqd"}> : () -> ()
    %cst_84 = arith.constant dense<0.000000e+00> : vector<2x8x8xf32>
    %250 = tpu.matmul %249, %237, %cst_84 {dimension_numbers = #tpu.dot_dimension_numbers<[2], [1], [1], [2], [0, 0, 0, 1, 1, 2], [0], [0]>} : vector<2x8x8xf32>, vector<2x8x8xf32>, vector<2x8x8xf32> -> vector<2x8x8xf32>
    "tpu.trace_stop"() : () -> ()
    %251 = vector.shape_cast %250 : vector<2x8x8xf32> to vector<16x8xf32>
    %252 = tpu.concatenate %191, %211, %231, %251 in 1 : vector<16x8xf32>, vector<16x8xf32>, vector<16x8xf32>, vector<16x8xf32> -> vector<16x32xf32>
    %c0_85 = arith.constant 0 : index
    %c0_86 = arith.constant 0 : index
    %c0_87 = arith.constant 0 : index
    %253 = vector.load %arg13[%c0_85, %c0_86, %c0_87] : memref<1x32x32xf32, #tpu.memory_space<vmem>>, vector<1x32x32xf32>
    %254 = vector.shape_cast %253 : vector<1x32x32xf32> to vector<32x32xf32>
    %cst_88 = arith.constant dense<0.000000e+00> : vector<16x32xf32>
    %255 = tpu.matmul %252, %254, %cst_88 {dimension_numbers = #tpu.dot_dimension_numbers<[1], [0], [0], [1], [0, 0, 1, 1], [], []>} : vector<16x32xf32>, vector<32x32xf32>, vector<16x32xf32> -> vector<16x32xf32>
    %256 = arith.addf %128, %255 : vector<16x32xf32>
    %c0_89 = arith.constant 0 : index
    %c0_90 = arith.constant 0 : index
    %c0_91 = arith.constant 0 : index
    %257 = vector.load %arg14[%c0_89, %c0_90, %c0_91] : memref<1x1x32xf32, #tpu.memory_space<vmem>>, vector<1x1x32xf32>
    %258 = vector.shape_cast %257 : vector<1x1x32xf32> to vector<1x32xf32>
    %259 = vector.broadcast %258 : vector<1x32xf32> to vector<16x32xf32>
    %260 = arith.addf %256, %259 : vector<16x32xf32>
    %c0_92 = arith.constant 0 : index
    %c0_93 = arith.constant 0 : index
    %c0_94 = arith.constant 0 : index
    %261 = vector.load %arg21[%c0_92, %c0_93, %c0_94] : memref<1x1x32xf32, #tpu.memory_space<vmem>>, vector<1x1x32xf32>
    %262 = vector.shape_cast %261 : vector<1x1x32xf32> to vector<1x32xf32>
    %c0_95 = arith.constant 0 : index
    %c0_96 = arith.constant 0 : index
    %c0_97 = arith.constant 0 : index
    %263 = vector.load %arg22[%c0_95, %c0_96, %c0_97] : memref<1x1x32xf32, #tpu.memory_space<vmem>>, vector<1x1x32xf32>
    %264 = vector.shape_cast %263 : vector<1x1x32xf32> to vector<1x32xf32>
    %cst_98 = arith.constant dense<0.000000e+00> : vector<16xf32>
    %265 = vector.multi_reduction <add>, %260, %cst_98 [1] : vector<16x32xf32> to vector<16xf32>
    %266 = vector.shape_cast %265 : vector<16xf32> to vector<16x1xf32>
    %cst_99 = arith.constant 3.200000e+01 : f32
    %267 = vector.broadcast %cst_99 : f32 to vector<16x1xf32>
    %268 = arith.divf %266, %267 : vector<16x1xf32>
    %269 = vector.broadcast %268 : vector<16x1xf32> to vector<16x32xf32>
    %270 = arith.subf %260, %269 : vector<16x32xf32>
    %271 = arith.mulf %270, %270 : vector<16x32xf32>
    %cst_100 = arith.constant dense<0.000000e+00> : vector<16xf32>
    %272 = vector.multi_reduction <add>, %271, %cst_100 [1] : vector<16x32xf32> to vector<16xf32>
    %273 = vector.shape_cast %272 : vector<16xf32> to vector<16x1xf32>
    %cst_101 = arith.constant 0.0322580636 : f32
    %274 = vector.broadcast %cst_101 : f32 to vector<16x1xf32>
    %275 = arith.mulf %273, %274 : vector<16x1xf32>
    %276 = vector.broadcast %262 : vector<1x32xf32> to vector<16x32xf32>
    %277 = arith.mulf %276, %270 : vector<16x32xf32>
    %278 = math.sqrt %275 : vector<16x1xf32>
    %cst_102 = arith.constant 9.99999997E-7 : f32
    %279 = vector.broadcast %cst_102 : f32 to vector<16x1xf32>
    %280 = arith.addf %278, %279 : vector<16x1xf32>
    %281 = vector.broadcast %280 : vector<16x1xf32> to vector<16x32xf32>
    %282 = arith.divf %277, %281 : vector<16x32xf32>
    %283 = vector.broadcast %264 : vector<1x32xf32> to vector<16x32xf32>
    %284 = arith.addf %282, %283 : vector<16x32xf32>
    %c0_103 = arith.constant 0 : index
    %c0_104 = arith.constant 0 : index
    %c0_105 = arith.constant 0 : index
    %285 = vector.load %arg17[%c0_103, %c0_104, %c0_105] : memref<1x32x64xf32, #tpu.memory_space<vmem>>, vector<1x32x64xf32>
    %286 = vector.shape_cast %285 : vector<1x32x64xf32> to vector<32x64xf32>
    %cst_106 = arith.constant dense<0.000000e+00> : vector<16x64xf32>
    %287 = tpu.matmul %284, %286, %cst_106 {dimension_numbers = #tpu.dot_dimension_numbers<[1], [0], [0], [1], [0, 0, 1, 1], [], []>} : vector<16x32xf32>, vector<32x64xf32>, vector<16x64xf32> -> vector<16x64xf32>
    %c0_107 = arith.constant 0 : index
    %c0_108 = arith.constant 0 : index
    %c0_109 = arith.constant 0 : index
    %288 = vector.load %arg18[%c0_107, %c0_108, %c0_109] : memref<1x1x64xf32, #tpu.memory_space<vmem>>, vector<1x1x64xf32>
    %289 = vector.shape_cast %288 : vector<1x1x64xf32> to vector<1x64xf32>
    %290 = vector.broadcast %289 : vector<1x64xf32> to vector<16x64xf32>
    %291 = arith.addf %287, %290 : vector<16x64xf32>
    %cst_110 = arith.constant 0.000000e+00 : f32
    %292 = vector.broadcast %cst_110 : f32 to vector<16x64xf32>
    %293 = arith.maximumf %291, %292 : vector<16x64xf32>
    %c0_111 = arith.constant 0 : index
    %c0_112 = arith.constant 0 : index
    %c0_113 = arith.constant 0 : index
    %294 = vector.load %arg19[%c0_111, %c0_112, %c0_113] : memref<1x64x32xf32, #tpu.memory_space<vmem>>, vector<1x64x32xf32>
    %295 = vector.shape_cast %294 : vector<1x64x32xf32> to vector<64x32xf32>
    %cst_114 = arith.constant dense<0.000000e+00> : vector<16x32xf32>
    %296 = tpu.matmul %293, %295, %cst_114 {dimension_numbers = #tpu.dot_dimension_numbers<[1], [0], [0], [1], [0, 0, 1, 1], [], []>} : vector<16x64xf32>, vector<64x32xf32>, vector<16x32xf32> -> vector<16x32xf32>
    %297 = arith.addf %260, %296 : vector<16x32xf32>
    %c0_115 = arith.constant 0 : index
    %c0_116 = arith.constant 0 : index
    %c0_117 = arith.constant 0 : index
    %298 = vector.load %arg20[%c0_115, %c0_116, %c0_117] : memref<1x1x32xf32, #tpu.memory_space<vmem>>, vector<1x1x32xf32>
    %299 = vector.shape_cast %298 : vector<1x1x32xf32> to vector<1x32xf32>
    %300 = vector.broadcast %299 : vector<1x32xf32> to vector<16x32xf32>
    %301 = arith.addf %297, %300 : vector<16x32xf32>
    %c0_118 = arith.constant 0 : index
    %c0_119 = arith.constant 0 : index
    %302 = vector.load %arg26[%c0_118, %c0_119] : memref<16x32xf32, #tpu.memory_space<vmem>>, vector<16x32xf32>
    tpu.vector_store %arg26[%c0_118, %c0_119], %301 {strides = array<i32>} : memref<16x32xf32, #tpu.memory_space<vmem>>, vector<16x32xf32>,
    %c1_i32 = arith.constant 1 : i32
    %303 = arith.cmpi eq, %arg0, %c1_i32 : i32
    %304 = arith.extui %303 : i1 to i32
    %c0_i32_120 = arith.constant 0 : i32
    %305 = arith.cmpi ne, %304, %c0_i32_120 : i32
    scf.if %305 {
      %c0_121 = arith.constant 0 : index
      %c0_122 = arith.constant 0 : index
      %306 = vector.load %arg23[%c0_121, %c0_122] : memref<1x32xf32, #tpu.memory_space<vmem>>, vector<1x32xf32>
      %c0_123 = arith.constant 0 : index
      %c0_124 = arith.constant 0 : index
      %307 = vector.load %arg24[%c0_123, %c0_124] : memref<1x32xf32, #tpu.memory_space<vmem>>, vector<1x32xf32>
      %cst_125 = arith.constant dense<0.000000e+00> : vector<16xf32>
      %308 = vector.multi_reduction <add>, %301, %cst_125 [1] : vector<16x32xf32> to vector<16xf32>
      %309 = vector.shape_cast %308 : vector<16xf32> to vector<16x1xf32>
      %cst_126 = arith.constant 3.200000e+01 : f32
      %310 = vector.broadcast %cst_126 : f32 to vector<16x1xf32>
      %311 = arith.divf %309, %310 : vector<16x1xf32>
      %312 = vector.broadcast %311 : vector<16x1xf32> to vector<16x32xf32>
      %313 = arith.subf %301, %312 : vector<16x32xf32>
      %314 = arith.mulf %313, %313 : vector<16x32xf32>
      %cst_127 = arith.constant dense<0.000000e+00> : vector<16xf32>
      %315 = vector.multi_reduction <add>, %314, %cst_127 [1] : vector<16x32xf32> to vector<16xf32>
      %316 = vector.shape_cast %315 : vector<16xf32> to vector<16x1xf32>
      %cst_128 = arith.constant 0.0322580636 : f32
      %317 = vector.broadcast %cst_128 : f32 to vector<16x1xf32>
      %318 = arith.mulf %316, %317 : vector<16x1xf32>
      %319 = vector.broadcast %306 : vector<1x32xf32> to vector<16x32xf32>
      %320 = arith.mulf %319, %313 : vector<16x32xf32>
      %321 = math.sqrt %318 : vector<16x1xf32>
      %cst_129 = arith.constant 9.99999997E-7 : f32
      %322 = vector.broadcast %cst_129 : f32 to vector<16x1xf32>
      %323 = arith.addf %321, %322 : vector<16x1xf32>
      %324 = vector.broadcast %323 : vector<16x1xf32> to vector<16x32xf32>
      %325 = arith.divf %320, %324 : vector<16x32xf32>
      %326 = vector.broadcast %307 : vector<1x32xf32> to vector<16x32xf32>
      %327 = arith.addf %325, %326 : vector<16x32xf32>
      %c0_130 = arith.constant 0 : index
      %c0_131 = arith.constant 0 : index
      %328 = vector.load %arg25[%c0_130, %c0_131] : memref<16x32xf32, #tpu.memory_space<vmem>>, vector<16x32xf32>
      tpu.vector_store %arg25[%c0_130, %c0_131], %327 {strides = array<i32>} : memref<16x32xf32, #tpu.memory_space<vmem>>, vector<16x32xf32>,
    } else {
    }
    return
  }
  func.func @transform_0(%arg0: i32) -> (i32, i32) {
    %c0_i32 = arith.constant 0 : i32
    %c0_i32_0 = arith.constant 0 : i32
    %c0_i32_1 = arith.constant 0 : i32
    return %c0_i32, %c0_i32_0 : i32, i32
  }
  func.func @transform_1(%arg0: i32) -> (i32, i32) {
    %c0_i32 = arith.constant 0 : i32
    %c0_i32_0 = arith.constant 0 : i32
    %c0_i32_1 = arith.constant 0 : i32
    return %c0_i32, %c0_i32_0 : i32, i32
  }
  func.func @transform_2(%arg0: i32) -> (i32, i32, i32) {
    %c0_i32 = arith.constant 0 : i32
    %c0_i32_0 = arith.constant 0 : i32
    %c0_i32_1 = arith.constant 0 : i32
    %c0_i32_2 = arith.constant 0 : i32
    return %c0_i32, %c0_i32_0, %c0_i32_1 : i32, i32, i32
  }
  func.func @transform_3(%arg0: i32) -> (i32, i32, i32) {
    %c0_i32 = arith.constant 0 : i32
    %c0_i32_0 = arith.constant 0 : i32
    %c0_i32_1 = arith.constant 0 : i32
    %c0_i32_2 = arith.constant 0 : i32
    return %c0_i32, %c0_i32_0, %c0_i32_1 : i32, i32, i32
  }
  func.func @transform_4(%arg0: i32) -> (i32, i32, i32) {
    %c0_i32 = arith.constant 0 : i32
    %c0_i32_0 = arith.constant 0 : i32
    %c0_i32_1 = arith.constant 0 : i32
    return %arg0, %c0_i32, %c0_i32_0 : i32, i32, i32
  }
  func.func @transform_5(%arg0: i32) -> (i32, i32, i32) {
    %c0_i32 = arith.constant 0 : i32
    %c0_i32_0 = arith.constant 0 : i32
    %c0_i32_1 = arith.constant 0 : i32
    return %arg0, %c0_i32, %c0_i32_0 : i32, i32, i32
  }
  func.func @transform_6(%arg0: i32) -> (i32, i32, i32) {
    %c0_i32 = arith.constant 0 : i32
    %c0_i32_0 = arith.constant 0 : i32
    %c0_i32_1 = arith.constant 0 : i32
    return %arg0, %c0_i32, %c0_i32_0 : i32, i32, i32
  }
  func.func @transform_7(%arg0: i32) -> (i32, i32, i32) {
    %c0_i32 = arith.constant 0 : i32
    %c0_i32_0 = arith.constant 0 : i32
    %c0_i32_1 = arith.constant 0 : i32
    return %arg0, %c0_i32, %c0_i32_0 : i32, i32, i32
  }
  func.func @transform_8(%arg0: i32) -> (i32, i32, i32) {
    %c0_i32 = arith.constant 0 : i32
    %c0_i32_0 = arith.constant 0 : i32
    %c0_i32_1 = arith.constant 0 : i32
    return %arg0, %c0_i32, %c0_i32_0 : i32, i32, i32
  }
  func.func @transform_9(%arg0: i32) -> (i32, i32, i32) {
    %c0_i32 = arith.constant 0 : i32
    %c0_i32_0 = arith.constant 0 : i32
    %c0_i32_1 = arith.constant 0 : i32
    return %arg0, %c0_i32, %c0_i32_0 : i32, i32, i32
  }
  func.func @transform_10(%arg0: i32) -> (i32, i32, i32) {
    %c0_i32 = arith.constant 0 : i32
    %c0_i32_0 = arith.constant 0 : i32
    %c0_i32_1 = arith.constant 0 : i32
    return %arg0, %c0_i32, %c0_i32_0 : i32, i32, i32
  }
  func.func @transform_11(%arg0: i32) -> (i32, i32, i32) {
    %c0_i32 = arith.constant 0 : i32
    %c0_i32_0 = arith.constant 0 : i32
    %c0_i32_1 = arith.constant 0 : i32
    return %arg0, %c0_i32, %c0_i32_0 : i32, i32, i32
  }
  func.func @transform_12(%arg0: i32) -> (i32, i32, i32) {
    %c0_i32 = arith.constant 0 : i32
    %c0_i32_0 = arith.constant 0 : i32
    %c0_i32_1 = arith.constant 0 : i32
    return %arg0, %c0_i32, %c0_i32_0 : i32, i32, i32
  }
  func.func @transform_13(%arg0: i32) -> (i32, i32, i32) {
    %c0_i32 = arith.constant 0 : i32
    %c0_i32_0 = arith.constant 0 : i32
    %c0_i32_1 = arith.constant 0 : i32
    return %arg0, %c0_i32, %c0_i32_0 : i32, i32, i32
  }
  func.func @transform_14(%arg0: i32) -> (i32, i32, i32) {
    %c0_i32 = arith.constant 0 : i32
    %c0_i32_0 = arith.constant 0 : i32
    %c0_i32_1 = arith.constant 0 : i32
    return %arg0, %c0_i32, %c0_i32_0 : i32, i32, i32
  }
  func.func @transform_15(%arg0: i32) -> (i32, i32, i32) {
    %c0_i32 = arith.constant 0 : i32
    %c0_i32_0 = arith.constant 0 : i32
    %c0_i32_1 = arith.constant 0 : i32
    return %arg0, %c0_i32, %c0_i32_0 : i32, i32, i32
  }
  func.func @transform_16(%arg0: i32) -> (i32, i32, i32) {
    %c0_i32 = arith.constant 0 : i32
    %c0_i32_0 = arith.constant 0 : i32
    %c0_i32_1 = arith.constant 0 : i32
    return %arg0, %c0_i32, %c0_i32_0 : i32, i32, i32
  }
  func.func @transform_17(%arg0: i32) -> (i32, i32, i32) {
    %c0_i32 = arith.constant 0 : i32
    %c0_i32_0 = arith.constant 0 : i32
    %c0_i32_1 = arith.constant 0 : i32
    return %arg0, %c0_i32, %c0_i32_0 : i32, i32, i32
  }
  func.func @transform_18(%arg0: i32) -> (i32, i32, i32) {
    %c0_i32 = arith.constant 0 : i32
    %c0_i32_0 = arith.constant 0 : i32
    %c0_i32_1 = arith.constant 0 : i32
    return %arg0, %c0_i32, %c0_i32_0 : i32, i32, i32
  }
  func.func @transform_19(%arg0: i32) -> (i32, i32, i32) {
    %c0_i32 = arith.constant 0 : i32
    %c0_i32_0 = arith.constant 0 : i32
    %c0_i32_1 = arith.constant 0 : i32
    return %arg0, %c0_i32, %c0_i32_0 : i32, i32, i32
  }
  func.func @transform_20(%arg0: i32) -> (i32, i32, i32) {
    %c0_i32 = arith.constant 0 : i32
    %c0_i32_0 = arith.constant 0 : i32
    %c0_i32_1 = arith.constant 0 : i32
    return %arg0, %c0_i32, %c0_i32_0 : i32, i32, i32
  }
  func.func @transform_21(%arg0: i32) -> (i32, i32, i32) {
    %c0_i32 = arith.constant 0 : i32
    %c0_i32_0 = arith.constant 0 : i32
    %c0_i32_1 = arith.constant 0 : i32
    return %arg0, %c0_i32, %c0_i32_0 : i32, i32, i32
  }
  func.func @transform_22(%arg0: i32) -> (i32, i32) {
    %c0_i32 = arith.constant 0 : i32
    %c0_i32_0 = arith.constant 0 : i32
    %c0_i32_1 = arith.constant 0 : i32
    return %c0_i32, %c0_i32_0 : i32, i32
  }
  func.func @transform_23(%arg0: i32) -> (i32, i32) {
    %c0_i32 = arith.constant 0 : i32
    %c0_i32_0 = arith.constant 0 : i32
    %c0_i32_1 = arith.constant 0 : i32
    return %c0_i32, %c0_i32_0 : i32, i32
  }
  func.func @transform_24(%arg0: i32) -> (i32, i32) {
    %c0_i32 = arith.constant 0 : i32
    %c0_i32_0 = arith.constant 0 : i32
    %c0_i32_1 = arith.constant 0 : i32
    return %c0_i32, %c0_i32_0 : i32, i32
  }
}

</mosaic_0001>

<bundles_post_ra>
// kernel: encoder_decoder_forward.2
= control target key start
LH: loop header
LB: loop body
LE: loop exit
PB: predicated region body
PF: predicated region fallthrough
CT: control target
= control target key end

     0   :  { %s2086_s21 = smov 0   ;;  %s2410_s0 = inlined_call_operand.vmem [shape: f32[16,32], index: 0, kind: input, shape index: {}]   ;;  %s2411_s1 = inlined_call_operand.vmem [shape: f32[2,1,8], index: 1, kind: input, shape index: {}]   ;;  %s2412_s2 = inlined_call_operand.vmem [shape: f32[2,32,96], index: 2, kind: input, shape index: {}]   ;;  %s2413_s3 = inlined_call_operand.vmem [shape: f32[2,1,96], index: 3, kind: input, shape index: {}]   ;;  %s2414_s4 = inlined_call_operand.vmem [shape: f32[2,32,32], index: 4, kind: input, shape index: {}]   ;;  %s2415_s5 = inlined_call_operand.vmem [shape: f32[2,1,32], index: 5, kind: input, shape index: {}]   ;;  %s2416_s6 = inlined_call_operand.vmem [shape: f32[2,1,32], index: 6, kind: input, shape index: {}]   ;;  %s2417_s7 = inlined_call_operand.vmem [shape: f32[2,1,32], index: 7, kind: input, shape index: {}]   ;;  %s2418_s8 = inlined_call_operand.vmem [shape: f32[2,32,64], index: 8, kind: input, shape index: {}]   ;;  %s2419_s9 = inlined_call_operand.vmem [shape: f32[2,1,64], index: 9, kind: input, shape index: {}]   ;;  %s2420_s10 = inlined_call_operand.vmem [shape: f32[2,64,32], index: 10, kind: input, shape index: {}]   ;;  %s2421_s11 = inlined_call_operand.vmem [shape: f32[2,1,32], index: 11, kind: input, shape index: {}]   ;;  %s2422_s12 = inlined_call_operand.vmem [shape: f32[2,1,32], index: 12, kind: input, shape index: {}]   ;;  %s2423_s13 = inlined_call_operand.vmem [shape: f32[2,1,32], index: 13, kind: input, shape index: {}]   ;;  %s2424_s14 = inlined_call_operand.vmem [shape: f32[1,32], index: 14, kind: input, shape index: {}]   ;;  %s2425_s15 = inlined_call_operand.vmem [shape: f32[1,32], index: 15, kind: input, shape index: {}]   ;;  %s2426_s16 = inlined_call_operand.vmem [shape: f32[16,32], index: 16, kind: output, shape index: {}]  }
   0x1   :  { %2431 = sst [smem:[#allocation5_spill]] %s2410_s0 }
   0x2   :  { %2432 = sst [smem:[#allocation6_spill]] %s2412_s2 }
   0x3   :  { %2433 = sst [smem:[#allocation7_spill]] %s2414_s4 }
   0x4   :  { %2434 = sst [smem:[#allocation8_spill]] %s2424_s14 }
   0x5   :  { %2435 = sst [smem:[#allocation9_spill]] %s2425_s15 }
   0x6   :  { %2436 = sst [smem:[#allocation10_spill]] %s2426_s16 }
   0x7 LB: > { %2437 = sst [smem:[#allocation3_spill]] %s1984_s21  ;;  %s2092_s22 = sadd.s32 4294967295, %s1984_s21   ;;  %s1984_s21 = sphi %s2086_s21, %s26_s21  }
   0x8   : > { %p1831_p0 = scmp.ge.s32.totalorder %s1984_s21, 1  ;;  %p551_p1 = scmp.lt.s32.totalorder %s1984_s21, 3 }
   0xa   : > { %p552_p2 = pnand %p1831_p0, %p551_p1 }
   0xc   : > { %555 = sbr.rel (%p552_p2) target bundleno = 2637 (0xa4d), region = 84 }
  0x11   : > { %p635_p3 = scmp.lt.s32.totalorder %s2092_s22, 1  ;;  %s2438_s2 = sld [smem:[#allocation6_spill]] }
  0x12   : > { %s2439_s4 = sld [smem:[#allocation7_spill]]  ;;  %p1840_p4 = scmp.ne.s32.totalorder %s2092_s22, 0 }
  0x13   : > { %s2098_s23 = scalar_select %p635_p3, %s2092_s22, 1 }
  0x14   : > { %s2441_s19 = sld [smem:[#allocation5_spill]] (!%p1840_p4) }
  0x15   : > { %s1876_s24 = sshll.u32 %s2098_s23, 5  ;;  %s672_s25 = scalar_lea.vmem %s2421_s11, %s2098_s23 }
  0x16   : > { %s675_s28 = scalar_lea.vmem %s2422_s12, %s2098_s23  ;;  %s678_s14 = scalar_lea.vmem %s2423_s13, %s2098_s23 }
  0x17   : > { %s2108_s30 = scalar_lea.vmem %s2438_s2, %s1876_s24  ;;  %s2130_s2 = scalar_lea.vmem %s2418_s8, %s1876_s24 }
  0x18   : > { %s2113_s18 = scalar_lea.vmem %s2439_s4, %s1876_s24  ;;  %s664_s4 = scalar_lea.vmem %s2419_s9, %s2098_s23 }
  0x19   : > { %2440 = sst [smem:[#allocation4_spill]] %s2113_s18  ;;  %s1879_s18 = sshll.u32 %s2098_s23, 6 }
  0x1a   : > { %s2140_s21 = scalar_lea.vmem %s2420_s10, %s1879_s18  ;;  %682 = sbr.rel (%p1840_p4) target bundleno = 34 (0x22), region = 88 }
  0x1f   : > { %v683_v0 = vld [vmem:[%s2441_s19] sm:$0xff]  ;;  %vm685_vm0 = vcmask 261120   ;;  %v684_v1 = vld [vmem:[%s2441_s19 + $0x8] sm:$0xff] }
  0x20   : > { %686 = vst.msk [vmem:[#allocation2] sm:$0xff] %vm685_vm0, %v683_v0 }
  0x21   : > { %687 = vst.msk [vmem:[#allocation2 + $0x8] sm:$0xff] %vm685_vm0, %v684_v1 }
  0x22 PF: > { %vm692_vm1 = vcmask 261120   ;;  %v1986_v6 = vmov 32.0   ;;  %v789_v23 = vld [vmem:[%s2108_s30 + $0x18] sm:$0xff]  ;;  %v788_v24 = vld [vmem:[%s2108_s30 + $0x10] sm:$0xff]  ;;  %v787_v25 = vld [vmem:[%s2108_s30 + $0x8] sm:$0xff]  ;;  %s2442_s15 = scalar_lea.vmem %s2416_s6, %s2098_s23  ;;  %s2443_s24 = scalar_lea.vmem %s2417_s7, %s2098_s23  ;;  %vm834_vm15 = vcmask 64512  }
  0x23   : > { %1918 = vrcp.f32 %v1986_v6  ;;  %812 = vmatpush.msra.mxu0 %v789_v23  ;;  %v786_v26 = vld [vmem:[%s2108_s30] sm:$0xff]  ;;  %s2444_s17 = scalar_lea.vmem %s2413_s3, %s2098_s23  ;;  %s1987_s18 = smov 64   ;;  %vm1376_vm0 = vcmask 130048  }
  0x24   : > { %v1908_v61 = vld [vmem:[%s2442_s15] ss:$0 sm:$0xff]  ;;  %s1988_s20 = smov 96   ;;  %s1989_s27 = smov 80  }
  0x25   : > { %813 = vmatpush.msra.mxu0 %v788_v24  ;;  %s1990_s30 = smov 88   ;;  %s1991_s15 = smov 72  }
  0x26   : > { %s1992_s16 = smov 112   ;;  %s1993_s26 = smov 104  }
  0x27   : > { %v2161_v2 = vld [vmem:[#allocation2] sm:$0xff]  ;;  %814 = vmatpush.msra.mxu0 %v787_v25  ;;  %s1994_s0 = smov 120   ;;  %p1873_p5 = scmp.ne.s32.totalorder %s2092_s22, 1 }
  0x28   : > { %v2163_v3 = vld [vmem:[#allocation2 + $0x8] sm:$0xff]  ;;  %v693_v4 = vsel %vm692_vm1, %v2161_v2, 0.0  ;;  %s2447_s22 = sld [smem:[#allocation8_spill]] (!%p1873_p5) }
  0x29   : > { %v696_v5 = vsel %vm692_vm1, %v2163_v3, 0.0  ;;  %694 = vadd.xlane.f32.xlu0 %v693_v4  ;;  %v1919_v7 = vpop.eup %1918  ;;  %815 = vmatpush.msra.mxu0 %v786_v26  ;;  %s2449_s29 = sld [smem:[#allocation10_spill]] (!%p1873_p5) }
  0x2a   : > { %697 = vadd.xlane.f32.xlu1 %v696_v5  ;;  %v700_v8 = vmul.f32 32.0, %v1919_v7  ;;  %vm704_vm2 = vweird.f32 %v1919_v7 }
  0x2c   : > { %v701_v9 = vsub.f32 1.0, %v700_v8 }
  0x2e   : > { %v702_v10 = vmul.f32 %v1919_v7, %v701_v9 }
  0x30   : > { %v703_v11 = vadd.f32 %v1919_v7, %v702_v10  ;;  %v1909_v10 = vld [vmem:[%s2443_s24] ss:$0 sm:$0xff]  ;;  %s2000_s24 = smov 24  }
  0x32   : > { %v2169_v12 = vsel %vm704_vm2, %v1919_v7, %v703_v11  ;;  %vm1379_vm2 = vcmask 195584  }
  0x9c   : > { %v695_v13 = vpop.xlane.xlu0 %694 }
  0x9d   : > { %v698_v14 = vpop.xlane.xlu1 %697  ;;  %v706_v15 = vmul.f32 %v2169_v12, %v695_v13 }
  0x9e   : > { %v707_v16 = vmul.f32 %v2169_v12, %v698_v14 }
  0x9f   : > { %v2174_v17 = vsub.f32 %v2161_v2, %v706_v15 }
  0xa0   : > { %v2177_v18 = vsub.f32 %v2163_v3, %v707_v16 }
  0xa1   : > { %v710_v19 = vmul.f32 %v2174_v17, %v2174_v17  ;;  %v723_v8 = vmul.f32 %v1908_v61, %v2174_v17  ;;  %v1910_v17 = vld [vmem:[%s2444_s17] ss:$0 sm:$0xff]  ;;  %s2446_s17 = scalar_lea.vmem %s2415_s5, %s2098_s23 }
  0xa2   : > { %v711_v20 = vmul.f32 %v2177_v18, %v2177_v18  ;;  %v724_v14 = vmul.f32 %v1908_v61, %v2177_v18 }
  0xa3   : > { %v712_v21 = vsel %vm692_vm1, %v710_v19, 0.0 }
  0xa4   : > { %v715_v22 = vsel %vm692_vm1, %v711_v20, 0.0  ;;  %713 = vadd.xlane.f32.xlu0 %v712_v21 }
  0xa5   : > { %716 = vadd.xlane.f32.xlu2 %v715_v22 }
 0x117   : > { %v714_v27 = vpop.xlane.xlu0 %713 }
 0x118   : > { %v717_v28 = vpop.xlane.xlu2 %716  ;;  %v718_v29 = vmul.f32 0.032258064, %v714_v27 }
 0x119   : > { %v719_v30 = vmul.f32 0.032258064, %v717_v28 }
 0x11a   : > { %1920 = vrsqrt.f32 %v718_v29  ;;  %vm732_vm4 = vcmp.eq.f32.partialorder %v718_v29, inf  ;;  %v735_v45 = vand.u32 2147483648, %v718_v29  ;;  %vm734_vm6 = vcmp.eq.f32.partialorder %v718_v29, 0.0 }
 0x11b   : > { %1922 = vrsqrt.f32 %v719_v30  ;;  %vm744_vm3 = vcmp.eq.f32.partialorder %v719_v30, inf  ;;  %v747_v44 = vand.u32 2147483648, %v719_v30  ;;  %vm746_vm5 = vcmp.eq.f32.partialorder %v719_v30, 0.0 }
 0x120   : > { %v1921_v31 = vpop.eup %1920 }
 0x121   : > { %v1923_v32 = vpop.eup %1922  ;;  %v726_v33 = vmul.f32 %v1921_v31, %v718_v29 }
 0x122   : > { %v738_v34 = vmul.f32 %v1923_v32, %v719_v30 }
 0x123   : > { %v727_v35 = vmul.f32 %v1921_v31, %v726_v33 }
 0x124   : > { %v739_v36 = vmul.f32 %v1923_v32, %v738_v34 }
 0x125   : > { %v728_v37 = vmul.f32 0.5, %v727_v35 }
 0x126   : > { %v740_v38 = vmul.f32 0.5, %v739_v36 }
 0x127   : > { %v729_v39 = vsub.f32 1.5, %v728_v37 }
 0x128   : > { %v741_v40 = vsub.f32 1.5, %v740_v38 }
 0x129   : > { %v730_v41 = vmul.f32 %v1921_v31, %v729_v39 }
 0x12a   : > { %v742_v42 = vmul.f32 %v1923_v32, %v741_v40 }
 0x12b   : > { %v731_v43 = vmul.f32 %v730_v41, %v718_v29 }
 0x12c   : > { %v743_v46 = vmul.f32 %v742_v42, %v719_v30 }
 0x12d   : > { %v733_v47 = vsel %vm732_vm4, %v718_v29, %v731_v43  ;;  %v2232_v29 = vld [vmem:[%s2411_s1] ss:$0 sm:$0xff] }
 0x12e   : > { %v736_v48 = vsel %vm734_vm6, %v735_v45, %v733_v47  ;;  %v745_v49 = vsel %vm744_vm3, %v719_v30, %v743_v46 }
 0x12f   : > { %v749_v50 = vadd.f32 1e-06, %v736_v48  ;;  %v748_v51 = vsel %vm746_vm5, %v747_v44, %v745_v49 }
 0x130   : > { %v750_v52 = vadd.f32 1e-06, %v748_v51 }
 0x131   : > { %1924 = vrcp.f32 %v749_v50  ;;  %v762_v58 = vand.u32 2147483648, %v749_v50  ;;  %v760_v63 = vand.u32 2147483647, %v749_v50  ;;  %vm756_vm10 = vweird.f32 %v749_v50 }
 0x132   : > { %1926 = vrcp.f32 %v750_v52  ;;  %vm771_vm7 = vweird.f32 %v750_v52  ;;  %v777_v60 = vand.u32 2147483648, %v750_v52  ;;  %v775_v0 = vand.u32 2147483647, %v750_v52 }
 0x133   : > { %v763_v5 = vor.u32 1.1754944e-38, %v762_v58  ;;  %vm761_vm13 = vcmp.eq.f32.partialorder %v760_v63, 8.507059e+37 }
 0x134   : > { %v778_v7 = vor.u32 1.1754944e-38, %v777_v60  ;;  %vm776_vm14 = vcmp.eq.f32.partialorder %v775_v0, 8.507059e+37 }
 0x137   : > { %v1925_v53 = vpop.eup %1924 }
 0x138   : > { %v1927_v54 = vpop.eup %1926  ;;  %v752_v55 = vmul.f32 %v1925_v53, %v749_v50  ;;  %vm757_vm9 = vweird.f32 %v1925_v53  ;;  %v1912_v50 = vld [vmem:[%s2411_s1 + $0x1] ss:$0 sm:$0xff] }
 0x139   : > { %v767_v56 = vmul.f32 %v1927_v54, %v750_v52  ;;  %vm772_vm8 = vweird.f32 %v1927_v54  ;;  %vm758_vm12 = vmor %vm756_vm10, %vm757_vm9 }
 0x13a   : > { %v753_v57 = vsub.f32 1.0, %v752_v55  ;;  %vm773_vm11 = vmor %vm771_vm7, %vm772_vm8 }
 0x13b   : > { %v768_v59 = vsub.f32 1.0, %v767_v56 }
 0x13c   : > { %v754_v62 = vmul.f32 %v1925_v53, %v753_v57 }
 0x13d   : > { %v769_v1 = vmul.f32 %v1927_v54, %v768_v59 }
 0x13e   : > { %v755_v4 = vadd.f32 %v1925_v53, %v754_v62 }
 0x13f   : > { %v770_v6 = vadd.f32 %v1927_v54, %v769_v1 }
 0x140   : > { %v759_v9 = vsel %vm758_vm12, %v1925_v53, %v755_v4 }
 0x141   : > { %v764_v11 = vsel %vm761_vm13, %v763_v5, %v759_v9  ;;  %v774_v13 = vsel %vm773_vm11, %v1927_v54, %v770_v6 }
 0x142   : > { %v765_v15 = vmul.f32 %v764_v11, %v723_v8  ;;  %v779_v16 = vsel %vm776_vm14, %v778_v7, %v774_v13 }
 0x143   : > { %v780_v20 = vmul.f32 %v779_v16, %v724_v14 }
 0x144   : > { %v784_v19 = vadd.f32 %v1909_v10, %v765_v15 }
 0x145   : > { %v785_v21 = vadd.f32 %v1909_v10, %v780_v20 }
 0x146   : > { %1841 = vmatmul.msk.f32.vlgmr.msra.gmra.mxu0 %vm692_vm1, %v784_v19 }
 0x14e   : > { %1842 = vmatmul.msk.f32.gmra.mxu0 %vm692_vm1, %v785_v21 }
 0x1c3   : > { %v817_v22 = vpop.f32.mrf.mxu0 }
 0x1c4   : > { %v2208_v23 = vadd.f32 %v1910_v17, %v817_v22 }
 0x1c6   : > { %908 = vrot.lane.b32.xlu0 %v2208_v23, %s1987_s18  ;;  %832 = vrot.lane.b32.xlu1 %v2208_v23, %s1988_s20 }
 0x1cb   : > { %v820_v18 = vpop.f32.mrf.mxu0 }
 0x1cc   : > { %v2214_v24 = vadd.f32 %v1910_v17, %v820_v18 }
 0x1ce   : > { %1092 = vrot.lane.b32.xlu0 %v2208_v23, %s1989_s27  ;;  %990 = vrot.lane.b32.xlu1 %v2214_v24, %s1990_s30 }
 0x1d6   : > { %1222 = vrot.lane.b32.xlu0 %v2208_v23, %s1991_s15  ;;  %962 = vrot.lane.b32.xlu1 %v2208_v23, %s1990_s30  ;;  %s1996_s30 = smov 40  }
 0x1de   : > { %1090 = vrot.lane.b32.xlu1 %v2208_v23, %s1992_s16 }
 0x1e6   : > { %1120 = vrot.lane.b32.xlu1 %v2214_v24, %s1989_s27  ;;  %s1995_s27 = smov 48  }
 0x1ee   : > { %1248 = vrot.lane.b32.xlu1 %v2214_v24, %s1993_s26 }
 0x238   : > { %v909_v25 = vpop.permute.xlu0 %908  ;;  %v833_v26 = vpop.permute.xlu1 %832 }
 0x239   : > { %1843 = vmatpush.xpose.msk.msra.mxu1 %vm834_vm15, %v833_v26 }
 0x23c   : > { %1844 = vmatmul.msk.f32.vlgmr.msra.gmra.mxu1 %vm834_vm15, %v2208_v23 }
 0x23d   : > { %929 = vmatpush.msrb.mxu1 %v909_v25 }
 0x240   : > { %v991_v27 = vpop.permute.xlu1 %990  ;;  %v1093_v39 = vpop.permute.xlu0 %1092 }
 0x248   : > { %v963_v28 = vpop.permute.xlu1 %962  ;;  %v1223_v43 = vpop.permute.xlu0 %1222 }
 0x249   : > { %1849 = vmatpush.xpose.msk.msra.mxu1 %vm834_vm15, %v963_v28 }
 0x250   : > { %v1091_v33 = vpop.permute.xlu1 %1090 }
 0x258   : > { %v1121_v34 = vpop.permute.xlu1 %1120 }
 0x259   : > { %1857 = vmatpush.xpose.msk.msrb.mxu0 %vm834_vm15, %v1121_v34 }
 0x260   : > { %v1249_v58 = vpop.permute.xlu1 %1248 }
 0x2b9   : > { %v856_v30 = vpop.f32.mrf.mxu1 }
 0x2ba   : > { %v857_v31 = vadd.f32 %v2232_v29, %v856_v30 }
 0x2bc   : > { %v886_v32 = vsel %vm834_vm15, %v857_v31, -inf }
 0x2bd   : > { %887 = vmax.xlane.f32.xlu2 %v886_v32 }
 0x2d5   : > { %860 = vrot.lane.b32.xlu2 %v2214_v24, %s1988_s20 }
 0x2dd   : > { %988 = vrot.lane.b32.xlu2 %v2214_v24, %s1994_s0 }
 0x2e5   : > { %960 = vrot.lane.b32.xlu2 %v2208_v23, %s1994_s0 }
 0x2ed   : > { %1220 = vrot.lane.b32.xlu2 %v2208_v23, %s1993_s26  ;;  %s1999_s26 = smov 16  }
 0x2f5   : > { %1250 = vrot.lane.b32.xlu2 %v2214_v24, %s1991_s15  ;;  %s2445_s15 = sld [smem:[#allocation4_spill]] }
 0x330   : > { %v888_v35 = vpop.xlane.xlu2 %887 }
 0x331   : > { %v892_v36 = vsub.f32 %v857_v31, %v888_v35 }
 0x333   : > { %v894_v37 = vmul.f32 1.442695, %v892_v36 }
 0x335   : > { %1928 = vpow2.f32 %v894_v37 }
 0x338   : > { %v861_v38 = vpop.permute.xlu2 %860 }
 0x339   : > { %1845 = vmatpush.xpose.msk.msra.mxu2 %vm834_vm15, %v861_v38 }
 0x33b   : > { %v1929_v40 = vpop.eup %1928 }
 0x33c   : > { %1846 = vmatmul.msk.f32.vlgmr.msra.gmra.mxu2 %vm834_vm15, %v2214_v24  ;;  %v898_v41 = vsel %vm834_vm15, %v1929_v40, 0.0 }
 0x33d   : > { %1851 = vmatpush.xpose.msk.msrb.mxu2 %vm834_vm15, %v991_v27  ;;  %899 = vadd.xlane.f32.xlu0 %v898_v41 }
 0x340   : > { %v989_v42 = vpop.permute.xlu2 %988 }
 0x341   : > { %1855 = vmatpush.xpose.msk.msra.mxu2 %vm834_vm15, %v1093_v39 }
 0x344   : > { %1852 = vmatmul.msk.f32.vlgmr.msrb.gmra.mxu2 %vm834_vm15, %v989_v42 }
 0x345   : > { %1861 = vmatpush.xpose.msk.msrb.mxu2 %vm834_vm15, %v1223_v43 }
 0x348   : > { %v961_v44 = vpop.permute.xlu2 %960 }
 0x34c   : > { %1856 = vmatmul.msk.f32.vlgmr.msra.gmra.mxu2 %vm834_vm15, %v1091_v33 }
 0x350   : > { %v1221_v45 = vpop.permute.xlu2 %1220 }
 0x351   : > { %1118 = vrot.lane.b32.xlu0 %v2214_v24, %s1992_s16  ;;  %s1998_s16 = smov 8  }
 0x354   : > { %1862 = vmatmul.msk.f32.vlgmr.msrb.gmra.mxu2 %vm834_vm15, %v1221_v45 }
 0x358   : > { %v1251_v46 = vpop.permute.xlu2 %1250 }
 0x359   : > { %1863 = vmatpush.xpose.msk.msra.mxu0 %vm834_vm15, %v1251_v46 }
 0x3b0   : > { %v900_v47 = vpop.xlane.xlu0 %899 }
 0x3b1   : > { %1930 = vrcp.f32 %v900_v47 }
 0x3b7   : > { %v1931_v48 = vpop.eup %1930 }
 0x3b8   : > { %v906_v49 = vmul.f32 %v1931_v48, %v1929_v40 }
 0x3ba   : > { %1847 = vmatmul.msk.f32.vlgmr.msrb.gmra.mxu1 %vm834_vm15, %v906_v49 }
 0x3bf   : > { %v883_v51 = vpop.f32.mrf.mxu2 }
 0x3c0   : > { %v884_v52 = vadd.f32 %v1912_v50, %v883_v51  ;;  %v1903_v51 = vpack.i.bf16 %v2214_v24, %v2208_v23 }
 0x3c2   : > { %1850 = vmatmul.msk.f32.vlgmr.msra.gmra.mxu1 %vm834_vm15, %v961_v44  ;;  %v889_v53 = vsel %vm834_vm15, %v884_v52, -inf }
 0x3c3   : > { %v1119_v54 = vpop.permute.xlu0 %1118  ;;  %890 = vmax.xlane.f32.xlu0 %v889_v53 }
 0x3c4   : > { %1858 = vmatmul.msk.f32.vlgmr.msrb.gmra.mxu0 %vm834_vm15, %v1119_v54 }
 0x3c7   : > { %v1013_v55 = vpop.f32.mrf.mxu2 }
 0x3c8   : > { %v1014_v56 = vadd.f32 %v1912_v50, %v1013_v55 }
 0x3ca   : > { %v1019_v57 = vsel %vm834_vm15, %v1014_v56, -inf }
 0x3cb   : > { %1020 = vmax.xlane.f32.xlu0 %v1019_v57 }
 0x3cc   : > { %1864 = vmatmul.msk.f32.vlgmr.msra.gmra.mxu0 %vm834_vm15, %v1249_v58 }
 0x3cf   : > { %v1115_v59 = vpop.f32.mrf.mxu2 }
 0x3d0   : > { %v1116_v60 = vadd.f32 %v2232_v29, %v1115_v59 }
 0x3d2   : > { %v1146_v61 = vsel %vm834_vm15, %v1116_v60, -inf }
 0x3d3   : > { %1147 = vmax.xlane.f32.xlu1 %v1146_v61 }
 0x3d7   : > { %v1245_v8 = vpop.f32.mrf.mxu2 }
 0x3d8   : > { %v1246_v11 = vadd.f32 %v2232_v29, %v1245_v8 }
 0x3da   : > { %v1276_v19 = vsel %vm834_vm15, %v1246_v11, -inf }
 0x436   : > { %v891_v63 = vpop.xlane.xlu0 %890 }
 0x437   : > { %v2268_v62 = vpop.f32.mrf.mxu1  ;;  %v893_v4 = vsub.f32 %v884_v52, %v891_v63 }
 0x439   : > { %v896_v10 = vmul.f32 1.442695, %v893_v4 }
 0x43b   : > { %1932 = vpow2.f32 %v896_v10 }
 0x43e   : > { %v1021_v17 = vpop.xlane.xlu0 %1020 }
 0x43f   : > { %v985_v0 = vpop.f32.mrf.mxu1  ;;  %v1023_v18 = vsub.f32 %v1014_v56, %v1021_v17 }
 0x440   : > { %v986_v1 = vadd.f32 %v2232_v29, %v985_v0 }
 0x441   : > { %v1143_v5 = vpop.f32.mrf.mxu0  ;;  %v1933_v22 = vpop.eup %1932  ;;  %v1026_v26 = vmul.f32 1.442695, %v1023_v18 }
 0x442   : > { %v1144_v6 = vadd.f32 %v1912_v50, %v1143_v5  ;;  %v1016_v7 = vsel %vm834_vm15, %v986_v1, -inf  ;;  %v901_v25 = vsel %vm834_vm15, %v1933_v22, 0.0 }
 0x443   : > { %1017 = vmax.xlane.f32.xlu2 %v1016_v7 }
 0x444   : > { %v1149_v9 = vsel %vm834_vm15, %v1144_v6, -inf }
 0x445   : > { %1150 = vmax.xlane.f32.xlu1 %v1149_v9 }
 0x446   : > { %v1148_v13 = vpop.xlane.xlu1 %1147 }
 0x447   : > { %v1152_v14 = vsub.f32 %v1116_v60, %v1148_v13 }
 0x449   : > { %v1273_v15 = vpop.f32.mrf.mxu0  ;;  %v1154_v21 = vmul.f32 1.442695, %v1152_v14 }
 0x44a   : > { %v1274_v16 = vadd.f32 %v1912_v50, %v1273_v15 }
 0x44b   : > { %1277 = vmax.xlane.f32.xlu2 %v1276_v19  ;;  %1934 = vpow2.f32 %v1154_v21 }
 0x44c   : > { %v1279_v20 = vsel %vm834_vm15, %v1274_v16, -inf  ;;  %1936 = vpow2.f32 %v1026_v26 }
 0x44d   : > { %1280 = vmax.xlane.f32.xlu0 %v1279_v20 }
 0x451   : > { %v2277_v27 = vpop.eup %1934 }
 0x452   : > { %v1158_v28 = vsel %vm834_vm15, %v2277_v27, 0.0  ;;  %v2281_v29 = vpop.eup %1936 }
 0x453   : > { %902 = vadd.xlane.f32.xlu2 %v901_v25  ;;  %v1031_v30 = vsel %vm834_vm15, %v2281_v29, 0.0 }
 0x45b   : > { %1159 = vadd.xlane.f32.xlu2 %v1158_v28  ;;  %v1385_v28 = vld [vmem:[%s2445_s15 + $0x18] sm:$0xff] }
 0x45c   : > { %1404 = vmatpush.msra.mxu2 %v1385_v28 }
 0x461   : > { %934 = vrot.lane.b32.xlu0 %v2214_v24, %s1987_s18  ;;  %s1997_s18 = smov 56  }
 0x463   : > { %1032 = vadd.xlane.f32.xlu2 %v1031_v30  ;;  %v1383_v30 = vld [vmem:[%s2445_s15 + $0x8] sm:$0xff] }
 0x469   : > { %1168 = vrot.lane.b32.xlu0 %v2208_v23, %s1995_s27 }
 0x471   : > { %1298 = vrot.lane.b32.xlu0 %v2208_v23, %s1996_s30 }
 0x479   : > { %1324 = vrot.lane.b32.xlu0 %v2214_v24, %s1996_s30 }
 0x4b6   : > { %v1018_v31 = vpop.xlane.xlu2 %1017 }
 0x4b7   : > { %v1022_v32 = vsub.f32 %v986_v1, %v1018_v31  ;;  %v1382_v31 = vld [vmem:[%s2445_s15] sm:$0xff] }
 0x4b8   : > { %v1151_v34 = vpop.xlane.xlu1 %1150 }
 0x4b9   : > { %v1024_v33 = vmul.f32 1.442695, %v1022_v32  ;;  %v1153_v38 = vsub.f32 %v1144_v6, %v1151_v34 }
 0x4bb   : > { %1938 = vpow2.f32 %v1024_v33  ;;  %v1156_v41 = vmul.f32 1.442695, %v1153_v38 }
 0x4be   : > { %v1278_v35 = vpop.xlane.xlu2 %1277 }
 0x4bf   : > { %v1282_v36 = vsub.f32 %v1246_v11, %v1278_v35 }
 0x4c0   : > { %v1281_v45 = vpop.xlane.xlu0 %1280 }
 0x4c1   : > { %v1939_v37 = vpop.eup %1938  ;;  %v1284_v39 = vmul.f32 1.442695, %v1282_v36  ;;  %v1283_v52 = vsub.f32 %v1274_v16, %v1281_v45 }
 0x4c2   : > { %v1028_v40 = vsel %vm834_vm15, %v1939_v37, 0.0 }
 0x4c3   : > { %1940 = vpow2.f32 %v1284_v39  ;;  %1029 = vadd.xlane.f32.xlu1 %v1028_v40  ;;  %v1286_v53 = vmul.f32 1.442695, %v1283_v52 }
 0x4c4   : > { %1942 = vpow2.f32 %v1156_v41 }
 0x4c6   : > { %v903_v42 = vpop.xlane.xlu2 %902 }
 0x4c7   : > { %1944 = vrcp.f32 %v903_v42 }
 0x4c8   : > { %1946 = vpow2.f32 %v1286_v53 }
 0x4c9   : > { %v1941_v43 = vpop.eup %1940 }
 0x4ca   : > { %v1288_v44 = vsel %vm834_vm15, %v1941_v43, 0.0  ;;  %v1943_v46 = vpop.eup %1942 }
 0x4cb   : > { %1289 = vadd.xlane.f32.xlu2 %v1288_v44  ;;  %v1161_v48 = vsel %vm834_vm15, %v1943_v46, 0.0 }
 0x4cd   : > { %v1945_v47 = vpop.eup %1944 }
 0x4ce   : > { %v907_v50 = vmul.f32 %v1945_v47, %v1933_v22  ;;  %v1947_v54 = vpop.eup %1946  ;;  %v1160_v56 = vpop.xlane.xlu2 %1159 }
 0x4cf   : > { %v1291_v55 = vsel %vm834_vm15, %v1947_v54, 0.0 }
 0x4d3   : > { %v935_v49 = vpop.permute.xlu0 %934  ;;  %1162 = vadd.xlane.f32.xlu2 %v1161_v48 }
 0x4d4   : > { %955 = vmatpush.msra.mxu3 %v935_v49 }
 0x4d5   : > { %1848 = vmatmul.msk.f32.vlgmr.msra.gmra.mxu3 %vm834_vm15, %v907_v50 }
 0x4d6   : > { %v1033_v57 = vpop.xlane.xlu2 %1032 }
 0x4d7   : > { %1948 = vrcp.f32 %v1033_v57 }
 0x4db   : > { %v1169_v59 = vpop.permute.xlu0 %1168 }
 0x4dc   : > { %1904 = vrot.lane.b32.xlu1 %v1903_v51, %s1997_s18 }
 0x4dd   : > { %v1949_v63 = vpop.eup %1948 }
 0x4de   : > { %v1037_v5 = vmul.f32 %v1949_v63, %v2281_v29  ;;  %v1384_v29 = vld [vmem:[%s2445_s15 + $0x10] sm:$0xff] }
 0x4df   : > { %1405 = vmatpush.msra.mxu2 %v1384_v29 }
 0x4e1   : > { %1406 = vmatpush.msra.mxu2 %v1383_v30  ;;  %v1915_v30 = vld [vmem:[%s678_s14] ss:$0 sm:$0xff] }
 0x4e3   : > { %v1299_v61 = vpop.permute.xlu0 %1298  ;;  %1407 = vmatpush.msra.mxu2 %v1382_v31 }
 0x4eb   : > { %1194 = vrot.lane.b32.xlu2 %v2214_v24, %s1995_s27  ;;  %v1325_v8 = vpop.permute.xlu0 %1324 }
 0x506   : > { %1292 = vadd.xlane.f32.xlu1 %v1291_v55 }
 0x536   : > { %v1030_v60 = vpop.xlane.xlu1 %1029 }
 0x537   : > { %1950 = vrcp.f32 %v1030_v60 }
 0x538   : > { %1952 = vrcp.f32 %v1160_v56 }
 0x53d   : > { %v1951_v0 = vpop.eup %1950 }
 0x53e   : > { %v1290_v58 = vpop.xlane.xlu2 %1289  ;;  %v1036_v6 = vmul.f32 %v1951_v0, %v1939_v37  ;;  %v1953_v9 = vpop.eup %1952 }
 0x53f   : > { %v1166_v11 = vmul.f32 %v1953_v9, %v2277_v27 }
 0x546   : > { %v1163_v23 = vpop.xlane.xlu2 %1162 }
 0x547   : > { %1954 = vrcp.f32 %v1163_v23 }
 0x548   : > { %1956 = vrcp.f32 %v1290_v58 }
 0x54d   : > { %v1955_v10 = vpop.eup %1954 }
 0x54e   : > { %v1905_v24 = vpop.permute.xlu1 %1904  ;;  %v1195_v7 = vpop.permute.xlu2 %1194  ;;  %v1167_v13 = vmul.f32 %v1955_v10, %v1943_v46 }
 0x54f   : > { %v1907_v1 = vunpack.i.h.bf16 %v1905_v24  ;;  %v1906_v4 = vunpack.i.l.bf16 %v1905_v24  ;;  %v1957_v14 = vpop.eup %1956  ;;  %v1513_v24 = vld [vmem:[%s2130_s2 + $0x10] sm:$0xff] }
 0x550   : > { %v1296_v15 = vmul.f32 %v1957_v14, %v1941_v43 }
 0x551   : > { %1059 = vmatpush.msrb.mxu3 %v1906_v4  ;;  %1085 = vmatpush.msrb.mxu1 %v1907_v1  ;;  %v1512_v4 = vld [vmem:[%s2130_s2 + $0x8] sm:$0xff] }
 0x552   : > { %1853 = vmatmul.msk.f32.vlgmr.msrb.gmra.mxu3 %vm834_vm15, %v1036_v6  ;;  %1854 = vmatmul.msk.f32.vlgmr.msrb.gmra.mxu1 %vm834_vm15, %v1037_v5  ;;  %v1511_v6 = vld [vmem:[%s2130_s2] sm:$0xff] }
 0x553   : > { %1189 = vmatpush.msra.mxu3 %v1169_v59  ;;  %1215 = vmatpush.msra.mxu1 %v1195_v7 }
 0x555   : > { %1319 = vmatpush.msrb.mxu3 %v1299_v61  ;;  %1345 = vmatpush.msrb.mxu1 %v1325_v8  ;;  %v1514_v61 = vld [vmem:[%s2130_s2 + $0x18] sm:$0xff] }
 0x556   : > { %1537 = vmatpush.msrb.mxu0 %v1514_v61 }
 0x558   : > { %v957_v21 = vpop.f32.mrf.mxu3  ;;  %1538 = vmatpush.msrb.mxu0 %v1513_v24  ;;  %v1550_v24 = vld [vmem:[%s2140_s21] sm:$0xff] }
 0x55a   : > { %1859 = vmatmul.msk.f32.vlgmr.msra.gmra.mxu3 %vm834_vm15, %v1166_v11  ;;  %1860 = vmatmul.msk.f32.vlgmr.msra.gmra.mxu1 %vm834_vm15, %v1167_v13 }
 0x55b   : > { %1539 = vmatpush.msrb.mxu0 %v1512_v4 }
 0x55d   : > { %1540 = vmatpush.msrb.mxu0 %v1511_v6 }
 0x562   : > { %1865 = vmatmul.msk.f32.vlgmr.msrb.gmra.mxu3 %vm834_vm15, %v1296_v15 }
 0x579   : > { %v1293_v16 = vpop.xlane.xlu1 %1292 }
 0x57a   : > { %1958 = vrcp.f32 %v1293_v16 }
 0x580   : > { %v1959_v19 = vpop.eup %1958 }
 0x581   : > { %v1297_v20 = vmul.f32 %v1959_v19, %v1947_v54 }
 0x583   : > { %1866 = vmatmul.msk.f32.vlgmr.msrb.gmra.mxu1 %vm834_vm15, %v1297_v20 }
 0x5cf   : > { %v1087_v18 = vpop.f32.mrf.mxu1 }
 0x5d5   : > { %v1061_v17 = vpop.f32.mrf.mxu3 }
 0x5d6   : > { %1352 = vrot.lane.b32.xlu0 %v1061_v17, %s1998_s16 }
 0x5d7   : > { %v1217_v26 = vpop.f32.mrf.mxu1 }
 0x5dd   : > { %v1191_v22 = vpop.f32.mrf.mxu3 }
 0x5de   : > { %1360 = vrot.lane.b32.xlu0 %v1191_v22, %s1999_s26  ;;  %v1914_v22 = vld [vmem:[%s675_s28] ss:$0 sm:$0xff] }
 0x5e5   : > { %v1321_v25 = vpop.f32.mrf.mxu3 }
 0x5e6   : > { %1354 = vrot.lane.b32.xlu0 %v1087_v18, %s1998_s16  ;;  %1368 = vrot.lane.b32.xlu2 %v1321_v25, %s2000_s24  ;;  %s2448_s16 = sld [smem:[#allocation9_spill]] (!%p1873_p5) }
 0x5ee   : > { %1362 = vrot.lane.b32.xlu2 %v1217_v26, %s1999_s26 }
 0x600   : > { %v1347_v27 = vpop.f32.mrf.mxu1 }
 0x601   : > { %1370 = vrot.lane.b32.xlu0 %v1347_v27, %s2000_s24 }
 0x640   : > { %v1369_v35 = vpop.permute.xlu2 %1368 }
 0x648   : > { %v1353_v32 = vpop.permute.xlu0 %1352  ;;  %v1363_v40 = vpop.permute.xlu2 %1362 }
 0x649   : > { %v1374_v33 = vsel %vm834_vm15, %v2268_v62, %v1353_v32  ;;  %v1913_v62 = vld [vmem:[%s2446_s17] ss:$0 sm:$0xff] }
 0x650   : > { %v1361_v34 = vpop.permute.xlu0 %1360 }
 0x651   : > { %v1377_v36 = vsel %vm1376_vm0, %v1374_v33, %v1361_v34 }
 0x652   : > { %v1380_v37 = vsel %vm1379_vm2, %v1377_v36, %v1369_v35 }
 0x653   : > { %1867 = vmatmul.msk.f32.vlgmr.msra.gmra.mxu2 %vm692_vm1, %v1380_v37 }
 0x658   : > { %v1355_v38 = vpop.permute.xlu0 %1354 }
 0x659   : > { %v1375_v39 = vsel %vm834_vm15, %v957_v21, %v1355_v38  ;;  %v1557_v38 = vld [vmem:[%s2140_s21 + $0x38] sm:$0xff]  ;;  %vm1558_vm15 = vcmask 523264  }
 0x65a   : > { %v1378_v42 = vsel %vm1376_vm0, %v1375_v39, %v1363_v40  ;;  %v1556_v39 = vld [vmem:[%s2140_s21 + $0x30] sm:$0xff]  ;;  %1573 = vmatpush.msra.mxu3 %v1557_v38 }
 0x65c   : > { %1574 = vmatpush.msra.mxu3 %v1556_v39 }
 0x673   : > { %v1371_v41 = vpop.permute.xlu0 %1370 }
 0x674   : > { %v1381_v43 = vsel %vm1379_vm2, %v1378_v42, %v1371_v41  ;;  %v1555_v41 = vld [vmem:[%s2140_s21 + $0x28] sm:$0xff] }
 0x675   : > { %1868 = vmatmul.msk.f32.gmra.mxu2 %vm692_vm1, %v1381_v43  ;;  %v1554_v43 = vld [vmem:[%s2140_s21 + $0x20] sm:$0xff]  ;;  %1575 = vmatpush.msra.mxu3 %v1555_v41 }
 0x677   : > { %1576 = vmatpush.msra.mxu3 %v1554_v43 }
 0x6d6   : > { %v1409_v44 = vpop.f32.mrf.mxu2 }
 0x6d7   : > { %v1415_v45 = vadd.f32 %v1409_v44, %v2161_v2 }
 0x6d9   : > { %v2323_v46 = vadd.f32 %v1913_v62, %v1415_v45  ;;  %v1553_v45 = vld [vmem:[%s2140_s21 + $0x18] sm:$0xff] }
 0x6da   : > { %1577 = vmatpush.msra.mxu3 %v1553_v45 }
 0x6db   : > { %v1425_v47 = vsel %vm692_vm1, %v2323_v46, 0.0 }
 0x6dc   : > { %1426 = vadd.xlane.f32.xlu1 %v1425_v47 }
 0x6f8   : > { %v1412_v48 = vpop.f32.mrf.mxu2 }
 0x6f9   : > { %v1416_v49 = vadd.f32 %v1412_v48, %v2163_v3 }
 0x6fb   : > { %v2328_v50 = vadd.f32 %v1913_v62, %v1416_v49 }
 0x6fd   : > { %v1428_v51 = vsel %vm692_vm1, %v2328_v50, 0.0 }
 0x6fe   : > { %1429 = vadd.xlane.f32.xlu2 %v1428_v51 }
 0x74f   : > { %v1427_v52 = vpop.xlane.xlu1 %1426 }
 0x750   : > { %v1431_v53 = vmul.f32 %v1427_v52, %v2169_v12 }
 0x752   : > { %v1433_v2 = vsub.f32 %v2323_v46, %v1431_v53 }
 0x754   : > { %v1435_v54 = vmul.f32 %v1433_v2, %v1433_v2  ;;  %v1448_v28 = vmul.f32 %v1914_v22, %v1433_v2 }
 0x756   : > { %v1437_v55 = vsel %vm692_vm1, %v1435_v54, 0.0 }
 0x757   : > { %1438 = vadd.xlane.f32.xlu0 %v1437_v55 }
 0x771   : > { %v1430_v56 = vpop.xlane.xlu2 %1429 }
 0x772   : > { %v1432_v3 = vmul.f32 %v1430_v56, %v2169_v12 }
 0x774   : > { %v2337_v57 = vsub.f32 %v2328_v50, %v1432_v3 }
 0x776   : > { %v1436_v58 = vmul.f32 %v2337_v57, %v2337_v57 }
 0x778   : > { %v1440_v59 = vsel %vm692_vm1, %v1436_v58, 0.0  ;;  %v1449_v58 = vmul.f32 %v1914_v22, %v2337_v57 }
 0x779   : > { %1441 = vadd.xlane.f32.xlu1 %v1440_v59 }
 0x7ca   : > { %v1439_v60 = vpop.xlane.xlu0 %1438 }
 0x7cb   : > { %v1443_v23 = vmul.f32 0.032258064, %v1439_v60 }
 0x7cd   : > { %1960 = vrsqrt.f32 %v1443_v23  ;;  %vm1457_vm3 = vcmp.eq.f32.partialorder %v1443_v23, inf  ;;  %v1460_v10 = vand.u32 2147483648, %v1443_v23  ;;  %vm1459_vm4 = vcmp.eq.f32.partialorder %v1443_v23, 0.0 }
 0x7d3   : > { %v1961_v63 = vpop.eup %1960 }
 0x7d4   : > { %v1451_v0 = vmul.f32 %v1961_v63, %v1443_v23 }
 0x7d6   : > { %v1452_v1 = vmul.f32 %v1961_v63, %v1451_v0  ;;  %v1551_v0 = vld [vmem:[%s2140_s21 + $0x8] sm:$0xff] }
 0x7d8   : > { %v1453_v5 = vmul.f32 0.5, %v1452_v1  ;;  %v1916_v1 = vld [vmem:[%s664_s4] ss:$0 sm:$0xff] }
 0x7da   : > { %v1454_v7 = vsub.f32 1.5, %v1453_v5 }
 0x7dc   : > { %v1455_v8 = vmul.f32 %v1961_v63, %v1454_v7  ;;  %v1552_v63 = vld [vmem:[%s2140_s21 + $0x10] sm:$0xff] }
 0x7dd   : > { %1578 = vmatpush.msra.mxu3 %v1552_v63 }
 0x7de   : > { %v1456_v9 = vmul.f32 %v1455_v8, %v1443_v23 }
 0x7df   : > { %1579 = vmatpush.msra.mxu3 %v1551_v0 }
 0x7e0   : > { %v1458_v11 = vsel %vm1457_vm3, %v1443_v23, %v1456_v9  ;;  %v1917_v9 = vld [vmem:[%s672_s25] ss:$0 sm:$0xff] }
 0x7e1   : > { %v1461_v13 = vsel %vm1459_vm4, %v1460_v10, %v1458_v11  ;;  %1580 = vmatpush.msra.mxu3 %v1550_v24 }
 0x7e2   : > { %v1474_v14 = vadd.f32 1e-06, %v1461_v13 }
 0x7e4   : > { %1962 = vrcp.f32 %v1474_v14  ;;  %v1487_v17 = vand.u32 2147483648, %v1474_v14  ;;  %v1485_v25 = vand.u32 2147483647, %v1474_v14  ;;  %vm1481_vm6 = vweird.f32 %v1474_v14 }
 0x7e6   : > { %v1488_v27 = vor.u32 1.1754944e-38, %v1487_v17  ;;  %vm1486_vm8 = vcmp.eq.f32.partialorder %v1485_v25, 8.507059e+37 }
 0x7ea   : > { %v1963_v15 = vpop.eup %1962 }
 0x7eb   : > { %v1477_v16 = vmul.f32 %v1963_v15, %v1474_v14  ;;  %vm1482_vm5 = vweird.f32 %v1963_v15 }
 0x7ec   : > { %v1442_v19 = vpop.xlane.xlu1 %1441  ;;  %vm1483_vm7 = vmor %vm1481_vm6, %vm1482_vm5 }
 0x7ed   : > { %v1444_v20 = vmul.f32 0.032258064, %v1442_v19  ;;  %v1478_v21 = vsub.f32 1.0, %v1477_v16 }
 0x7ef   : > { %1964 = vrsqrt.f32 %v1444_v20  ;;  %v1479_v18 = vmul.f32 %v1963_v15, %v1478_v21  ;;  %vm1469_vm9 = vcmp.eq.f32.partialorder %v1444_v20, inf  ;;  %v1472_v44 = vand.u32 2147483648, %v1444_v20 }
 0x7f0   : > { %vm1471_vm10 = vcmp.eq.f32.partialorder %v1444_v20, 0.0 }
 0x7f1   : > { %v1480_v26 = vadd.f32 %v1963_v15, %v1479_v18 }
 0x7f3   : > { %v1484_v29 = vsel %vm1483_vm7, %v1963_v15, %v1480_v26 }
 0x7f4   : > { %v1489_v32 = vsel %vm1486_vm8, %v1488_v27, %v1484_v29 }
 0x7f5   : > { %v1965_v31 = vpop.eup %1964  ;;  %v1490_v34 = vmul.f32 %v1489_v32, %v1448_v28 }
 0x7f6   : > { %v1463_v33 = vmul.f32 %v1965_v31, %v1444_v20 }
 0x7f7   : > { %v1509_v36 = vadd.f32 %v1915_v30, %v1490_v34 }
 0x7f8   : > { %v1464_v35 = vmul.f32 %v1965_v31, %v1463_v33 }
 0x7f9   : > { %1869 = vmatmul.msk.f32.vlgmr.msrb.gmra.mxu0 %vm692_vm1, %v1509_v36 }
 0x7fa   : > { %v1465_v37 = vmul.f32 0.5, %v1464_v35 }
 0x7fc   : > { %v1466_v40 = vsub.f32 1.5, %v1465_v37 }
 0x7fe   : > { %v1467_v42 = vmul.f32 %v1965_v31, %v1466_v40 }
 0x800   : > { %v1468_v62 = vmul.f32 %v1467_v42, %v1444_v20 }
 0x802   : > { %v1470_v47 = vsel %vm1469_vm9, %v1444_v20, %v1468_v62 }
 0x803   : > { %v1473_v48 = vsel %vm1471_vm10, %v1472_v44, %v1470_v47 }
 0x804   : > { %v1475_v49 = vadd.f32 1e-06, %v1473_v48 }
 0x806   : > { %1966 = vrcp.f32 %v1475_v49  ;;  %v1502_v2 = vand.u32 2147483648, %v1475_v49  ;;  %v1500_v55 = vand.u32 2147483647, %v1475_v49  ;;  %vm1496_vm12 = vweird.f32 %v1475_v49 }
 0x808   : > { %v1503_v3 = vor.u32 1.1754944e-38, %v1502_v2  ;;  %vm1501_vm14 = vcmp.eq.f32.partialorder %v1500_v55, 8.507059e+37 }
 0x80c   : > { %v1967_v51 = vpop.eup %1966 }
 0x80d   : > { %v1492_v52 = vmul.f32 %v1967_v51, %v1475_v49  ;;  %vm1497_vm11 = vweird.f32 %v1967_v51 }
 0x80e   : > { %vm1498_vm13 = vmor %vm1496_vm12, %vm1497_vm11 }
 0x80f   : > { %v1493_v53 = vsub.f32 1.0, %v1492_v52 }
 0x811   : > { %v1494_v54 = vmul.f32 %v1967_v51, %v1493_v53 }
 0x813   : > { %v1495_v56 = vadd.f32 %v1967_v51, %v1494_v54 }
 0x815   : > { %v1499_v59 = vsel %vm1498_vm13, %v1967_v51, %v1495_v56 }
 0x816   : > { %v1504_v60 = vsel %vm1501_vm14, %v1503_v3, %v1499_v59 }
 0x817   : > { %v1505_v23 = vmul.f32 %v1504_v60, %v1449_v58 }
 0x819   : > { %v1510_v61 = vadd.f32 %v1915_v30, %v1505_v23 }
 0x81b   : > { %1870 = vmatmul.msk.f32.gmra.mxu0 %vm692_vm1, %v1510_v61 }
 0x876   : > { %v1542_v57 = vpop.f32.mrf.mxu0 }
 0x877   : > { %v1543_v4 = vadd.f32 %v1916_v1, %v1542_v57 }
 0x879   : > { %v1548_v5 = vmax.f32 %v1543_v4, 0.0 }
 0x87b   : > { %1871 = vmatmul.msk.f32.vlgmr.msra.gmra.mxu3 %vm1558_vm15, %v1548_v5 }
 0x898   : > { %v1545_v6 = vpop.f32.mrf.mxu0 }
 0x899   : > { %v1546_v7 = vadd.f32 %v1916_v1, %v1545_v6 }
 0x89b   : > { %v1549_v8 = vmax.f32 %v1546_v7, 0.0 }
 0x89d   : > { %1872 = vmatmul.msk.f32.gmra.mxu3 %vm1558_vm15, %v1549_v8 }
 0x8fe   : > { %v1582_v10 = vpop.f32.mrf.mxu3 }
 0x8ff   : > { %v1588_v11 = vadd.f32 %v1582_v10, %v2323_v46 }
 0x901   : > { %v1594_v13 = vadd.f32 %v1917_v9, %v1588_v11 }
 0x903   : > { %1596 = vst.msk [vmem:[#allocation2] sm:$0xff] %vm692_vm1, %v1594_v13 }
 0x920   : > { %v1585_v14 = vpop.f32.mrf.mxu3 }
 0x921   : > { %v1589_v15 = vadd.f32 %v1585_v14, %v2328_v50  ;;  %1601 = sbr.rel (%p1873_p5) target bundleno = 2637 (0xa4d), region = 92 }
 0x923   : > { %v1595_v16 = vadd.f32 %v1917_v9, %v1589_v15 }
 0x925   : > { %1597 = vst.msk [vmem:[#allocation2 + $0x8] sm:$0xff] %vm692_vm1, %v1595_v16 }
 0x926   : > { %v1604_v19 = vsel %vm692_vm1, %v1594_v13, 0.0  ;;  %v1607_v20 = vsel %vm692_vm1, %v1595_v16, 0.0  ;;  %v1968_v58 = vld [vmem:[%s2447_s22] ss:$0 sm:$0xff] }
 0x927   : > { %1605 = vadd.xlane.f32.xlu0 %v1604_v19  ;;  %v1969_v1 = vld [vmem:[%s2448_s16] ss:$0 sm:$0xff] }
 0x92f   : > { %1608 = vadd.xlane.f32.xlu0 %v1607_v20 }
 0x99a   : > { %v1606_v21 = vpop.xlane.xlu0 %1605 }
 0x99b   : > { %v1610_v46 = vmul.f32 %v1606_v21, %v2169_v12 }
 0x99d   : > { %v1612_v17 = vsub.f32 %v1594_v13, %v1610_v46 }
 0x99f   : > { %v1614_v22 = vmul.f32 %v1612_v17, %v1612_v17  ;;  %v1627_v0 = vmul.f32 %v1968_v58, %v1612_v17 }
 0x9a1   : > { %v1616_v18 = vsel %vm692_vm1, %v1614_v22, 0.0 }
 0x9a2   : > { %1617 = vadd.xlane.f32.xlu1 %v1616_v18  ;;  %v1609_v50 = vpop.xlane.xlu0 %1608 }
 0x9a3   : > { %v1611_v25 = vmul.f32 %v1609_v50, %v2169_v12 }
 0x9a5   : > { %v2387_v26 = vsub.f32 %v1595_v16, %v1611_v25 }
 0x9a7   : > { %v1615_v27 = vmul.f32 %v2387_v26, %v2387_v26  ;;  %v1628_v14 = vmul.f32 %v1968_v58, %v2387_v26 }
 0x9a9   : > { %v1619_v28 = vsel %vm692_vm1, %v1615_v27, 0.0 }
 0x9aa   : > { %1620 = vadd.xlane.f32.xlu1 %v1619_v28 }
 0xa15   : > { %v1618_v29 = vpop.xlane.xlu1 %1617 }
 0xa16   : > { %v1622_v30 = vmul.f32 0.032258064, %v1618_v29 }
 0xa18   : > { %1970 = vrsqrt.f32 %v1622_v30  ;;  %vm1636_vm0 = vcmp.eq.f32.partialorder %v1622_v30, inf  ;;  %v1639_v42 = vand.u32 2147483648, %v1622_v30  ;;  %vm1638_vm2 = vcmp.eq.f32.partialorder %v1622_v30, 0.0 }
 0xa1d   : > { %v1621_v31 = vpop.xlane.xlu1 %1620 }
 0xa1e   : > { %v1971_v32 = vpop.eup %1970  ;;  %v1623_v33 = vmul.f32 0.032258064, %v1621_v31 }
 0xa1f   : > { %v1630_v34 = vmul.f32 %v1971_v32, %v1622_v30 }
 0xa20   : > { %1972 = vrsqrt.f32 %v1623_v33  ;;  %vm1648_vm3 = vcmp.eq.f32.partialorder %v1623_v33, inf  ;;  %v1651_v51 = vand.u32 2147483648, %v1623_v33  ;;  %vm1650_vm4 = vcmp.eq.f32.partialorder %v1623_v33, 0.0 }
 0xa21   : > { %v1631_v35 = vmul.f32 %v1971_v32, %v1630_v34 }
 0xa23   : > { %v1632_v36 = vmul.f32 0.5, %v1631_v35 }
 0xa25   : > { %v1633_v37 = vsub.f32 1.5, %v1632_v36 }
 0xa26   : > { %v1973_v12 = vpop.eup %1972 }
 0xa27   : > { %v1634_v38 = vmul.f32 %v1971_v32, %v1633_v37  ;;  %v1642_v39 = vmul.f32 %v1973_v12, %v1623_v33 }
 0xa29   : > { %v1635_v40 = vmul.f32 %v1634_v38, %v1622_v30  ;;  %v1643_v41 = vmul.f32 %v1973_v12, %v1642_v39 }
 0xa2b   : > { %v1637_v43 = vsel %vm1636_vm0, %v1622_v30, %v1635_v40  ;;  %v1644_v62 = vmul.f32 0.5, %v1643_v41 }
 0xa2c   : > { %v1640_v44 = vsel %vm1638_vm2, %v1639_v42, %v1637_v43 }
 0xa2d   : > { %v1653_v45 = vadd.f32 1e-06, %v1640_v44  ;;  %v1645_v47 = vsub.f32 1.5, %v1644_v62 }
 0xa2f   : > { %1974 = vrcp.f32 %v1653_v45  ;;  %v1646_v48 = vmul.f32 %v1973_v12, %v1645_v47  ;;  %v1666_v3 = vand.u32 2147483648, %v1653_v45  ;;  %v1664_v60 = vand.u32 2147483647, %v1653_v45 }
 0xa30   : > { %vm1660_vm6 = vweird.f32 %v1653_v45 }
 0xa31   : > { %v1647_v49 = vmul.f32 %v1646_v48, %v1623_v33  ;;  %v1667_v61 = vor.u32 1.1754944e-38, %v1666_v3  ;;  %vm1665_vm8 = vcmp.eq.f32.partialorder %v1664_v60, 8.507059e+37 }
 0xa33   : > { %v1649_v52 = vsel %vm1648_vm3, %v1623_v33, %v1647_v49 }
 0xa34   : > { %v1652_v2 = vsel %vm1650_vm4, %v1651_v51, %v1649_v52 }
 0xa35   : > { %v1975_v53 = vpop.eup %1974  ;;  %v1654_v55 = vadd.f32 1e-06, %v1652_v2 }
 0xa36   : > { %v1656_v54 = vmul.f32 %v1975_v53, %v1653_v45  ;;  %vm1661_vm5 = vweird.f32 %v1975_v53 }
 0xa37   : > { %1976 = vrcp.f32 %v1654_v55  ;;  %vm1662_vm7 = vmor %vm1660_vm6, %vm1661_vm5  ;;  %v1681_v8 = vand.u32 2147483648, %v1654_v55  ;;  %v1679_v10 = vand.u32 2147483647, %v1654_v55  ;;  %vm1675_vm10 = vweird.f32 %v1654_v55 }
 0xa38   : > { %v1657_v56 = vsub.f32 1.0, %v1656_v54 }
 0xa39   : > { %v1682_v13 = vor.u32 1.1754944e-38, %v1681_v8  ;;  %vm1680_vm12 = vcmp.eq.f32.partialorder %v1679_v10, 8.507059e+37 }
 0xa3a   : > { %v1658_v59 = vmul.f32 %v1975_v53, %v1657_v56 }
 0xa3c   : > { %v1659_v23 = vadd.f32 %v1975_v53, %v1658_v59 }
 0xa3d   : > { %v1977_v63 = vpop.eup %1976 }
 0xa3e   : > { %v1663_v24 = vsel %vm1662_vm7, %v1975_v53, %v1659_v23  ;;  %v1671_v4 = vmul.f32 %v1977_v63, %v1654_v55  ;;  %vm1676_vm9 = vweird.f32 %v1977_v63 }
 0xa3f   : > { %v1668_v57 = vsel %vm1665_vm8, %v1667_v61, %v1663_v24  ;;  %vm1677_vm11 = vmor %vm1675_vm10, %vm1676_vm9 }
 0xa40   : > { %v1669_v5 = vmul.f32 %v1668_v57, %v1627_v0  ;;  %v1672_v6 = vsub.f32 1.0, %v1671_v4 }
 0xa42   : > { %v1688_v7 = vadd.f32 %v1969_v1, %v1669_v5  ;;  %v1673_v9 = vmul.f32 %v1977_v63, %v1672_v6 }
 0xa44   : > { %1690 = vst.msk [vmem:[%s2449_s29] sm:$0xff] %vm692_vm1, %v1688_v7  ;;  %v1674_v11 = vadd.f32 %v1977_v63, %v1673_v9 }
 0xa46   : > { %v1678_v15 = vsel %vm1677_vm11, %v1977_v63, %v1674_v11 }
 0xa47   : > { %v1683_v16 = vsel %vm1680_vm12, %v1682_v13, %v1678_v15 }
 0xa48   : > { %v1684_v19 = vmul.f32 %v1683_v16, %v1628_v14 }
 0xa4a   : > { %v1689_v20 = vadd.f32 %v1969_v1, %v1684_v19 }
 0xa4c   : > { %1691 = vst.msk [vmem:[%s2449_s29 + $0x8] sm:$0xff] %vm692_vm1, %v1689_v20 }
 0xa4d PF: > { %s2450_s2 = sld [smem:[#allocation3_spill]] }
 0xa53   : > { %s26_s21 = sadd.s32 1, %s2450_s2  }
 0xa54   : > { %p23_p6 = scmp.ge.s32.totalorder %s26_s21, 4  }
 0xa56   :  { %25 = sbr.rel (!%p23_p6) target bundleno = 7 (0x7), region = 151 }

// kernel: encoder_decoder_forward.3
= control target key start
LH: loop header
LB: loop body
LE: loop exit
PB: predicated region body
PF: predicated region fallthrough
CT: control target
= control target key end

     0   :  { %s3965_s0 = inlined_call_operand.vmem [shape: f32[16,32], index: 0, kind: input, shape index: {}]   ;;  %s3966_s1 = inlined_call_operand.vmem [shape: f32[16,32], index: 1, kind: input, shape index: {}]   ;;  %s3967_s2 = inlined_call_operand.vmem [shape: f32[2,8,8], index: 2, kind: input, shape index: {}]   ;;  %s3968_s3 = inlined_call_operand.vmem [shape: f32[2,1,8], index: 3, kind: input, shape index: {}]   ;;  %s3969_s4 = inlined_call_operand.vmem [shape: f32[2,32,96], index: 4, kind: input, shape index: {}]   ;;  %s3970_s5 = inlined_call_operand.vmem [shape: f32[2,1,96], index: 5, kind: input, shape index: {}]   ;;  %s3971_s6 = inlined_call_operand.vmem [shape: f32[2,32,32], index: 6, kind: input, shape index: {}]   ;;  %s3972_s7 = inlined_call_operand.vmem [shape: f32[2,1,32], index: 7, kind: input, shape index: {}]   ;;  %s3973_s8 = inlined_call_operand.vmem [shape: f32[2,1,32], index: 8, kind: input, shape index: {}]   ;;  %s3974_s9 = inlined_call_operand.vmem [shape: f32[2,1,32], index: 9, kind: input, shape index: {}]   ;;  %s3975_s10 = inlined_call_operand.vmem [shape: f32[2,32,96], index: 10, kind: input, shape index: {}]   ;;  %s3976_s11 = inlined_call_operand.vmem [shape: f32[2,1,96], index: 11, kind: input, shape index: {}]   ;;  %s3977_s12 = inlined_call_operand.vmem [shape: f32[2,32,32], index: 12, kind: input, shape index: {}]   ;;  %s3978_s13 = inlined_call_operand.vmem [shape: f32[2,1,32], index: 13, kind: input, shape index: {}]   ;;  %s3979_s14 = inlined_call_operand.vmem [shape: f32[2,1,32], index: 14, kind: input, shape index: {}]   ;;  %s3980_s15 = inlined_call_operand.vmem [shape: f32[2,1,32], index: 15, kind: input, shape index: {}]   ;;  %s3981_s16 = inlined_call_operand.vmem [shape: f32[2,32,64], index: 16, kind: input, shape index: {}]   ;;  %s3982_s17 = inlined_call_operand.vmem [shape: f32[2,1,64], index: 17, kind: input, shape index: {}]   ;;  %s3983_s18 = inlined_call_operand.vmem [shape: f32[2,64,32], index: 18, kind: input, shape index: {}]   ;;  %s3984_s19 = inlined_call_operand.vmem [shape: f32[2,1,32], index: 19, kind: input, shape index: {}]   ;;  %s3985_s20 = inlined_call_operand.vmem [shape: f32[2,1,32], index: 20, kind: input, shape index: {}]   ;;  %s3986_s21 = inlined_call_operand.vmem [shape: f32[2,1,32], index: 21, kind: input, shape index: {}]   ;;  %s3987_s22 = inlined_call_operand.vmem [shape: f32[1,32], index: 22, kind: input, shape index: {}]   ;;  %s3988_s23 = inlined_call_operand.vmem [shape: f32[1,32], index: 23, kind: input, shape index: {}]   ;;  %s3989_s24 = inlined_call_operand.hbm [shape: f32[16,32], index: 24, kind: output, shape index: {}]  }
   0x1   :  { %4002 = sst [smem:[#allocation10_spill]] %s3965_s0 }
   0x2   :  { %4003 = sst [smem:[#allocation11_spill]] %s3966_s1 }
   0x3   :  { %4004 = sst [smem:[#allocation12_spill]] %s3967_s2 }
   0x4   :  { %4005 = sst [smem:[#allocation13_spill]] %s3968_s3 }
   0x5   :  { %4006 = sst [smem:[#allocation14_spill]] %s3969_s4 }
   0x6   :  { %4007 = sst [smem:[#allocation15_spill]] %s3970_s5 }
   0x7   :  { %4008 = sst [smem:[#allocation16_spill]] %s3971_s6 }
   0x8   :  { %4009 = sst [smem:[#allocation17_spill]] %s3972_s7 }
   0x9   :  { %4010 = sst [smem:[#allocation18_spill]] %s3973_s8 }
   0xa   :  { %4011 = sst [smem:[#allocation19_spill]] %s3975_s10 }
   0xb   :  { %4012 = sst [smem:[#allocation20_spill]] %s3977_s12 }
   0xc   :  { %4013 = sst [smem:[#allocation21_spill]] %s3986_s21 }
   0xd   :  { %4014 = sst [smem:[#allocation22_spill]] %s3987_s22 }
   0xe   :  { %4015 = sst [smem:[#allocation23_spill]] %s3988_s23 }
   0xf   :  { %4016 = sst [smem:[#allocation24_spill]] %s3989_s24 }
  0x10   :  { %29 = vsyncpa [#allocation4], 0  ;;  %s3429_s5 = smov 0  }
  0x11 LB: > { %4017 = sst [smem:[#allocation6_spill]] %s3285_s5  ;;  %s3435_s26 = sadd.s32 4294967295, %s3285_s5   ;;  %s3285_s5 = sphi %s3429_s5, %s35_s5  }
  0x12   : > { %4018 = sst [smem:[#allocation7_spill]] %s3435_s26  ;;  %p2990_p0 = scmp.ge.s32.totalorder %s3285_s5, 1 }
  0x13   : > { %p804_p1 = scmp.lt.s32.totalorder %s3285_s5, 3 }
  0x15   : > { %p805_p2 = pnand %p2990_p0, %p804_p1 }
  0x17   : > { %808 = sbr.rel (%p805_p2) target bundleno = 3704 (0xe78), region = 116 }
  0x1c   : > { %p926_p3 = scmp.lt.s32.totalorder %s3435_s26, 1  ;;  %s4020_s3 = sld [smem:[#allocation14_spill]] }
  0x1d   : > { %s4022_s1 = sld [smem:[#allocation16_spill]] }
  0x1e   : > { %s3441_s27 = scalar_select %p926_p3, %s3435_s26, 1 }
  0x1f   : > { %s4026_s10 = sld [smem:[#allocation19_spill]] }
  0x20   : > { %s3071_s28 = sshll.u32 %s3441_s27, 5  ;;  %s4027_s12 = sld [smem:[#allocation20_spill]] }
  0x21   : > { %s4029_s23 = sld [smem:[#allocation7_spill]] }
  0x22   : > { %s3451_s25 = scalar_lea.vmem %s4020_s3, %s3071_s28 }
  0x23   : > { %4021 = sst [smem:[#allocation8_spill]] %s3451_s25  ;;  %s3456_s5 = scalar_lea.vmem %s4022_s1, %s3071_s28 }
  0x24   : > { %4023 = sst [smem:[#allocation9_spill]] %s3456_s5  ;;  %s3499_s1 = scalar_lea.vmem %s3981_s16, %s3071_s28 }
  0x25   : > { %s3473_s8 = scalar_lea.vmem %s4026_s10, %s3071_s28  ;;  %s3076_s10 = sshll.u32 %s3441_s27, 6 }
  0x26   : > { %s3482_s22 = scalar_lea.vmem %s4027_s12, %s3071_s28  ;;  %s3509_s2 = scalar_lea.vmem %s3983_s18, %s3076_s10 }
  0x27   : > { %p3003_p4 = scmp.ne.s32.totalorder %s4029_s23, 0 }
  0x28   : > { %s4030_s21 = sld [smem:[#allocation10_spill]] (!%p3003_p4) }
  0x29   : > { %995 = sbr.rel (%p3003_p4) target bundleno = 49 (0x31), region = 120 }
  0x2e   : > { %v996_v0 = vld [vmem:[%s4030_s21] sm:$0xff]  ;;  %vm998_vm0 = vcmask 261120   ;;  %v997_v1 = vld [vmem:[%s4030_s21 + $0x8] sm:$0xff] }
  0x2f   : > { %999 = vst.msk [vmem:[#allocation2] sm:$0xff] %vm998_vm0, %v996_v0 }
  0x30   : > { %1000 = vst.msk [vmem:[#allocation2 + $0x8] sm:$0xff] %vm998_vm0, %v997_v1 }
  0x31 PF: > { %vm1007_vm1 = vcmask 261120   ;;  %v3287_v6 = vmov 32.0   ;;  %s4031_s5 = sld [smem:[#allocation8_spill]]  ;;  %s4034_s4 = scalar_lea.vmem %s3974_s9, %s3441_s27  ;;  %vm1143_vm15 = vcmask 64512   ;;  %vm1685_vm0 = vcmask 130048  }
  0x32   : > { %3147 = vrcp.f32 %v3287_v6  ;;  %s4032_s0 = sld [smem:[#allocation18_spill]]  ;;  %v3134_v1 = vld [vmem:[%s4034_s4] ss:$0 sm:$0xff]  ;;  %s3289_s26 = smov 120  }
  0x33   : > { %s4035_s10 = sld [smem:[#allocation15_spill]]  ;;  %s3290_s30 = smov 88  }
  0x34   : > { %s3293_s3 = smov 72   ;;  %s3294_s28 = smov 80  }
  0x35   : > { %s3295_s4 = smov 64   ;;  %s3296_s25 = smov 48  }
  0x36   : > { %v3530_v2 = vld [vmem:[#allocation2] sm:$0xff]  ;;  %s3297_s23 = smov 56   ;;  %s3298_s24 = smov 40  }
  0x37   : > { %v1008_v3 = vsel %vm1007_vm1, %v3530_v2, 0.0  ;;  %v3534_v4 = vld [vmem:[#allocation2 + $0x8] sm:$0xff]  ;;  %v1104_v23 = vld [vmem:[%s4031_s5 + $0x18] sm:$0xff]  ;;  %v1103_v24 = vld [vmem:[%s4031_s5 + $0x10] sm:$0xff]  ;;  %s4039_s12 = sld [smem:[#allocation17_spill]] }
  0x38   : > { %1009 = vadd.xlane.f32.xlu0 %v1008_v3  ;;  %v1011_v5 = vsel %vm1007_vm1, %v3534_v4, 0.0  ;;  %v3148_v7 = vpop.eup %3147  ;;  %1127 = vmatpush.msra.mxu0 %v1104_v23  ;;  %v1102_v25 = vld [vmem:[%s4031_s5 + $0x8] sm:$0xff]  ;;  %v1101_v27 = vld [vmem:[%s4031_s5] sm:$0xff]  ;;  %s4033_s7 = scalar_lea.vmem %s4032_s0, %s3441_s27  ;;  %s3288_s5 = smov 96  }
  0x39   : > { %v1015_v8 = vmul.f32 32.0, %v3148_v7  ;;  %vm1019_vm2 = vweird.f32 %v3148_v7  ;;  %v3133_v57 = vld [vmem:[%s4033_s7] ss:$0 sm:$0xff]  ;;  %s4036_s6 = scalar_lea.vmem %s4035_s10, %s3441_s27  ;;  %s3291_s0 = smov 104  }
  0x3a   : > { %1128 = vmatpush.msra.mxu0 %v1103_v24  ;;  %s3292_s7 = smov 112   ;;  %s4037_s10 = sld [smem:[#allocation12_spill]] }
  0x3b   : > { %v1016_v9 = vsub.f32 1.0, %v1015_v8 }
  0x3c   : > { %1129 = vmatpush.msra.mxu0 %v1102_v25 }
  0x3d   : > { %v1017_v10 = vmul.f32 %v3148_v7, %v1016_v9  ;;  %s4040_s29 = scalar_lea.vmem %s4039_s12, %s3441_s27 }
  0x3e   : > { %1130 = vmatpush.msra.mxu0 %v1101_v27 }
  0x3f   : > { %v1018_v11 = vadd.f32 %v3148_v7, %v1017_v10 }
  0x40   : > { %1012 = vadd.xlane.f32.xlu0 %v1011_v5 }
  0x41   : > { %v3538_v12 = vsel %vm1019_vm2, %v3148_v7, %v1018_v11  ;;  %vm1688_vm2 = vcmask 195584  }
  0xab   : > { %v1010_v13 = vpop.xlane.xlu0 %1009 }
  0xac   : > { %v1021_v14 = vmul.f32 %v3538_v12, %v1010_v13 }
  0xae   : > { %v3542_v15 = vsub.f32 %v3530_v2, %v1021_v14 }
  0xb0   : > { %v1025_v16 = vmul.f32 %v3542_v15, %v3542_v15  ;;  %v1038_v63 = vmul.f32 %v3133_v57, %v3542_v15 }
  0xb2   : > { %v1027_v17 = vsel %vm1007_vm1, %v1025_v16, 0.0 }
  0xb3   : > { %1028 = vadd.xlane.f32.xlu1 %v1027_v17  ;;  %v1013_v18 = vpop.xlane.xlu0 %1012 }
  0xb4   : > { %v1022_v19 = vmul.f32 %v3538_v12, %v1013_v18 }
  0xb6   : > { %v3549_v20 = vsub.f32 %v3534_v4, %v1022_v19 }
  0xb8   : > { %v1026_v21 = vmul.f32 %v3549_v20, %v3549_v20  ;;  %v1039_v15 = vmul.f32 %v3133_v57, %v3549_v20 }
  0xba   : > { %v1030_v22 = vsel %vm1007_vm1, %v1026_v21, 0.0  ;;  %v3135_v21 = vld [vmem:[%s4036_s6] ss:$0 sm:$0xff]  ;;  %s3299_s6 = smov 8  }
  0xbb   : > { %1031 = vadd.xlane.f32.xlu1 %v1030_v22 }
 0x126   : > { %v1029_v26 = vpop.xlane.xlu1 %1028 }
 0x127   : > { %v1033_v28 = vmul.f32 0.032258064, %v1029_v26 }
 0x129   : > { %3149 = vrsqrt.f32 %v1033_v28  ;;  %vm1047_vm3 = vcmp.eq.f32.partialorder %v1033_v28, inf  ;;  %v1050_v41 = vand.u32 2147483648, %v1033_v28  ;;  %vm1049_vm4 = vcmp.eq.f32.partialorder %v1033_v28, 0.0 }
 0x12e   : > { %v1032_v29 = vpop.xlane.xlu1 %1031 }
 0x12f   : > { %v3150_v30 = vpop.eup %3149  ;;  %v1034_v31 = vmul.f32 0.032258064, %v1032_v29 }
 0x130   : > { %v1041_v32 = vmul.f32 %v3150_v30, %v1033_v28 }
 0x131   : > { %3151 = vrsqrt.f32 %v1034_v31  ;;  %vm1059_vm5 = vcmp.eq.f32.partialorder %v1034_v31, inf  ;;  %v1062_v48 = vand.u32 2147483648, %v1034_v31  ;;  %vm1061_vm6 = vcmp.eq.f32.partialorder %v1034_v31, 0.0 }
 0x132   : > { %v1042_v33 = vmul.f32 %v3150_v30, %v1041_v32 }
 0x134   : > { %v1043_v34 = vmul.f32 0.5, %v1042_v33 }
 0x136   : > { %v1044_v35 = vsub.f32 1.5, %v1043_v34 }
 0x137   : > { %v3152_v36 = vpop.eup %3151 }
 0x138   : > { %v1045_v37 = vmul.f32 %v3150_v30, %v1044_v35  ;;  %v1053_v38 = vmul.f32 %v3152_v36, %v1034_v31 }
 0x13a   : > { %v1046_v39 = vmul.f32 %v1045_v37, %v1033_v28  ;;  %v1054_v40 = vmul.f32 %v3152_v36, %v1053_v38 }
 0x13c   : > { %v1055_v42 = vmul.f32 0.5, %v1054_v40  ;;  %v1048_v43 = vsel %vm1047_vm3, %v1033_v28, %v1046_v39 }
 0x13d   : > { %v1051_v44 = vsel %vm1049_vm4, %v1050_v41, %v1048_v43  ;;  %v1138_v43 = vld [vmem:[%s4037_s10] sm:$0xff] }
 0x13e   : > { %v1056_v45 = vsub.f32 1.5, %v1055_v42  ;;  %v1064_v46 = vadd.f32 1e-06, %v1051_v44 }
 0x140   : > { %v1057_v47 = vmul.f32 %v3152_v36, %v1056_v45  ;;  %3153 = vrcp.f32 %v1064_v46  ;;  %v1077_v56 = vand.u32 2147483648, %v1064_v46  ;;  %v1075_v59 = vand.u32 2147483647, %v1064_v46 }
 0x141   : > { %vm1071_vm8 = vweird.f32 %v1064_v46 }
 0x142   : > { %v1058_v49 = vmul.f32 %v1057_v47, %v1034_v31  ;;  %v1078_v62 = vor.u32 1.1754944e-38, %v1077_v56  ;;  %vm1076_vm10 = vcmp.eq.f32.partialorder %v1075_v59, 8.507059e+37  ;;  %v1139_v47 = vld [vmem:[%s4037_s10 + $0x8] sm:$0xff] }
 0x144   : > { %v1060_v50 = vsel %vm1059_vm5, %v1034_v31, %v1058_v49 }
 0x145   : > { %v1063_v51 = vsel %vm1061_vm6, %v1062_v48, %v1060_v50 }
 0x146   : > { %v3154_v52 = vpop.eup %3153  ;;  %v1065_v53 = vadd.f32 1e-06, %v1063_v51 }
 0x147   : > { %v1067_v54 = vmul.f32 %v3154_v52, %v1064_v46  ;;  %vm1072_vm7 = vweird.f32 %v3154_v52 }
 0x148   : > { %3155 = vrcp.f32 %v1065_v53  ;;  %vm1073_vm9 = vmor %vm1071_vm8, %vm1072_vm7  ;;  %v1092_v8 = vand.u32 2147483648, %v1065_v53  ;;  %v1090_v11 = vand.u32 2147483647, %v1065_v53  ;;  %vm1086_vm12 = vweird.f32 %v1065_v53 }
 0x149   : > { %v1068_v55 = vsub.f32 1.0, %v1067_v54 }
 0x14a   : > { %v1093_v14 = vor.u32 1.1754944e-38, %v1092_v8  ;;  %vm1091_vm14 = vcmp.eq.f32.partialorder %v1090_v11, 8.507059e+37 }
 0x14b   : > { %v1069_v58 = vmul.f32 %v3154_v52, %v1068_v55 }
 0x14d   : > { %v1070_v60 = vadd.f32 %v3154_v52, %v1069_v58 }
 0x14e   : > { %v3156_v61 = vpop.eup %3155 }
 0x14f   : > { %v1074_v0 = vsel %vm1073_vm9, %v3154_v52, %v1070_v60  ;;  %v1082_v3 = vmul.f32 %v3156_v61, %v1065_v53  ;;  %vm1087_vm11 = vweird.f32 %v3156_v61 }
 0x150   : > { %v1079_v5 = vsel %vm1076_vm10, %v1078_v62, %v1074_v0  ;;  %vm1088_vm13 = vmor %vm1086_vm12, %vm1087_vm11 }
 0x151   : > { %v1080_v6 = vmul.f32 %v1079_v5, %v1038_v63  ;;  %v1083_v7 = vsub.f32 1.0, %v1082_v3 }
 0x153   : > { %v1099_v9 = vadd.f32 %v3134_v1, %v1080_v6  ;;  %v1084_v10 = vmul.f32 %v3156_v61, %v1083_v7 }
 0x155   : > { %3004 = vmatmul.msk.f32.vlgmr.msra.gmra.mxu0 %vm1007_vm1, %v1099_v9  ;;  %v1085_v13 = vadd.f32 %v3156_v61, %v1084_v10 }
 0x157   : > { %v1089_v16 = vsel %vm1088_vm13, %v3156_v61, %v1085_v13 }
 0x158   : > { %v1094_v17 = vsel %vm1091_vm14, %v1093_v14, %v1089_v16 }
 0x159   : > { %v1095_v18 = vmul.f32 %v1094_v17, %v1039_v15 }
 0x15b   : > { %v1100_v19 = vadd.f32 %v3134_v1, %v1095_v18 }
 0x15d   : > { %3005 = vmatmul.msk.f32.gmra.mxu0 %vm1007_vm1, %v1100_v19 }
 0x1d2   : > { %v1132_v22 = vpop.f32.mrf.mxu0 }
 0x1d3   : > { %v3577_v23 = vadd.f32 %v3135_v21, %v1132_v22 }
 0x1d5   : > { %1141 = vrot.lane.b32.xlu2 %v3577_v23, %s3288_s5 }
 0x1da   : > { %v1135_v20 = vpop.f32.mrf.mxu0 }
 0x1db   : > { %v3581_v24 = vadd.f32 %v3135_v21, %v1135_v20 }
 0x1dd   : > { %1297 = vrot.lane.b32.xlu1 %v3581_v24, %s3289_s26  ;;  %1299 = vrot.lane.b32.xlu0 %v3581_v24, %s3290_s30  ;;  %v3108_v25 = vpack.i.bf16 %v3581_v24, %v3577_v23 }
 0x1de   : > { %1169 = vrot.lane.b32.xlu2 %v3581_v24, %s3288_s5 }
 0x1e5   : > { %1529 = vrot.lane.b32.xlu1 %v3577_v23, %s3291_s0  ;;  %1399 = vrot.lane.b32.xlu0 %v3577_v23, %s3292_s7 }
 0x1e6   : > { %1271 = vrot.lane.b32.xlu2 %v3577_v23, %s3290_s30 }
 0x1ed   : > { %1559 = vrot.lane.b32.xlu1 %v3581_v24, %s3293_s3  ;;  %1429 = vrot.lane.b32.xlu0 %v3581_v24, %s3294_s28 }
 0x1ee   : > { %1401 = vrot.lane.b32.xlu2 %v3577_v23, %s3294_s28 }
 0x1f5   : > { %3109 = vrot.lane.b32.xlu1 %v3108_v25, %s3295_s4  ;;  %1557 = vrot.lane.b32.xlu0 %v3581_v24, %s3291_s0  ;;  %s4000_s4 = smov 16  }
 0x1f6   : > { %1269 = vrot.lane.b32.xlu2 %v3577_v23, %s3289_s26 }
 0x1fe   : > { %1531 = vrot.lane.b32.xlu2 %v3577_v23, %s3293_s3 }
 0x206   : > { %1427 = vrot.lane.b32.xlu2 %v3581_v24, %s3292_s7 }
 0x22f   : > { %v1142_v26 = vpop.permute.xlu2 %1141 }
 0x230   : > { %3006 = vmatpush.xpose.msk.msra.mxu1 %vm1143_vm15, %v1142_v26 }
 0x233   : > { %3007 = vmatmul.msk.f32.vlgmr.msra.gmra.mxu1 %vm1143_vm15, %v3577_v23 }
 0x238   : > { %v1170_v27 = vpop.permute.xlu2 %1169 }
 0x239   : > { %3008 = vmatpush.xpose.msk.msrb.mxu0 %vm1143_vm15, %v1170_v27 }
 0x23c   : > { %3009 = vmatmul.msk.f32.vlgmr.msrb.gmra.mxu0 %vm1143_vm15, %v3581_v24 }
 0x240   : > { %v1272_v28 = vpop.permute.xlu2 %1271 }
 0x241   : > { %3012 = vmatpush.xpose.msk.msrb.mxu1 %vm1143_vm15, %v1272_v28 }
 0x248   : > { %v1402_v29 = vpop.permute.xlu2 %1401 }
 0x24f   : > { %v1298_v30 = vpop.permute.xlu1 %1297  ;;  %v1300_v31 = vpop.permute.xlu0 %1299 }
 0x250   : > { %v1270_v32 = vpop.permute.xlu2 %1269  ;;  %3014 = vmatpush.xpose.msk.msra.mxu2 %vm1143_vm15, %v1300_v31 }
 0x251   : > { %3013 = vmatmul.msk.f32.vlgmr.msrb.gmra.mxu1 %vm1143_vm15, %v1270_v32 }
 0x253   : > { %3015 = vmatmul.msk.f32.vlgmr.msra.gmra.mxu2 %vm1143_vm15, %v1298_v30 }
 0x254   : > { %3018 = vmatpush.xpose.msk.msrb.mxu2 %vm1143_vm15, %v1402_v29 }
 0x257   : > { %v1530_v33 = vpop.permute.xlu1 %1529  ;;  %v1400_v34 = vpop.permute.xlu0 %1399 }
 0x258   : > { %v1532_v35 = vpop.permute.xlu2 %1531 }
 0x259   : > { %3024 = vmatpush.xpose.msk.msra.mxu2 %vm1143_vm15, %v1532_v35 }
 0x25b   : > { %3019 = vmatmul.msk.f32.vlgmr.msrb.gmra.mxu2 %vm1143_vm15, %v1400_v34 }
 0x25f   : > { %v1560_v36 = vpop.permute.xlu1 %1559  ;;  %v1430_v37 = vpop.permute.xlu0 %1429 }
 0x260   : > { %3020 = vmatpush.xpose.msk.msra.mxu0 %vm1143_vm15, %v1430_v37  ;;  %v1428_v38 = vpop.permute.xlu2 %1427 }
 0x263   : > { %3021 = vmatmul.msk.f32.vlgmr.msra.gmra.mxu0 %vm1143_vm15, %v1428_v38  ;;  %3025 = vmatmul.msk.f32.vlgmr.msra.gmra.mxu2 %vm1143_vm15, %v1530_v33 }
 0x264   : > { %3026 = vmatpush.xpose.msk.msrb.mxu0 %vm1143_vm15, %v1560_v36 }
 0x267   : > { %v3110_v39 = vpop.permute.xlu1 %3109  ;;  %v1558_v42 = vpop.permute.xlu0 %1557 }
 0x268   : > { %v3111_v40 = vunpack.i.l.bf16 %v3110_v39  ;;  %v3112_v41 = vunpack.i.h.bf16 %v3110_v39 }
 0x26a   : > { %1238 = vmatpush.msra.mxu3 %v3111_v40 }
 0x26b   : > { %3027 = vmatmul.msk.f32.vlgmr.msrb.gmra.mxu0 %vm1143_vm15, %v1558_v42 }
 0x26c   : > { %1264 = vmatpush.msrb.mxu3 %v3112_v41 }
 0x2b0   : > { %v1165_v44 = vpop.f32.mrf.mxu1 }
 0x2b1   : > { %v1166_v45 = vadd.f32 %v1165_v44, %v1138_v43 }
 0x2b3   : > { %v1195_v46 = vsel %vm1143_vm15, %v1166_v45, -inf }
 0x2b4   : > { %1196 = vmax.xlane.f32.xlu2 %v1195_v46 }
 0x2b9   : > { %v1192_v48 = vpop.f32.mrf.mxu0 }
 0x2ba   : > { %v1193_v49 = vadd.f32 %v1192_v48, %v1139_v47 }
 0x2bc   : > { %v1198_v50 = vsel %vm1143_vm15, %v1193_v49, -inf }
 0x2bd   : > { %1199 = vmax.xlane.f32.xlu1 %v1198_v50 }
 0x2cc   : > { %1477 = vrot.lane.b32.xlu2 %v3577_v23, %s3296_s25 }
 0x2ce   : > { %v1294_v51 = vpop.f32.mrf.mxu1 }
 0x2cf   : > { %v1295_v52 = vadd.f32 %v1294_v51, %v1138_v43 }
 0x2d1   : > { %v1325_v53 = vsel %vm1143_vm15, %v1295_v52, -inf }
 0x2d2   : > { %1326 = vmax.xlane.f32.xlu0 %v1325_v53 }
 0x2d6   : > { %v1322_v54 = vpop.f32.mrf.mxu2 }
 0x2d7   : > { %v1323_v55 = vadd.f32 %v1322_v54, %v1139_v47 }
 0x2d9   : > { %v1328_v56 = vsel %vm1143_vm15, %v1323_v55, -inf }
 0x2da   : > { %1329 = vmax.xlane.f32.xlu0 %v1328_v56 }
 0x2de   : > { %v1424_v57 = vpop.f32.mrf.mxu2 }
 0x2df   : > { %v1425_v0 = vadd.f32 %v1424_v57, %v1138_v43 }
 0x2e0   : > { %v1452_v61 = vpop.f32.mrf.mxu0 }
 0x2e1   : > { %v1453_v62 = vadd.f32 %v1452_v61, %v1139_v47  ;;  %v1455_v1 = vsel %vm1143_vm15, %v1425_v0, -inf }
 0x2e3   : > { %v1458_v63 = vsel %vm1143_vm15, %v1453_v62, -inf }
 0x2e6   : > { %v1554_v58 = vpop.f32.mrf.mxu2 }
 0x2e7   : > { %v1555_v59 = vadd.f32 %v1554_v58, %v1138_v43 }
 0x2e8   : > { %v1582_v3 = vpop.f32.mrf.mxu0 }
 0x2e9   : > { %v1585_v60 = vsel %vm1143_vm15, %v1555_v59, -inf  ;;  %v3646_v5 = vadd.f32 %v1582_v3, %v1139_v47 }
 0x2ea   : > { %1586 = vmax.xlane.f32.xlu1 %v1585_v60 }
 0x2eb   : > { %v1588_v6 = vsel %vm1143_vm15, %v3646_v5, -inf }
 0x2ee   : > { %1347 = vrot.lane.b32.xlu0 %v3577_v23, %s3297_s23 }
 0x2f5   : > { %1459 = vmax.xlane.f32.xlu2 %v1458_v63 }
 0x2fd   : > { %1456 = vmax.xlane.f32.xlu2 %v1455_v1 }
 0x318   : > { %1589 = vmax.xlane.f32.xlu0 %v1588_v6 }
 0x327   : > { %v1197_v7 = vpop.xlane.xlu2 %1196 }
 0x328   : > { %v1201_v8 = vsub.f32 %v1166_v45, %v1197_v7 }
 0x32a   : > { %v1203_v9 = vmul.f32 1.442695, %v1201_v8 }
 0x32c   : > { %3157 = vpow2.f32 %v1203_v9 }
 0x32f   : > { %v1478_v30 = vpop.permute.xlu2 %1477 }
 0x330   : > { %v1200_v10 = vpop.xlane.xlu1 %1199 }
 0x331   : > { %v1202_v11 = vsub.f32 %v1193_v49, %v1200_v10 }
 0x332   : > { %v3158_v13 = vpop.eup %3157 }
 0x333   : > { %v1205_v14 = vmul.f32 1.442695, %v1202_v11  ;;  %v1207_v15 = vsel %vm1143_vm15, %v3158_v13, 0.0 }
 0x334   : > { %1208 = vadd.xlane.f32.xlu1 %v1207_v15 }
 0x335   : > { %3159 = vpow2.f32 %v1205_v14 }
 0x33b   : > { %v3160_v16 = vpop.eup %3159 }
 0x33c   : > { %v1210_v17 = vsel %vm1143_vm15, %v3160_v16, 0.0 }
 0x33d   : > { %1211 = vadd.xlane.f32.xlu2 %v1210_v17 }
 0x345   : > { %v1327_v18 = vpop.xlane.xlu0 %1326 }
 0x346   : > { %v1331_v19 = vsub.f32 %v1295_v52, %v1327_v18 }
 0x348   : > { %v1333_v21 = vmul.f32 1.442695, %v1331_v19 }
 0x34a   : > { %3161 = vpow2.f32 %v1333_v21 }
 0x34d   : > { %v1330_v22 = vpop.xlane.xlu0 %1329  ;;  %1607 = vrot.lane.b32.xlu1 %v3577_v23, %s3298_s24 }
 0x34e   : > { %v1332_v20 = vsub.f32 %v1323_v55, %v1330_v22 }
 0x350   : > { %v3162_v25 = vpop.eup %3161  ;;  %v1335_v26 = vmul.f32 1.442695, %v1332_v20 }
 0x351   : > { %v1337_v27 = vsel %vm1143_vm15, %v3162_v25, 0.0 }
 0x352   : > { %3163 = vpow2.f32 %v1335_v26  ;;  %1338 = vadd.xlane.f32.xlu0 %v1337_v27 }
 0x358   : > { %v3655_v28 = vpop.eup %3163 }
 0x359   : > { %v1340_v29 = vsel %vm1143_vm15, %v3655_v28, 0.0 }
 0x35a   : > { %1341 = vadd.xlane.f32.xlu0 %v1340_v29 }
 0x35d   : > { %v1587_v23 = vpop.xlane.xlu1 %1586 }
 0x35e   : > { %v1591_v37 = vsub.f32 %v1555_v59, %v1587_v23 }
 0x360   : > { %v1593_v40 = vmul.f32 1.442695, %v1591_v37  ;;  %v1348_v46 = vpop.permute.xlu0 %1347 }
 0x368   : > { %v1460_v31 = vpop.xlane.xlu2 %1459 }
 0x369   : > { %v1462_v32 = vsub.f32 %v1453_v62, %v1460_v31 }
 0x36b   : > { %v1465_v33 = vmul.f32 1.442695, %v1462_v32 }
 0x36d   : > { %3165 = vpow2.f32 %v1465_v33 }
 0x36e   : > { %1503 = vrot.lane.b32.xlu0 %v3581_v24, %s3296_s25  ;;  %s4038_s25 = sld [smem:[#allocation9_spill]] }
 0x370   : > { %v1457_v34 = vpop.xlane.xlu2 %1456 }
 0x371   : > { %v1461_v35 = vsub.f32 %v1425_v0, %v1457_v34 }
 0x373   : > { %v3661_v36 = vpop.eup %3165  ;;  %v1463_v38 = vmul.f32 1.442695, %v1461_v35 }
 0x374   : > { %v1470_v39 = vsel %vm1143_vm15, %v3661_v36, 0.0  ;;  %v1694_v27 = vld [vmem:[%s4038_s25 + $0x18] sm:$0xff]  ;;  %v1692_v29 = vld [vmem:[%s4038_s25 + $0x8] sm:$0xff] }
 0x375   : > { %3167 = vpow2.f32 %v1463_v38  ;;  %1713 = vmatpush.msrb.mxu2 %v1694_v27 }
 0x376   : > { %3169 = vpow2.f32 %v1593_v40 }
 0x377   : > { %1471 = vadd.xlane.f32.xlu1 %v1470_v39 }
 0x37b   : > { %v3168_v41 = vpop.eup %3167 }
 0x37c   : > { %v1467_v42 = vsel %vm1143_vm15, %v3168_v41, 0.0  ;;  %v3170_v43 = vpop.eup %3169 }
 0x37d   : > { %1468 = vadd.xlane.f32.xlu2 %v1467_v42  ;;  %v1597_v44 = vsel %vm1143_vm15, %v3170_v43, 0.0  ;;  %v3136_v42 = vld [vmem:[%s4040_s29] ss:$0 sm:$0xff]  ;;  %s4041_s29 = scalar_lea.vmem %s3976_s11, %s3441_s27 }
 0x385   : > { %1598 = vadd.xlane.f32.xlu2 %v1597_v44 }
 0x38b   : > { %v1590_v50 = vpop.xlane.xlu0 %1589 }
 0x38c   : > { %v1592_v51 = vsub.f32 %v3646_v5, %v1590_v50 }
 0x38e   : > { %v1595_v53 = vmul.f32 1.442695, %v1592_v51  ;;  %v1822_v51 = vld [vmem:[%s3473_s8 + $0x10] sm:$0xff] }
 0x390   : > { %1633 = vrot.lane.b32.xlu1 %v3581_v24, %s3298_s24 }
 0x39d   : > { %1373 = vrot.lane.b32.xlu2 %v3581_v24, %s3297_s23  ;;  %s3998_s23 = smov 24  }
 0x3a7   : > { %v1209_v45 = vpop.xlane.xlu1 %1208 }
 0x3a8   : > { %3171 = vrcp.f32 %v1209_v45 }
 0x3ae   : > { %v3172_v47 = vpop.eup %3171 }
 0x3af   : > { %v1215_v48 = vmul.f32 %v3172_v47, %v3158_v13 }
 0x3b0   : > { %v1212_v49 = vpop.xlane.xlu2 %1211 }
 0x3b1   : > { %3173 = vrcp.f32 %v1212_v49  ;;  %3010 = vmatmul.msk.f32.vlgmr.msra.gmra.mxu3 %vm1143_vm15, %v1215_v48 }
 0x3b2   : > { %1368 = vmatpush.msra.mxu3 %v1348_v46  ;;  %3175 = vpow2.f32 %v1595_v53 }
 0x3b7   : > { %v3174_v52 = vpop.eup %3173 }
 0x3b8   : > { %v1216_v54 = vmul.f32 %v3174_v52, %v3160_v16  ;;  %v3176_v24 = vpop.eup %3175  ;;  %v1823_v52 = vld [vmem:[%s3473_s8 + $0x18] sm:$0xff] }
 0x3b9   : > { %v1600_v56 = vsel %vm1143_vm15, %v3176_v24, 0.0  ;;  %v3113_v53 = vpack.i.bf16 %v1822_v51, %v1823_v52  ;;  %1846 = vmatpush.msra.mxu0 %v1823_v52 }
 0x3ba   : > { %3011 = vmatmul.msk.f32.vlgmr.msrb.gmra.mxu3 %vm1143_vm15, %v1216_v54  ;;  %v1820_v54 = vld [vmem:[%s3473_s8] sm:$0xff] }
 0x3bb   : > { %1498 = vmatpush.msrb.mxu3 %v1478_v30  ;;  %v1691_v30 = vld [vmem:[%s4038_s25] sm:$0xff]  ;;  %1847 = vmatpush.msra.mxu0 %v1822_v51 }
 0x3bf   : > { %v1608_v59 = vpop.permute.xlu1 %1607 }
 0x3c5   : > { %v1339_v55 = vpop.xlane.xlu0 %1338 }
 0x3c6   : > { %3177 = vrcp.f32 %v1339_v55  ;;  %1601 = vadd.xlane.f32.xlu2 %v1600_v56 }
 0x3cc   : > { %v3178_v57 = vpop.eup %3177 }
 0x3cd   : > { %v1345_v58 = vmul.f32 %v3178_v57, %v3162_v25  ;;  %v1342_v61 = vpop.xlane.xlu0 %1341 }
 0x3cf   : > { %3016 = vmatmul.msk.f32.vlgmr.msra.gmra.mxu3 %vm1143_vm15, %v1345_v58 }
 0x3d0   : > { %1628 = vmatpush.msra.mxu3 %v1608_v59 }
 0x3e0   : > { %v1504_v9 = vpop.permute.xlu0 %1503 }
 0x3ea   : > { %v1472_v1 = vpop.xlane.xlu1 %1471 }
 0x3f0   : > { %v1469_v60 = vpop.xlane.xlu2 %1468 }
 0x3f1   : > { %3179 = vrcp.f32 %v1469_v60 }
 0x3f2   : > { %3181 = vrcp.f32 %v1342_v61 }
 0x3f7   : > { %v3180_v62 = vpop.eup %3179 }
 0x3f8   : > { %v1475_v63 = vmul.f32 %v3180_v62, %v3168_v41  ;;  %v1599_v0 = vpop.xlane.xlu2 %1598  ;;  %v3182_v3 = vpop.eup %3181 }
 0x3f9   : > { %3183 = vrcp.f32 %v1599_v0  ;;  %v1346_v6 = vmul.f32 %v3182_v3, %v3655_v28  ;;  %v1693_v28 = vld [vmem:[%s4038_s25 + $0x10] sm:$0xff]  ;;  %s4043_s25 = scalar_lea.vmem %s3979_s14, %s3441_s27 }
 0x3fa   : > { %3022 = vmatmul.msk.f32.vlgmr.msrb.gmra.mxu3 %vm1143_vm15, %v1475_v63  ;;  %3185 = vrcp.f32 %v1472_v1  ;;  %1714 = vmatpush.msrb.mxu2 %v1693_v28 }
 0x3fc   : > { %1715 = vmatpush.msrb.mxu2 %v1692_v29 }
 0x3fe   : > { %1716 = vmatpush.msrb.mxu2 %v1691_v30 }
 0x3ff   : > { %v3184_v5 = vpop.eup %3183 }
 0x400   : > { %v1605_v7 = vmul.f32 %v3184_v5, %v3170_v43  ;;  %v1374_v8 = vpop.permute.xlu2 %1373  ;;  %v3186_v11 = vpop.eup %3185  ;;  %v3737_v5 = vld [vmem:[%s4041_s29] ss:$0 sm:$0xff] }
 0x401   : > { %1394 = vmatpush.msra.mxu1 %v1374_v8  ;;  %v1476_v13 = vmul.f32 %v3186_v11, %v3661_v36 }
 0x402   : > { %v1634_v10 = vpop.permute.xlu1 %1633  ;;  %3017 = vmatmul.msk.f32.vlgmr.msra.gmra.mxu1 %vm1143_vm15, %v1346_v6  ;;  %3028 = vmatmul.msk.f32.vlgmr.msra.gmra.mxu3 %vm1143_vm15, %v1605_v7 }
 0x403   : > { %1524 = vmatpush.msrb.mxu1 %v1504_v9 }
 0x405   : > { %1654 = vmatpush.msra.mxu1 %v1634_v10 }
 0x40a   : > { %3023 = vmatmul.msk.f32.vlgmr.msrb.gmra.mxu1 %vm1143_vm15, %v1476_v13 }
 0x434   : > { %v1240_v16 = vpop.f32.mrf.mxu3 }
 0x439   : > { %v1602_v14 = vpop.xlane.xlu2 %1601 }
 0x43a   : > { %3187 = vrcp.f32 %v1602_v14 }
 0x43d   : > { %v1266_v18 = vpop.f32.mrf.mxu3 }
 0x440   : > { %v3188_v15 = vpop.eup %3187 }
 0x441   : > { %v1606_v17 = vmul.f32 %v3188_v15, %v3176_v24 }
 0x443   : > { %3029 = vmatmul.msk.f32.vlgmr.msra.gmra.mxu1 %vm1143_vm15, %v1606_v17 }
 0x452   : > { %v1370_v19 = vpop.f32.mrf.mxu3 }
 0x453   : > { %1661 = vrot.lane.b32.xlu0 %v1370_v19, %s3299_s6 }
 0x47d   : > { %v1500_v21 = vpop.f32.mrf.mxu3 }
 0x47e   : > { %1669 = vrot.lane.b32.xlu2 %v1500_v21, %s4000_s4 }
 0x47f   : > { %v1396_v22 = vpop.f32.mrf.mxu1 }
 0x480   : > { %1663 = vrot.lane.b32.xlu0 %v1396_v22, %s3299_s6 }
 0x485   : > { %v1630_v20 = vpop.f32.mrf.mxu3 }
 0x486   : > { %1677 = vrot.lane.b32.xlu1 %v1630_v20, %s3998_s23 }
 0x487   : > { %v1526_v25 = vpop.f32.mrf.mxu1 }
 0x48e   : > { %1671 = vrot.lane.b32.xlu1 %v1526_v25, %s4000_s4  ;;  %s4044_s4 = scalar_lea.vmem %s3980_s15, %s3441_s27 }
 0x4c0   : > { %v1656_v26 = vpop.f32.mrf.mxu1 }
 0x4c1   : > { %1679 = vrot.lane.b32.xlu0 %v1656_v26, %s3998_s23  ;;  %s4042_s23 = sld [smem:[#allocation11_spill]] }
 0x4c5   : > { %v1662_v31 = vpop.permute.xlu0 %1661 }
 0x4c6   : > { %v1683_v33 = vsel %vm1143_vm15, %v1240_v16, %v1662_v31  ;;  %v3137_v31 = vld [vmem:[%s4043_s25] ss:$0 sm:$0xff]  ;;  %s4049_s25 = scalar_lea.vmem %s3985_s20, %s3441_s27 }
 0x4c7   : > { %v1003_v14 = vld [vmem:[%s4042_s23] sm:$0xff]  ;;  %v1004_v19 = vld [vmem:[%s4042_s23 + $0x8] sm:$0xff] }
 0x4d8   : > { %v1670_v32 = vpop.permute.xlu2 %1669 }
 0x4d9   : > { %v1686_v23 = vsel %vm1685_vm0, %v1683_v33, %v1670_v32 }
 0x4f2   : > { %v1664_v36 = vpop.permute.xlu0 %1663 }
 0x4f3   : > { %v1684_v38 = vsel %vm1143_vm15, %v1266_v18, %v1664_v36 }
 0x4f8   : > { %v1678_v34 = vpop.permute.xlu1 %1677 }
 0x4f9   : > { %v1689_v35 = vsel %vm1688_vm2, %v1686_v23, %v1678_v34 }
 0x4fa   : > { %3030 = vmatmul.msk.f32.vlgmr.msrb.gmra.mxu2 %vm1007_vm1, %v1689_v35 }
 0x500   : > { %v1672_v37 = vpop.permute.xlu1 %1671 }
 0x501   : > { %v1687_v39 = vsel %vm1685_vm0, %v1684_v38, %v1672_v37  ;;  %v3139_v37 = vld [vmem:[%s4044_s4] ss:$0 sm:$0xff] }
 0x533   : > { %v1680_v40 = vpop.permute.xlu0 %1679 }
 0x534   : > { %v1690_v41 = vsel %vm1688_vm2, %v1687_v39, %v1680_v40 }
 0x535   : > { %3031 = vmatmul.msk.f32.gmra.mxu2 %vm1007_vm1, %v1690_v41 }
 0x57d   : > { %v1718_v43 = vpop.f32.mrf.mxu2 }
 0x57e   : > { %v1724_v44 = vadd.f32 %v1718_v43, %v3530_v2  ;;  %v1821_v2 = vld [vmem:[%s3473_s8 + $0x8] sm:$0xff] }
 0x57f   : > { %1848 = vmatpush.msra.mxu0 %v1821_v2  ;;  %v3118_v58 = vpack.i.bf16 %v1820_v54, %v1821_v2 }
 0x580   : > { %v3707_v45 = vadd.f32 %v3136_v42, %v1724_v44 }
 0x581   : > { %1849 = vmatpush.msra.mxu0 %v1820_v54 }
 0x582   : > { %v1734_v46 = vsel %vm1007_vm1, %v3707_v45, 0.0 }
 0x583   : > { %1735 = vadd.xlane.f32.xlu1 %v1734_v46 }
 0x5b8   : > { %v1721_v47 = vpop.f32.mrf.mxu2 }
 0x5b9   : > { %v1725_v48 = vadd.f32 %v1721_v47, %v3534_v4 }
 0x5bb   : > { %v3712_v49 = vadd.f32 %v3136_v42, %v1725_v48 }
 0x5bd   : > { %v1737_v50 = vsel %vm1007_vm1, %v3712_v49, 0.0 }
 0x5be   : > { %1738 = vadd.xlane.f32.xlu0 %v1737_v50 }
 0x5d2   : > { %3114 = vrot.lane.b32.xlu0 %v3113_v53, %s3288_s5 }
 0x5f6   : > { %v1736_v24 = vpop.xlane.xlu1 %1735 }
 0x5f7   : > { %v1740_v4 = vmul.f32 %v1736_v24, %v3538_v12 }
 0x5f9   : > { %v1742_v55 = vsub.f32 %v3707_v45, %v1740_v4 }
 0x5fb   : > { %v1744_v56 = vmul.f32 %v1742_v55, %v1742_v55  ;;  %v1757_v35 = vmul.f32 %v3137_v31, %v1742_v55 }
 0x5fd   : > { %v1746_v57 = vsel %vm1007_vm1, %v1744_v56, 0.0 }
 0x5fe   : > { %1747 = vadd.xlane.f32.xlu2 %v1746_v57 }
 0x616   : > { %3119 = vrot.lane.b32.xlu2 %v3118_v58, %s3288_s5 }
 0x631   : > { %v1739_v59 = vpop.xlane.xlu0 %1738 }
 0x632   : > { %v1741_v60 = vmul.f32 %v1739_v59, %v3538_v12 }
 0x634   : > { %v3727_v61 = vsub.f32 %v3712_v49, %v1741_v60 }
 0x636   : > { %v1745_v62 = vmul.f32 %v3727_v61, %v3727_v61 }
 0x638   : > { %v1749_v63 = vsel %vm1007_vm1, %v1745_v62, 0.0  ;;  %v1758_v62 = vmul.f32 %v3137_v31, %v3727_v61 }
 0x639   : > { %1750 = vadd.xlane.f32.xlu1 %v1749_v63 }
 0x644   : > { %v3115_v0 = vpop.permute.xlu0 %3114 }
 0x645   : > { %v3116_v1 = vunpack.i.l.bf16 %v3115_v0  ;;  %v3117_v3 = vunpack.i.h.bf16 %v3115_v0 }
 0x647   : > { %1894 = vmatpush.msrb.mxu3 %v3116_v1 }
 0x649   : > { %1895 = vmatpush.msrb.mxu3 %v3117_v3 }
 0x652   : > { %1873 = vrot.lane.b32.xlu1 %v3737_v5, %s3288_s5 }
 0x671   : > { %v1748_v6 = vpop.xlane.xlu2 %1747 }
 0x672   : > { %v1752_v7 = vmul.f32 0.032258064, %v1748_v6 }
 0x674   : > { %3189 = vrsqrt.f32 %v1752_v7  ;;  %vm1766_vm3 = vcmp.eq.f32.partialorder %v1752_v7, inf  ;;  %v1769_v22 = vand.u32 2147483648, %v1752_v7  ;;  %vm1768_vm4 = vcmp.eq.f32.partialorder %v1752_v7, 0.0 }
 0x679   : > { %v3120_v8 = vpop.permute.xlu2 %3119 }
 0x67a   : > { %v3190_v9 = vpop.eup %3189  ;;  %v3121_v10 = vunpack.i.l.bf16 %v3120_v8  ;;  %v3122_v13 = vunpack.i.h.bf16 %v3120_v8 }
 0x67b   : > { %v1760_v11 = vmul.f32 %v3190_v9, %v1752_v7 }
 0x67c   : > { %1896 = vmatpush.msrb.mxu3 %v3121_v10 }
 0x67d   : > { %v1761_v15 = vmul.f32 %v3190_v9, %v1760_v11 }
 0x67e   : > { %1897 = vmatpush.msrb.mxu3 %v3122_v13 }
 0x67f   : > { %v1762_v16 = vmul.f32 0.5, %v1761_v15  ;;  %3034 = vmatmul.msk.f32.vlgmr.msrb.gmra.mxu3 %vm1007_vm1, %v1003_v14 }
 0x681   : > { %v1763_v17 = vsub.f32 1.5, %v1762_v16 }
 0x683   : > { %v1764_v18 = vmul.f32 %v3190_v9, %v1763_v17 }
 0x685   : > { %v1765_v21 = vmul.f32 %v1764_v18, %v1752_v7 }
 0x687   : > { %v1767_v20 = vsel %vm1766_vm3, %v1752_v7, %v1765_v21  ;;  %3035 = vmatmul.msk.f32.gmra.mxu3 %vm1007_vm1, %v1004_v19 }
 0x688   : > { %v1770_v25 = vsel %vm1768_vm4, %v1769_v22, %v1767_v20 }
 0x689   : > { %v1783_v26 = vadd.f32 1e-06, %v1770_v25 }
 0x68b   : > { %3191 = vrcp.f32 %v1783_v26  ;;  %v1796_v30 = vand.u32 2147483648, %v1783_v26  ;;  %v1794_v33 = vand.u32 2147483647, %v1783_v26  ;;  %vm1790_vm6 = vweird.f32 %v1783_v26 }
 0x68d   : > { %v1797_v34 = vor.u32 1.1754944e-38, %v1796_v30  ;;  %vm1795_vm8 = vcmp.eq.f32.partialorder %v1794_v33, 8.507059e+37 }
 0x691   : > { %v3192_v27 = vpop.eup %3191 }
 0x692   : > { %v1786_v28 = vmul.f32 %v3192_v27, %v1783_v26  ;;  %vm1791_vm5 = vweird.f32 %v3192_v27 }
 0x693   : > { %vm1792_vm7 = vmor %vm1790_vm6, %vm1791_vm5 }
 0x694   : > { %v1787_v29 = vsub.f32 1.0, %v1786_v28 }
 0x696   : > { %v1788_v32 = vmul.f32 %v3192_v27, %v1787_v29 }
 0x698   : > { %v1789_v23 = vadd.f32 %v3192_v27, %v1788_v32 }
 0x69a   : > { %v1793_v36 = vsel %vm1792_vm7, %v3192_v27, %v1789_v23 }
 0x69b   : > { %v1798_v38 = vsel %vm1795_vm8, %v1797_v34, %v1793_v36 }
 0x69c   : > { %v1799_v39 = vmul.f32 %v1798_v38, %v1757_v35 }
 0x69e   : > { %v1818_v40 = vadd.f32 %v3139_v37, %v1799_v39 }
 0x6a0   : > { %3032 = vmatmul.msk.f32.vlgmr.msra.gmra.mxu0 %vm1007_vm1, %v1818_v40 }
 0x6ac   : > { %v1751_v41 = vpop.xlane.xlu1 %1750 }
 0x6ad   : > { %v1753_v42 = vmul.f32 0.032258064, %v1751_v41 }
 0x6af   : > { %3193 = vrsqrt.f32 %v1753_v42  ;;  %vm1778_vm9 = vcmp.eq.f32.partialorder %v1753_v42, inf  ;;  %v1781_v52 = vand.u32 2147483648, %v1753_v42  ;;  %vm1780_vm10 = vcmp.eq.f32.partialorder %v1753_v42, 0.0 }
 0x6b5   : > { %v3194_v43 = vpop.eup %3193 }
 0x6b6   : > { %v1772_v44 = vmul.f32 %v3194_v43, %v1753_v42 }
 0x6b8   : > { %v1773_v46 = vmul.f32 %v3194_v43, %v1772_v44 }
 0x6ba   : > { %v1774_v47 = vmul.f32 0.5, %v1773_v46 }
 0x6bc   : > { %v1775_v48 = vsub.f32 1.5, %v1774_v47 }
 0x6be   : > { %v1776_v50 = vmul.f32 %v3194_v43, %v1775_v48 }
 0x6c0   : > { %v1777_v51 = vmul.f32 %v1776_v50, %v1753_v42 }
 0x6c2   : > { %v1779_v53 = vsel %vm1778_vm9, %v1753_v42, %v1777_v51 }
 0x6c3   : > { %v1782_v2 = vsel %vm1780_vm10, %v1781_v52, %v1779_v53 }
 0x6c4   : > { %v1784_v54 = vadd.f32 1e-06, %v1782_v2  ;;  %v1874_v6 = vpop.permute.xlu1 %1873 }
 0x6c6   : > { %3195 = vrcp.f32 %v1784_v54  ;;  %v1811_v56 = vand.u32 2147483648, %v1784_v54  ;;  %v1809_v58 = vand.u32 2147483647, %v1784_v54  ;;  %vm1805_vm12 = vweird.f32 %v1784_v54 }
 0x6c8   : > { %v1812_v60 = vor.u32 1.1754944e-38, %v1811_v56  ;;  %vm1810_vm14 = vcmp.eq.f32.partialorder %v1809_v58, 8.507059e+37 }
 0x6cc   : > { %v3196_v24 = vpop.eup %3195 }
 0x6cd   : > { %v1801_v4 = vmul.f32 %v3196_v24, %v1784_v54  ;;  %vm1806_vm11 = vweird.f32 %v3196_v24 }
 0x6ce   : > { %vm1807_vm13 = vmor %vm1805_vm12, %vm1806_vm11  ;;  %vm2635_vm12 = vcmask 523264  }
 0x6cf   : > { %v1802_v55 = vsub.f32 1.0, %v1801_v4 }
 0x6d1   : > { %v1803_v57 = vmul.f32 %v3196_v24, %v1802_v55 }
 0x6d3   : > { %v1804_v59 = vadd.f32 %v3196_v24, %v1803_v57 }
 0x6d5   : > { %v1808_v63 = vsel %vm1807_vm13, %v3196_v24, %v1804_v59 }
 0x6d6   : > { %v1813_v0 = vsel %vm1810_vm14, %v1812_v60, %v1808_v63 }
 0x6d7   : > { %v1814_v1 = vmul.f32 %v1813_v0, %v1758_v62 }
 0x6d9   : > { %v1819_v3 = vadd.f32 %v3139_v37, %v1814_v1 }
 0x6db   : > { %3033 = vmatmul.msk.f32.gmra.mxu0 %vm1007_vm1, %v1819_v3 }
 0x702   : > { %v1899_v7 = vpop.f32.mrf.mxu3 }
 0x703   : > { %v3762_v8 = vadd.f32 %v1899_v7, %v1874_v6 }
 0x705   : > { %2041 = vrot.lane.b32.xlu0 %v3762_v8, %s3289_s26  ;;  %3036 = vmatpush.xpose.msk.msrb.mxu1 %vm1143_vm15, %v3762_v8 }
 0x70a   : > { %v1902_v9 = vpop.f32.mrf.mxu3 }
 0x70b   : > { %v3768_v10 = vadd.f32 %v1902_v9, %v1874_v6 }
 0x70d   : > { %2171 = vrot.lane.b32.xlu0 %v3762_v8, %s3292_s7  ;;  %3038 = vmatpush.xpose.msk.msra.mxu1 %vm1143_vm15, %v3768_v10  ;;  %v3123_v43 = vpack.i.bf16 %v3768_v10, %v3762_v8 }
 0x71d   : > { %v1851_v61 = vpop.f32.mrf.mxu0 }
 0x71e   : > { %v1852_v11 = vadd.f32 %v3737_v5, %v1851_v61 }
 0x720   : > { %2039 = vrot.lane.b32.xlu2 %v1852_v11, %s3289_s26  ;;  %2169 = vrot.lane.b32.xlu1 %v1852_v11, %s3292_s7 }
 0x721   : > { %2299 = vrot.lane.b32.xlu0 %v1852_v11, %s3291_s0  ;;  %3037 = vmatmul.msk.f32.vlgmr.msrb.gmra.mxu1 %vm1143_vm15, %v1852_v11 }
 0x728   : > { %2069 = vrot.lane.b32.xlu1 %v3768_v10, %s3289_s26  ;;  %2301 = vrot.lane.b32.xlu2 %v3762_v8, %s3291_s0 }
 0x729   : > { %2199 = vrot.lane.b32.xlu0 %v3768_v10, %s3292_s7 }
 0x758   : > { %v1854_v13 = vpop.f32.mrf.mxu0 }
 0x759   : > { %v1855_v14 = vadd.f32 %v3737_v5, %v1854_v13 }
 0x75b   : > { %2197 = vrot.lane.b32.xlu1 %v1855_v14, %s3292_s7  ;;  %2067 = vrot.lane.b32.xlu2 %v1855_v14, %s3289_s26  ;;  %s4045_s7 = sld [smem:[#allocation13_spill]] }
 0x75c   : > { %2327 = vrot.lane.b32.xlu0 %v1855_v14, %s3291_s0  ;;  %3039 = vmatmul.msk.f32.vlgmr.msra.gmra.mxu1 %vm1143_vm15, %v1855_v14  ;;  %s4050_s26 = sld [smem:[#allocation21_spill]] }
 0x761   : > { %v3140_v20 = vld [vmem:[%s4045_s7] ss:$0 sm:$0xff]  ;;  %v3141_v32 = vld [vmem:[%s4045_s7 + $0x1] ss:$0 sm:$0xff] }
 0x763   : > { %2329 = vrot.lane.b32.xlu2 %v3768_v10, %s3291_s0  ;;  %s4051_s0 = scalar_lea.vmem %s4050_s26, %s3441_s27 }
 0x777   : > { %v2042_v15 = vpop.permute.xlu0 %2041 }
 0x778   : > { %3042 = vmatpush.xpose.msk.msra.mxu3 %vm1143_vm15, %v2042_v15 }
 0x77a   : > { %v2040_v16 = vpop.permute.xlu2 %2039 }
 0x77b   : > { %3043 = vmatmul.msk.f32.vlgmr.msra.gmra.mxu3 %vm1143_vm15, %v2040_v16 }
 0x77f   : > { %v2172_v17 = vpop.permute.xlu0 %2171 }
 0x780   : > { %3048 = vmatpush.xpose.msk.msrb.mxu3 %vm1143_vm15, %v2172_v17 }
 0x782   : > { %v2302_v5 = vpop.permute.xlu2 %2301 }
 0x784   : > { %3054 = vmatpush.xpose.msk.msra.mxu3 %vm1143_vm15, %v2302_v5 }
 0x792   : > { %v2170_v18 = vpop.permute.xlu1 %2169 }
 0x793   : > { %v2300_v19 = vpop.permute.xlu0 %2299  ;;  %3049 = vmatmul.msk.f32.vlgmr.msrb.gmra.mxu3 %vm1143_vm15, %v2170_v18 }
 0x79a   : > { %v2070_v21 = vpop.permute.xlu1 %2069 }
 0x79b   : > { %v2200_v22 = vpop.permute.xlu0 %2199  ;;  %3044 = vmatpush.xpose.msk.msrb.mxu1 %vm1143_vm15, %v2070_v21  ;;  %3055 = vmatmul.msk.f32.vlgmr.msra.gmra.mxu3 %vm1143_vm15, %v2300_v19 }
 0x79e   : > { %v1936_v25 = vpop.f32.mrf.mxu1 }
 0x79f   : > { %3050 = vmatpush.xpose.msk.msra.mxu1 %vm1143_vm15, %v2200_v22  ;;  %v1937_v26 = vadd.f32 %v3140_v20, %v1936_v25 }
 0x7a1   : > { %v1965_v27 = vsel %vm1143_vm15, %v1937_v26, -inf }
 0x7a2   : > { %1966 = vmax.xlane.f32.xlu1 %v1965_v27 }
 0x7b5   : > { %v2068_v28 = vpop.permute.xlu2 %2067 }
 0x7b6   : > { %3045 = vmatmul.msk.f32.vlgmr.msrb.gmra.mxu1 %vm1143_vm15, %v2068_v28 }
 0x7bd   : > { %v2330_v29 = vpop.permute.xlu2 %2329 }
 0x7be   : > { %3056 = vmatpush.xpose.msk.msrb.mxu1 %vm1143_vm15, %v2330_v29 }
 0x7cd   : > { %v2198_v30 = vpop.permute.xlu1 %2197 }
 0x7ce   : > { %3051 = vmatmul.msk.f32.vlgmr.msra.gmra.mxu1 %vm1143_vm15, %v2198_v30  ;;  %v2328_v31 = vpop.permute.xlu0 %2327 }
 0x7d6   : > { %3057 = vmatmul.msk.f32.vlgmr.msrb.gmra.mxu1 %vm1143_vm15, %v2328_v31 }
 0x7d9   : > { %v1962_v33 = vpop.f32.mrf.mxu1 }
 0x7da   : > { %v1963_v23 = vadd.f32 %v3141_v32, %v1962_v33 }
 0x7dc   : > { %v1968_v34 = vsel %vm1143_vm15, %v1963_v23, -inf }
 0x7dd   : > { %1969 = vmax.xlane.f32.xlu0 %v1968_v34 }
 0x7fe   : > { %v2064_v35 = vpop.f32.mrf.mxu3 }
 0x7ff   : > { %v2065_v36 = vadd.f32 %v3140_v20, %v2064_v35 }
 0x801   : > { %v2095_v37 = vsel %vm1143_vm15, %v2065_v36, -inf }
 0x802   : > { %2096 = vmax.xlane.f32.xlu2 %v2095_v37 }
 0x815   : > { %v1967_v38 = vpop.xlane.xlu1 %1966 }
 0x816   : > { %v1971_v39 = vsub.f32 %v1937_v26, %v1967_v38  ;;  %v2194_v40 = vpop.f32.mrf.mxu3 }
 0x817   : > { %v2195_v41 = vadd.f32 %v3140_v20, %v2194_v40 }
 0x818   : > { %v1973_v42 = vmul.f32 1.442695, %v1971_v39 }
 0x819   : > { %v2225_v44 = vsel %vm1143_vm15, %v2195_v41, -inf }
 0x81a   : > { %3197 = vpow2.f32 %v1973_v42  ;;  %3124 = vrot.lane.b32.xlu2 %v3123_v43, %s3288_s5  ;;  %2226 = vmax.xlane.f32.xlu1 %v2225_v44  ;;  %s4046_s5 = smov 16  }
 0x81e   : > { %v2324_v60 = vpop.f32.mrf.mxu3 }
 0x81f   : > { %v3822_v62 = vadd.f32 %v3140_v20, %v2324_v60 }
 0x820   : > { %v3198_v46 = vpop.eup %3197 }
 0x821   : > { %v1977_v47 = vsel %vm1143_vm15, %v3198_v46, 0.0  ;;  %v2355_v63 = vsel %vm1143_vm15, %v3822_v62, -inf }
 0x822   : > { %1978 = vadd.xlane.f32.xlu0 %v1977_v47 }
 0x833   : > { %v2092_v48 = vpop.f32.mrf.mxu1 }
 0x834   : > { %v2093_v50 = vadd.f32 %v3141_v32, %v2092_v48 }
 0x836   : > { %v2098_v51 = vsel %vm1143_vm15, %v2093_v50, -inf }
 0x843   : > { %2099 = vmax.xlane.f32.xlu2 %v2098_v51 }
 0x84b   : > { %v2222_v52 = vpop.f32.mrf.mxu1 }
 0x84c   : > { %v2223_v53 = vadd.f32 %v3141_v32, %v2222_v52 }
 0x84e   : > { %v2228_v2 = vsel %vm1143_vm15, %v2223_v53, -inf }
 0x84f   : > { %2229 = vmax.xlane.f32.xlu1 %v2228_v2 }
 0x850   : > { %v1970_v54 = vpop.xlane.xlu0 %1969 }
 0x851   : > { %v1972_v24 = vsub.f32 %v1963_v23, %v1970_v54 }
 0x853   : > { %v1975_v4 = vmul.f32 1.442695, %v1972_v24  ;;  %v2352_v55 = vpop.f32.mrf.mxu1 }
 0x854   : > { %v2353_v56 = vadd.f32 %v3141_v32, %v2352_v55 }
 0x855   : > { %3199 = vpow2.f32 %v1975_v4 }
 0x856   : > { %v2358_v57 = vsel %vm1143_vm15, %v2353_v56, -inf }
 0x857   : > { %2359 = vmax.xlane.f32.xlu2 %v2358_v57 }
 0x85b   : > { %v3200_v58 = vpop.eup %3199 }
 0x85c   : > { %v1980_v59 = vsel %vm1143_vm15, %v3200_v58, 0.0 }
 0x85d   : > { %1981 = vadd.xlane.f32.xlu0 %v1980_v59 }
 0x865   : > { %2356 = vmax.xlane.f32.xlu0 %v2355_v63 }
 0x86f   : > { %2247 = vrot.lane.b32.xlu2 %v3762_v8, %s3294_s28 }
 0x875   : > { %v2097_v0 = vpop.xlane.xlu2 %2096 }
 0x876   : > { %v2101_v1 = vsub.f32 %v2065_v36, %v2097_v0 }
 0x878   : > { %v2103_v3 = vmul.f32 1.442695, %v2101_v1 }
 0x879   : > { %3129 = vrot.lane.b32.xlu0 %v3123_v43, %s3290_s30  ;;  %s4047_s30 = smov 24  }
 0x87a   : > { %3201 = vpow2.f32 %v2103_v3 }
 0x87d   : > { %v3125_v6 = vpop.permute.xlu2 %3124 }
 0x87e   : > { %v3127_v7 = vunpack.i.h.bf16 %v3125_v6  ;;  %v3126_v9 = vunpack.i.l.bf16 %v3125_v6 }
 0x880   : > { %v3202_v61 = vpop.eup %3201  ;;  %2008 = vmatpush.msra.mxu2 %v3126_v9  ;;  %2034 = vmatpush.msrb.mxu0 %v3127_v7 }
 0x881   : > { %v2107_v11 = vsel %vm1143_vm15, %v3202_v61, 0.0 }
 0x882   : > { %2108 = vadd.xlane.f32.xlu1 %v2107_v11 }
 0x88d   : > { %v2227_v16 = vpop.xlane.xlu1 %2226 }
 0x88e   : > { %v2231_v18 = vsub.f32 %v2195_v41, %v2227_v16  ;;  %v2460_v16 = vld [vmem:[%s3482_s22 + $0x8] sm:$0xff] }
 0x890   : > { %v2233_v21 = vmul.f32 1.442695, %v2231_v18  ;;  %v2459_v18 = vld [vmem:[%s3482_s22] sm:$0xff] }
 0x895   : > { %v1979_v13 = vpop.xlane.xlu0 %1978 }
 0x896   : > { %3203 = vrcp.f32 %v1979_v13 }
 0x89c   : > { %v3204_v14 = vpop.eup %3203 }
 0x89d   : > { %v1985_v15 = vmul.f32 %v3204_v14, %v3198_v46  ;;  %v2462_v14 = vld [vmem:[%s3482_s22 + $0x18] sm:$0xff] }
 0x89e   : > { %2481 = vmatpush.msrb.mxu3 %v2462_v14  ;;  %v2633_v14 = vld [vmem:[%s3509_s2 + $0x30] sm:$0xff] }
 0x89f   : > { %3040 = vmatmul.msk.f32.vlgmr.msra.gmra.mxu2 %vm1143_vm15, %v1985_v15  ;;  %v2461_v15 = vld [vmem:[%s3482_s22 + $0x10] sm:$0xff] }
 0x8a0   : > { %2482 = vmatpush.msrb.mxu3 %v2461_v15 }
 0x8a2   : > { %2483 = vmatpush.msrb.mxu3 %v2460_v16 }
 0x8a4   : > { %2484 = vmatpush.msrb.mxu3 %v2459_v18 }
 0x8b6   : > { %v2100_v17 = vpop.xlane.xlu2 %2099 }
 0x8b7   : > { %v2102_v5 = vsub.f32 %v2093_v50, %v2100_v17 }
 0x8b9   : > { %v2105_v19 = vmul.f32 1.442695, %v2102_v5 }
 0x8bb   : > { %3205 = vpow2.f32 %v2105_v19 }
 0x8bc   : > { %3207 = vpow2.f32 %v2233_v21 }
 0x8c1   : > { %v3206_v22 = vpop.eup %3205 }
 0x8c2   : > { %v2230_v20 = vpop.xlane.xlu1 %2229  ;;  %v2110_v25 = vsel %vm1143_vm15, %v3206_v22, 0.0  ;;  %v3208_v28 = vpop.eup %3207 }
 0x8c3   : > { %v2232_v26 = vsub.f32 %v2223_v53, %v2230_v20  ;;  %2111 = vadd.xlane.f32.xlu1 %v2110_v25  ;;  %v2237_v30 = vsel %vm1143_vm15, %v3208_v28, 0.0 }
 0x8c5   : > { %v2235_v27 = vmul.f32 1.442695, %v2232_v26 }
 0x8c7   : > { %3209 = vpow2.f32 %v2235_v27 }
 0x8ca   : > { %v2360_v29 = vpop.xlane.xlu2 %2359 }
 0x8cb   : > { %v2362_v31 = vsub.f32 %v2353_v56, %v2360_v29  ;;  %2238 = vadd.xlane.f32.xlu1 %v2237_v30 }
 0x8cd   : > { %v3210_v32 = vpop.eup %3209  ;;  %v2365_v33 = vmul.f32 1.442695, %v2362_v31 }
 0x8ce   : > { %v2240_v23 = vsel %vm1143_vm15, %v3210_v32, 0.0 }
 0x8cf   : > { %3211 = vpow2.f32 %v2365_v33  ;;  %2241 = vadd.xlane.f32.xlu0 %v2240_v23 }
 0x8d0   : > { %v1982_v34 = vpop.xlane.xlu0 %1981 }
 0x8d1   : > { %3213 = vrcp.f32 %v1982_v34 }
 0x8d2   : > { %v2248_v43 = vpop.permute.xlu2 %2247 }
 0x8d5   : > { %v3212_v35 = vpop.eup %3211 }
 0x8d6   : > { %v2370_v36 = vsel %vm1143_vm15, %v3212_v35, 0.0 }
 0x8d7   : > { %v3214_v37 = vpop.eup %3213  ;;  %2371 = vadd.xlane.f32.xlu2 %v2370_v36 }
 0x8d8   : > { %v1986_v38 = vmul.f32 %v3214_v37, %v3200_v58  ;;  %v2357_v39 = vpop.xlane.xlu0 %2356 }
 0x8d9   : > { %v2361_v47 = vsub.f32 %v3822_v62, %v2357_v39 }
 0x8da   : > { %3041 = vmatmul.msk.f32.vlgmr.msrb.gmra.mxu0 %vm1143_vm15, %v1986_v38 }
 0x8db   : > { %v2363_v50 = vmul.f32 1.442695, %v2361_v47 }
 0x8e4   : > { %2377 = vrot.lane.b32.xlu1 %v3762_v8, %s3293_s3 }
 0x8eb   : > { %v3130_v40 = vpop.permute.xlu0 %3129 }
 0x8ec   : > { %v3132_v41 = vunpack.i.h.bf16 %v3130_v40  ;;  %v3131_v42 = vunpack.i.l.bf16 %v3130_v40 }
 0x8ee   : > { %2138 = vmatpush.msrb.mxu2 %v3131_v42  ;;  %2164 = vmatpush.msra.mxu0 %v3132_v41 }
 0x8f0   : > { %2268 = vmatpush.msra.mxu2 %v2248_v43 }
 0x8f5   : > { %v2109_v44 = vpop.xlane.xlu1 %2108 }
 0x8f6   : > { %3215 = vrcp.f32 %v2109_v44 }
 0x8f7   : > { %3217 = vpow2.f32 %v2363_v50 }
 0x8fc   : > { %v3216_v46 = vpop.eup %3215 }
 0x8fd   : > { %v2115_v48 = vmul.f32 %v3216_v46, %v3202_v61  ;;  %v3218_v51 = vpop.eup %3217 }
 0x8fe   : > { %v2367_v8 = vsel %vm1143_vm15, %v3218_v51, 0.0 }
 0x8ff   : > { %3046 = vmatmul.msk.f32.vlgmr.msrb.gmra.mxu2 %vm1143_vm15, %v2115_v48 }
 0x90e   : > { %2368 = vadd.xlane.f32.xlu1 %v2367_v8 }
 0x922   : > { %v2010_v56 = vpop.f32.mrf.mxu2 }
 0x927   : > { %2273 = vrot.lane.b32.xlu1 %v3768_v10, %s3294_s28  ;;  %s4048_s28 = scalar_lea.vmem %s3978_s13, %s3441_s27 }
 0x928   : > { %v3142_v33 = vld [vmem:[%s4048_s28] ss:$0 sm:$0xff] }
 0x92f   : > { %2403 = vrot.lane.b32.xlu1 %v3768_v10, %s3293_s3  ;;  %s4054_s3 = sld [smem:[#allocation7_spill]] }
 0x935   : > { %p3066_p5 = scmp.ne.s32.totalorder %s4054_s3, 1 }
 0x936   : > { %v2112_v52 = vpop.xlane.xlu1 %2111  ;;  %s4056_s12 = sld [smem:[#allocation23_spill]] (!%p3066_p5) }
 0x937   : > { %3219 = vrcp.f32 %v2112_v52  ;;  %v2591_v52 = vld [vmem:[%s3499_s1 + $0x18] sm:$0xff] }
 0x938   : > { %2614 = vmatpush.msra.mxu1 %v2591_v52 }
 0x93d   : > { %v3220_v53 = vpop.eup %3219 }
 0x93e   : > { %v2116_v2 = vmul.f32 %v3220_v53, %v3206_v22  ;;  %v2239_v54 = vpop.xlane.xlu1 %2238  ;;  %v2590_v53 = vld [vmem:[%s3499_s1 + $0x10] sm:$0xff] }
 0x93f   : > { %3221 = vrcp.f32 %v2239_v54  ;;  %2615 = vmatpush.msra.mxu1 %v2590_v53  ;;  %v2629_v53 = vld [vmem:[%s3509_s2 + $0x10] sm:$0xff] }
 0x940   : > { %3047 = vmatmul.msk.f32.vlgmr.msra.gmra.mxu0 %vm1143_vm15, %v2116_v2 }
 0x942   : > { %v2242_v60 = vpop.xlane.xlu0 %2241 }
 0x945   : > { %v3222_v24 = vpop.eup %3221 }
 0x946   : > { %v2245_v4 = vmul.f32 %v3222_v24, %v3208_v28  ;;  %v2589_v24 = vld [vmem:[%s3499_s1 + $0x8] sm:$0xff] }
 0x947   : > { %2616 = vmatpush.msra.mxu1 %v2589_v24 }
 0x948   : > { %3052 = vmatmul.msk.f32.vlgmr.msra.gmra.mxu2 %vm1143_vm15, %v2245_v4 }
 0x94a   : > { %v2372_v62 = vpop.xlane.xlu2 %2371 }
 0x956   : > { %v2378_v55 = vpop.permute.xlu1 %2377 }
 0x957   : > { %2398 = vmatpush.msrb.mxu2 %v2378_v55  ;;  %v2036_v9 = vpop.f32.mrf.mxu0  ;;  %v2588_v55 = vld [vmem:[%s3499_s1] sm:$0xff]  ;;  %s4055_s1 = sld [smem:[#allocation22_spill]] (!%p3066_p5) }
 0x958   : > { %2617 = vmatpush.msra.mxu1 %v2588_v55 }
 0x981   : > { %v2369_v57 = vpop.xlane.xlu1 %2368 }
 0x982   : > { %3223 = vrcp.f32 %v2369_v57  ;;  %v2140_v58 = vpop.f32.mrf.mxu2 }
 0x983   : > { %2431 = vrot.lane.b32.xlu1 %v2140_v58, %s3299_s6  ;;  %3225 = vrcp.f32 %v2242_v60 }
 0x984   : > { %3227 = vrcp.f32 %v2372_v62 }
 0x988   : > { %v3224_v10 = vpop.eup %3223 }
 0x989   : > { %v2375_v59 = vmul.f32 %v3224_v10, %v3218_v51  ;;  %v3226_v63 = vpop.eup %3225 }
 0x98a   : > { %v2246_v0 = vmul.f32 %v3226_v63, %v3210_v32  ;;  %v3228_v3 = vpop.eup %3227 }
 0x98b   : > { %3058 = vmatmul.msk.f32.vlgmr.msrb.gmra.mxu2 %vm1143_vm15, %v2375_v59  ;;  %v2376_v6 = vmul.f32 %v3228_v3, %v3212_v35 }
 0x999   : > { %v2274_v1 = vpop.permute.xlu1 %2273 }
 0x99a   : > { %2294 = vmatpush.msrb.mxu0 %v2274_v1 }
 0x99b   : > { %3053 = vmatmul.msk.f32.vlgmr.msrb.gmra.mxu0 %vm1143_vm15, %v2246_v0 }
 0x9a1   : > { %v2404_v7 = vpop.permute.xlu1 %2403 }
 0x9a2   : > { %2424 = vmatpush.msra.mxu0 %v2404_v7 }
 0x9a3   : > { %3059 = vmatmul.msk.f32.vlgmr.msra.gmra.mxu0 %vm1143_vm15, %v2376_v6 }
 0x9bd   : > { %v2166_v61 = vpop.f32.mrf.mxu0 }
 0x9be   : > { %2433 = vrot.lane.b32.xlu1 %v2166_v61, %s3299_s6 }
 0x9cb   : > { %v2270_v11 = vpop.f32.mrf.mxu2 }
 0x9cc   : > { %2439 = vrot.lane.b32.xlu2 %v2270_v11, %s4046_s5 }
 0x9f5   : > { %v2432_v19 = vpop.permute.xlu1 %2431 }
 0x9f6   : > { %v2453_v22 = vsel %vm1143_vm15, %v2010_v56, %v2432_v19  ;;  %v3143_v19 = vld [vmem:[%s4049_s25] ss:$0 sm:$0xff] }
 0xa0e   : > { %v2400_v13 = vpop.f32.mrf.mxu2 }
 0xa0f   : > { %2447 = vrot.lane.b32.xlu0 %v2400_v13, %s4047_s30  ;;  %v2634_v13 = vld [vmem:[%s3509_s2 + $0x38] sm:$0xff] }
 0xa10   : > { %2650 = vmatpush.msra.mxu2 %v2634_v13 }
 0xa12   : > { %2651 = vmatpush.msra.mxu2 %v2633_v14 }
 0xa18   : > { %v2296_v17 = vpop.f32.mrf.mxu0 }
 0xa19   : > { %2441 = vrot.lane.b32.xlu1 %v2296_v17, %s4046_s5  ;;  %v2632_v17 = vld [vmem:[%s3509_s2 + $0x28] sm:$0xff]  ;;  %s4052_s5 = scalar_lea.vmem %s3982_s17, %s3441_s27 }
 0xa1a   : > { %2652 = vmatpush.msra.mxu2 %v2632_v17  ;;  %v3145_v24 = vld [vmem:[%s4052_s5] ss:$0 sm:$0xff] }
 0xa20   : > { %v2426_v5 = vpop.f32.mrf.mxu0 }
 0xa21   : > { %2449 = vrot.lane.b32.xlu0 %v2426_v5, %s4047_s30 }
 0xa26   : > { %v2440_v21 = vpop.permute.xlu2 %2439 }
 0xa27   : > { %v2455_v20 = vsel %vm1685_vm0, %v2453_v22, %v2440_v21 }
 0xa30   : > { %v2434_v27 = vpop.permute.xlu1 %2433 }
 0xa31   : > { %v2454_v29 = vsel %vm1143_vm15, %v2036_v9, %v2434_v27 }
 0xa81   : > { %v2448_v25 = vpop.permute.xlu0 %2447 }
 0xa82   : > { %v2457_v26 = vsel %vm1688_vm2, %v2455_v20, %v2448_v25  ;;  %v2631_v20 = vld [vmem:[%s3509_s2 + $0x20] sm:$0xff] }
 0xa83   : > { %3060 = vmatmul.msk.f32.vlgmr.msrb.gmra.mxu3 %vm1007_vm1, %v2457_v26  ;;  %2653 = vmatpush.msra.mxu2 %v2631_v20 }
 0xa8b   : > { %v2442_v28 = vpop.permute.xlu1 %2441 }
 0xa8c   : > { %v2456_v30 = vsel %vm1685_vm0, %v2454_v29, %v2442_v28  ;;  %v2630_v28 = vld [vmem:[%s3509_s2 + $0x18] sm:$0xff] }
 0xa8d   : > { %2654 = vmatpush.msra.mxu2 %v2630_v28 }
 0xa8f   : > { %2655 = vmatpush.msra.mxu2 %v2629_v53 }
 0xa93   : > { %v2450_v31 = vpop.permute.xlu0 %2449 }
 0xa94   : > { %v2458_v32 = vsel %vm1688_vm2, %v2456_v30, %v2450_v31 }
 0xa95   : > { %3061 = vmatmul.msk.f32.gmra.mxu3 %vm1007_vm1, %v2458_v32 }
 0xb06   : > { %v2486_v23 = vpop.f32.mrf.mxu3 }
 0xb07   : > { %v2492_v34 = vadd.f32 %v2486_v23, %v3707_v45 }
 0xb09   : > { %v3874_v35 = vadd.f32 %v3142_v33, %v2492_v34 }
 0xb0b   : > { %v2502_v36 = vsel %vm1007_vm1, %v3874_v35, 0.0 }
 0xb0c   : > { %2503 = vadd.xlane.f32.xlu1 %v2502_v36 }
 0xb18   : > { %v2489_v37 = vpop.f32.mrf.mxu3 }
 0xb19   : > { %v2493_v38 = vadd.f32 %v2489_v37, %v3712_v49 }
 0xb1b   : > { %v3879_v39 = vadd.f32 %v3142_v33, %v2493_v38  ;;  %v3144_v33 = vld [vmem:[%s4051_s0] ss:$0 sm:$0xff] }
 0xb1d   : > { %v2505_v40 = vsel %vm1007_vm1, %v3879_v39, 0.0 }
 0xb1e   : > { %2506 = vadd.xlane.f32.xlu2 %v2505_v40 }
 0xb7f   : > { %v2504_v41 = vpop.xlane.xlu1 %2503 }
 0xb80   : > { %v2508_v45 = vmul.f32 %v2504_v41, %v3538_v12 }
 0xb82   : > { %v3885_v42 = vsub.f32 %v3874_v35, %v2508_v45 }
 0xb84   : > { %v2512_v43 = vmul.f32 %v3885_v42, %v3885_v42  ;;  %v2525_v31 = vmul.f32 %v3143_v19, %v3885_v42 }
 0xb86   : > { %v2514_v44 = vsel %vm1007_vm1, %v2512_v43, 0.0 }
 0xb87   : > { %2515 = vadd.xlane.f32.xlu0 %v2514_v44 }
 0xb91   : > { %v2507_v49 = vpop.xlane.xlu2 %2506 }
 0xb92   : > { %v2509_v46 = vmul.f32 %v2507_v49, %v3538_v12 }
 0xb94   : > { %v3892_v47 = vsub.f32 %v3879_v39, %v2509_v46 }
 0xb96   : > { %v2513_v48 = vmul.f32 %v3892_v47, %v3892_v47 }
 0xb98   : > { %v2517_v50 = vsel %vm1007_vm1, %v2513_v48, 0.0  ;;  %v2526_v48 = vmul.f32 %v3143_v19, %v3892_v47 }
 0xb99   : > { %2518 = vadd.xlane.f32.xlu2 %v2517_v50 }
 0xbfa   : > { %v2516_v51 = vpop.xlane.xlu0 %2515 }
 0xbfb   : > { %v2520_v8 = vmul.f32 0.032258064, %v2516_v51 }
 0xbfd   : > { %3229 = vrsqrt.f32 %v2520_v8  ;;  %vm2534_vm15 = vcmp.eq.f32.partialorder %v2520_v8, inf  ;;  %v2537_v62 = vand.u32 2147483648, %v2520_v8  ;;  %vm2536_vm0 = vcmp.eq.f32.partialorder %v2520_v8, 0.0 }
 0xc03   : > { %v3230_v2 = vpop.eup %3229 }
 0xc04   : > { %v2528_v54 = vmul.f32 %v3230_v2, %v2520_v8 }
 0xc06   : > { %v2529_v4 = vmul.f32 %v3230_v2, %v2528_v54  ;;  %v2627_v54 = vld [vmem:[%s3509_s2] sm:$0xff] }
 0xc08   : > { %v2530_v56 = vmul.f32 0.5, %v2529_v4 }
 0xc0a   : > { %v2531_v57 = vsub.f32 1.5, %v2530_v56 }
 0xc0c   : > { %v2532_v58 = vmul.f32 %v3230_v2, %v2531_v57  ;;  %v2519_v10 = vpop.xlane.xlu2 %2518  ;;  %v2628_v2 = vld [vmem:[%s3509_s2 + $0x8] sm:$0xff]  ;;  %s4053_s2 = scalar_lea.vmem %s3984_s19, %s3441_s27 }
 0xc0d   : > { %v2521_v59 = vmul.f32 0.032258064, %v2519_v10  ;;  %2656 = vmatpush.msra.mxu2 %v2628_v2  ;;  %v3146_v10 = vld [vmem:[%s4053_s2] ss:$0 sm:$0xff] }
 0xc0e   : > { %v2533_v60 = vmul.f32 %v2532_v58, %v2520_v8 }
 0xc0f   : > { %3231 = vrsqrt.f32 %v2521_v59  ;;  %vm2546_vm3 = vcmp.eq.f32.partialorder %v2521_v59, inf  ;;  %v2549_v26 = vand.u32 2147483648, %v2521_v59  ;;  %vm2548_vm5 = vcmp.eq.f32.partialorder %v2521_v59, 0.0  ;;  %2657 = vmatpush.msra.mxu2 %v2627_v54 }
 0xc10   : > { %v2535_v63 = vsel %vm2534_vm15, %v2520_v8, %v2533_v60 }
 0xc11   : > { %v2538_v0 = vsel %vm2536_vm0, %v2537_v62, %v2535_v63 }
 0xc12   : > { %v2551_v1 = vadd.f32 1e-06, %v2538_v0 }
 0xc14   : > { %3233 = vrcp.f32 %v2551_v1  ;;  %v2564_v18 = vand.u32 2147483648, %v2551_v1  ;;  %v2562_v22 = vand.u32 2147483647, %v2551_v1  ;;  %vm2558_vm4 = vweird.f32 %v2551_v1 }
 0xc15   : > { %v3232_v3 = vpop.eup %3231 }
 0xc16   : > { %v2540_v6 = vmul.f32 %v3232_v3, %v2521_v59  ;;  %v2565_v30 = vor.u32 1.1754944e-38, %v2564_v18  ;;  %vm2563_vm7 = vcmp.eq.f32.partialorder %v2562_v22, 8.507059e+37 }
 0xc18   : > { %v2541_v7 = vmul.f32 %v3232_v3, %v2540_v6 }
 0xc1a   : > { %v3234_v9 = vpop.eup %3233  ;;  %v2542_v61 = vmul.f32 0.5, %v2541_v7 }
 0xc1b   : > { %v2554_v11 = vmul.f32 %v3234_v9, %v2551_v1  ;;  %vm2559_vm2 = vweird.f32 %v3234_v9 }
 0xc1c   : > { %v2543_v15 = vsub.f32 1.5, %v2542_v61  ;;  %vm2560_vm6 = vmor %vm2558_vm4, %vm2559_vm2 }
 0xc1d   : > { %v2555_v16 = vsub.f32 1.0, %v2554_v11 }
 0xc1e   : > { %v2544_v5 = vmul.f32 %v3232_v3, %v2543_v15 }
 0xc1f   : > { %v2556_v21 = vmul.f32 %v3234_v9, %v2555_v16 }
 0xc20   : > { %v2545_v25 = vmul.f32 %v2544_v5, %v2521_v59 }
 0xc21   : > { %v2557_v27 = vadd.f32 %v3234_v9, %v2556_v21 }
 0xc22   : > { %v2547_v29 = vsel %vm2546_vm3, %v2521_v59, %v2545_v25 }
 0xc23   : > { %v2561_v32 = vsel %vm2560_vm6, %v3234_v9, %v2557_v27  ;;  %v2550_v23 = vsel %vm2548_vm5, %v2549_v26, %v2547_v29 }
 0xc24   : > { %v2566_v34 = vsel %vm2563_vm7, %v2565_v30, %v2561_v32  ;;  %v2552_v36 = vadd.f32 1e-06, %v2550_v23 }
 0xc25   : > { %v2567_v37 = vmul.f32 %v2566_v34, %v2525_v31 }
 0xc26   : > { %3235 = vrcp.f32 %v2552_v36  ;;  %v2579_v42 = vand.u32 2147483648, %v2552_v36  ;;  %v2577_v44 = vand.u32 2147483647, %v2552_v36  ;;  %vm2573_vm9 = vweird.f32 %v2552_v36 }
 0xc27   : > { %v2586_v38 = vadd.f32 %v3144_v33, %v2567_v37 }
 0xc28   : > { %v2580_v46 = vor.u32 1.1754944e-38, %v2579_v42  ;;  %vm2578_vm11 = vcmp.eq.f32.partialorder %v2577_v44, 8.507059e+37 }
 0xc29   : > { %3062 = vmatmul.msk.f32.vlgmr.msra.gmra.mxu1 %vm1007_vm1, %v2586_v38 }
 0xc2c   : > { %v3236_v40 = vpop.eup %3235 }
 0xc2d   : > { %v2569_v41 = vmul.f32 %v3236_v40, %v2552_v36  ;;  %vm2574_vm8 = vweird.f32 %v3236_v40 }
 0xc2e   : > { %vm2575_vm10 = vmor %vm2573_vm9, %vm2574_vm8 }
 0xc2f   : > { %v2570_v45 = vsub.f32 1.0, %v2569_v41 }
 0xc31   : > { %v2571_v43 = vmul.f32 %v3236_v40, %v2570_v45 }
 0xc33   : > { %v2572_v49 = vadd.f32 %v3236_v40, %v2571_v43 }
 0xc35   : > { %v2576_v50 = vsel %vm2575_vm10, %v3236_v40, %v2572_v49 }
 0xc36   : > { %v2581_v51 = vsel %vm2578_vm11, %v2580_v46, %v2576_v50 }
 0xc37   : > { %v2582_v8 = vmul.f32 %v2581_v51, %v2526_v48 }
 0xc39   : > { %v2587_v52 = vadd.f32 %v3144_v33, %v2582_v8 }
 0xc3b   : > { %3063 = vmatmul.msk.f32.gmra.mxu1 %vm1007_vm1, %v2587_v52 }
 0xca6   : > { %v2619_v47 = vpop.f32.mrf.mxu1 }
 0xca7   : > { %v2620_v4 = vadd.f32 %v3145_v24, %v2619_v47 }
 0xca9   : > { %v2625_v55 = vmax.f32 %v2620_v4, 0.0 }
 0xcab   : > { %3064 = vmatmul.msk.f32.vlgmr.msra.gmra.mxu2 %vm2635_vm12, %v2625_v55 }
 0xcb8   : > { %v2622_v56 = vpop.f32.mrf.mxu1 }
 0xcb9   : > { %v2623_v57 = vadd.f32 %v3145_v24, %v2622_v56 }
 0xcbb   : > { %v2626_v58 = vmax.f32 %v2623_v57, 0.0 }
 0xcbd   : > { %3065 = vmatmul.msk.f32.gmra.mxu2 %vm2635_vm12, %v2626_v58 }
 0xd2e   : > { %v2659_v59 = vpop.f32.mrf.mxu2 }
 0xd2f   : > { %v2665_v60 = vadd.f32 %v2659_v59, %v3874_v35 }
 0xd31   : > { %v2671_v62 = vadd.f32 %v3146_v10, %v2665_v60 }
 0xd33   : > { %2673 = vst.msk [vmem:[#allocation2] sm:$0xff] %vm1007_vm1, %v2671_v62 }
 0xd40   : > { %v2662_v63 = vpop.f32.mrf.mxu2 }
 0xd41   : > { %v2666_v0 = vadd.f32 %v2662_v63, %v3879_v39  ;;  %2678 = sbr.rel (%p3066_p5) target bundleno = 3693 (0xe6d), region = 124 }
 0xd43   : > { %v2672_v1 = vadd.f32 %v3146_v10, %v2666_v0 }
 0xd45   : > { %2674 = vst.msk [vmem:[#allocation2 + $0x8] sm:$0xff] %vm1007_vm1, %v2672_v1 }
 0xd46   : > { %v2681_v3 = vsel %vm1007_vm1, %v2671_v62, 0.0  ;;  %v2684_v6 = vsel %vm1007_vm1, %v2672_v1, 0.0  ;;  %v3237_v48 = vld [vmem:[%s4055_s1] ss:$0 sm:$0xff] }
 0xd47   : > { %2682 = vadd.xlane.f32.xlu0 %v2681_v3  ;;  %v3238_v24 = vld [vmem:[%s4056_s12] ss:$0 sm:$0xff] }
 0xd4f   : > { %2685 = vadd.xlane.f32.xlu0 %v2684_v6 }
 0xdba   : > { %v2683_v7 = vpop.xlane.xlu0 %2682 }
 0xdbb   : > { %v2687_v35 = vmul.f32 %v2683_v7, %v3538_v12 }
 0xdbd   : > { %v2689_v9 = vsub.f32 %v2671_v62, %v2687_v35 }
 0xdbf   : > { %v2691_v61 = vmul.f32 %v2689_v9, %v2689_v9  ;;  %v2704_v2 = vmul.f32 %v3237_v48, %v2689_v9 }
 0xdc1   : > { %v2693_v11 = vsel %vm1007_vm1, %v2691_v61, 0.0 }
 0xdc2   : > { %2694 = vadd.xlane.f32.xlu1 %v2693_v11  ;;  %v2686_v39 = vpop.xlane.xlu0 %2685 }
 0xdc3   : > { %v2688_v13 = vmul.f32 %v2686_v39, %v3538_v12 }
 0xdc5   : > { %v3943_v14 = vsub.f32 %v2672_v1, %v2688_v13 }
 0xdc7   : > { %v2692_v15 = vmul.f32 %v3943_v14, %v3943_v14  ;;  %v2705_v63 = vmul.f32 %v3237_v48, %v3943_v14 }
 0xdc9   : > { %v2696_v16 = vsel %vm1007_vm1, %v2692_v15, 0.0 }
 0xdca   : > { %2697 = vadd.xlane.f32.xlu1 %v2696_v16 }
 0xe35   : > { %v2695_v17 = vpop.xlane.xlu1 %2694 }
 0xe36   : > { %v2699_v5 = vmul.f32 0.032258064, %v2695_v17 }
 0xe38   : > { %3239 = vrsqrt.f32 %v2699_v5  ;;  %vm2713_vm13 = vcmp.eq.f32.partialorder %v2699_v5, inf  ;;  %v2716_v31 = vand.u32 2147483648, %v2699_v5  ;;  %vm2715_vm14 = vcmp.eq.f32.partialorder %v2699_v5, 0.0 }
 0xe3d   : > { %v2698_v18 = vpop.xlane.xlu1 %2697 }
 0xe3e   : > { %v3240_v19 = vpop.eup %3239  ;;  %v2700_v21 = vmul.f32 0.032258064, %v2698_v18 }
 0xe3f   : > { %v2707_v22 = vmul.f32 %v3240_v19, %v2699_v5 }
 0xe40   : > { %3241 = vrsqrt.f32 %v2700_v21  ;;  %vm2725_vm15 = vcmp.eq.f32.partialorder %v2700_v21, inf  ;;  %v2728_v40 = vand.u32 2147483648, %v2700_v21  ;;  %vm2727_vm0 = vcmp.eq.f32.partialorder %v2700_v21, 0.0 }
 0xe41   : > { %v2708_v20 = vmul.f32 %v3240_v19, %v2707_v22 }
 0xe43   : > { %v2709_v25 = vmul.f32 0.5, %v2708_v20 }
 0xe45   : > { %v2710_v26 = vsub.f32 1.5, %v2709_v25 }
 0xe46   : > { %v3242_v12 = vpop.eup %3241 }
 0xe47   : > { %v2711_v27 = vmul.f32 %v3240_v19, %v2710_v26  ;;  %v2719_v28 = vmul.f32 %v3242_v12, %v2700_v21 }
 0xe49   : > { %v2712_v29 = vmul.f32 %v2711_v27, %v2699_v5  ;;  %v2720_v30 = vmul.f32 %v3242_v12, %v2719_v28 }
 0xe4b   : > { %v2714_v32 = vsel %vm2713_vm13, %v2699_v5, %v2712_v29  ;;  %v2721_v33 = vmul.f32 0.5, %v2720_v30 }
 0xe4c   : > { %v2717_v23 = vsel %vm2715_vm14, %v2716_v31, %v2714_v32 }
 0xe4d   : > { %v2730_v34 = vadd.f32 1e-06, %v2717_v23  ;;  %v2722_v36 = vsub.f32 1.5, %v2721_v33 }
 0xe4f   : > { %3243 = vrcp.f32 %v2730_v34  ;;  %v2723_v37 = vmul.f32 %v3242_v12, %v2722_v36  ;;  %v2743_v46 = vand.u32 2147483648, %v2730_v34  ;;  %v2741_v51 = vand.u32 2147483647, %v2730_v34 }
 0xe50   : > { %vm2737_vm3 = vweird.f32 %v2730_v34 }
 0xe51   : > { %v2724_v38 = vmul.f32 %v2723_v37, %v2700_v21  ;;  %v2744_v52 = vor.u32 1.1754944e-38, %v2743_v46  ;;  %vm2742_vm5 = vcmp.eq.f32.partialorder %v2741_v51, 8.507059e+37 }
 0xe53   : > { %v2726_v41 = vsel %vm2725_vm15, %v2700_v21, %v2724_v38 }
 0xe54   : > { %v2729_v42 = vsel %vm2727_vm0, %v2728_v40, %v2726_v41 }
 0xe55   : > { %v3244_v45 = vpop.eup %3243  ;;  %v2731_v44 = vadd.f32 1e-06, %v2729_v42 }
 0xe56   : > { %v2733_v43 = vmul.f32 %v3244_v45, %v2730_v34  ;;  %vm2738_vm2 = vweird.f32 %v3244_v45 }
 0xe57   : > { %3245 = vrcp.f32 %v2731_v44  ;;  %vm2739_vm4 = vmor %vm2737_vm3, %vm2738_vm2  ;;  %v2758_v58 = vand.u32 2147483648, %v2731_v44  ;;  %v2756_v59 = vand.u32 2147483647, %v2731_v44  ;;  %vm2752_vm7 = vweird.f32 %v2731_v44 }
 0xe58   : > { %v2734_v49 = vsub.f32 1.0, %v2733_v43 }
 0xe59   : > { %v2759_v62 = vor.u32 1.1754944e-38, %v2758_v58  ;;  %vm2757_vm9 = vcmp.eq.f32.partialorder %v2756_v59, 8.507059e+37 }
 0xe5a   : > { %v2735_v50 = vmul.f32 %v3244_v45, %v2734_v49 }
 0xe5c   : > { %v2736_v8 = vadd.f32 %v3244_v45, %v2735_v50 }
 0xe5d   : > { %v3246_v53 = vpop.eup %3245 }
 0xe5e   : > { %v2740_v54 = vsel %vm2739_vm4, %v3244_v45, %v2736_v8  ;;  %v2748_v4 = vmul.f32 %v3246_v53, %v2731_v44  ;;  %vm2753_vm6 = vweird.f32 %v3246_v53 }
 0xe5f   : > { %v2745_v47 = vsel %vm2742_vm5, %v2744_v52, %v2740_v54  ;;  %vm2754_vm8 = vmor %vm2752_vm7, %vm2753_vm6 }
 0xe60   : > { %v2746_v55 = vmul.f32 %v2745_v47, %v2704_v2  ;;  %v2749_v56 = vsub.f32 1.0, %v2748_v4 }
 0xe62   : > { %v2765_v57 = vadd.f32 %v3238_v24, %v2746_v55  ;;  %v2750_v10 = vmul.f32 %v3246_v53, %v2749_v56 }
 0xe64   : > { %2767 = vst.msk [vmem:[#allocation3] sm:$0xff] %vm1007_vm1, %v2765_v57  ;;  %v2751_v60 = vadd.f32 %v3246_v53, %v2750_v10 }
 0xe66   : > { %v2755_v0 = vsel %vm2754_vm8, %v3246_v53, %v2751_v60 }
 0xe67   : > { %v2760_v1 = vsel %vm2757_vm9, %v2759_v62, %v2755_v0 }
 0xe68   : > { %v2761_v3 = vmul.f32 %v2760_v1, %v2705_v63 }
 0xe6a   : > { %v2766_v6 = vadd.f32 %v3238_v24, %v2761_v3 }
 0xe6c   : > { %2768 = vst.msk [vmem:[#allocation3 + $0x8] sm:$0xff] %vm1007_vm1, %v2766_v6 }
 0xe6d PF: > { %s4057_s8 = sld [smem:[#allocation7_spill]]  ;;  %s3302_s26 = smov [#allocation3]  }
 0xe6e   : > { %s2774_s0 = sshll.u32 %s3302_s26, 4  ;;  %s4058_s5 = sld [smem:[#allocation24_spill]]  ;;  %s2775_s0 = int_to_ptr.vmem [resolvable:$true] %s2774_s0 }
 0xe6f   : > { %s3303_s22 = smov 128  }
 0xe73   : > { %p3081_p6 = scmp.eq.s32.totalorder %s4057_s8, 1 }
 0xe74   : > { %s2776_s30 = sshll.u32 %s4058_s5, 4  ;;  %s2777_s30 = int_to_ptr.hbm [resolvable:$true] %s2776_s30 }
 0xe75   : > { %3078 = dma.vmem_to_hbm [thread:$0]  (%p3081_p6), %s2775_s0, 256, %s2777_s30, [#allocation4], %s3303_s22, %s3303_s22, %s3299_s6  }
 0xe76   : > { %3280 = dma.done.wait (%p3081_p6), [#allocation4], 256  }
 0xe77   : > { %3282 = vsyncadd (%p3081_p6), [#allocation4], 4294967040 }
 0xe78 PF: > { %s4059_s2 = sld [smem:[#allocation6_spill]] }
 0xe7e   : > { %s35_s5 = sadd.s32 1, %s4059_s2  }
 0xe7f   : > { %p32_p7 = scmp.ge.s32.totalorder %s35_s5, 4  }
 0xe81   :  { %34 = sbr.rel (!%p32_p7) target bundleno = 17 (0x11), region = 202 }
 0xe86   :  { %2793 = vsyncpa [#allocation4], 1 }
 0xe87   :  { %2795 = vsyncpa [#allocation4 + $0x1], 1 }

</bundles_post_ra>
